<compile_context>
chip_gen: v7x
topology: tpu7x:2x2x1
jax: 0.10.0
libtpu: 0.0.40
codegen_flags: <defaults>
</compile_context>

<pallas_src>
import functools

import numpy as np

import jax
import jax.numpy as jnp
from jax import lax
from jax.experimental import pallas as pl
from jax.experimental.pallas import tpu as pltpu


def _pure_phase_conv_kernel(wr_ref, wi_ref, scal_ref, *refs,
                            K, Copg, Cipg, TH, has_imag):
    """One grid step = (batch n, group g, output-row tile h).

    wr_ref / wi_ref : (G*Copg*Cipg*K*K,) SMEM  flat real/imag kernel taps
    scal_ref        : (2,)               SMEM  [w_scalar, bias]
    xr_ref (xi_ref) : (1, Cipg, Hp, Wp)  VMEM  padded input real (and imag) for group g
    out_ref         : (1, Copg, TH, Wo)  VMEM  output row tile
    """
    if has_imag:
        xr_ref, xi_ref, out_ref = refs
    else:
        xr_ref, out_ref = refs
        xi_ref = None

    _, _, Hp, Wp = xr_ref.shape
    Wo = Wp - K + 1

    g = pl.program_id(1)
    row0 = pl.multiple_of(pl.program_id(2) * TH, TH)

    taps_per_out = Cipg * K * K
    wbase = g * (Copg * taps_per_out)

    w_s = scal_ref[0]
    w2 = w_s * w_s          # hoisted: (w*|y|)^2 == w^2*(r^2+i^2), no sqrt / EUP needed
    b_s = scal_ref[1]

    acc_r = [jnp.zeros((TH, Wo), jnp.float32) for _ in range(Copg)]
    acc_i = [jnp.zeros((TH, Wo), jnp.float32) for _ in range(Copg)]

    # TODO(synk): for large Cin/Cout an im2col + MXU matmul formulation (lane-dense
    # patches, f32 accumulate) would beat this VPU scalar-broadcast form; channel
    # counts here are tiny, so the VPU path with tap-window reuse is used.
    for ci in range(Cipg):
        for kh in range(K):
            for kw in range(K):
                # one window load per tap, reused for every output channel
                xr = xr_ref[0, ci, pl.ds(row0 + kh, TH), pl.ds(kw, Wo)]
                xi = (xi_ref[0, ci, pl.ds(row0 + kh, TH), pl.ds(kw, Wo)]
                      if has_imag else None)
                tap = (ci * K + kh) * K + kw
                for co in range(Copg):
                    idx = wbase + co * taps_per_out + tap
                    wr = wr_ref[idx]
                    wi = wi_ref[idx]
                    if has_imag:
                        acc_r[co] = acc_r[co] + (xr * wr - xi * wi)
                        acc_i[co] = acc_i[co] + (xi * wr + xr * wi)
                    else:
                        acc_r[co] = acc_r[co] + xr * wr
                        acc_i[co] = acc_i[co] + xr * wi

    # TODO(synk): Wo=16 keeps these stores lane-sparse; a flat (N, Cout, Ho*Wo) output
    # layout would be lane-dense but needs an in-kernel (Ho,Wo)->(Ho*Wo,) relayout —
    # negligible at these output sizes, so skipped.
    for co in range(Copg):
        out_ref[0, co, :, :] = w2 * (acc_r[co] * acc_r[co] + acc_i[co] * acc_i[co]) + b_s


def complex_conv2d_pure_phase(x, phase, *, padding=0, groups=1,
                              w_scalar=1.0, bias_scalar=0.0, use_bias=False):
    """JAX/Pallas equivalent of ComplexConv2d_PurePhase.forward (NCHW)."""
    out_c, Cipg, K, K2 = phase.shape
    assert K == K2
    G = groups
    Copg = out_c // G

    # Tiny KxK ifft2 of exp(i*phase): plain-JAX glue (no Pallas FFT primitive).
    k = jnp.fft.ifft2(lax.complex(jnp.cos(phase), jnp.sin(phase)), axes=(2, 3))
    wr_flat = jnp.real(k).astype(jnp.float32).reshape(-1)
    wi_flat = jnp.imag(k).astype(jnp.float32).reshape(-1)

    has_imag = bool(jnp.iscomplexobj(x))       # trace-time gate: real input -> no imag stream
    if has_imag:
        xr = jnp.real(x).astype(jnp.float32)
        xi = jnp.imag(x).astype(jnp.float32)
    else:
        xr = x.astype(jnp.float32)
        xi = None

    N, Cin, H, W = xr.shape
    assert Cin == G * Cipg
    Hp, Wp = H + 2 * padding, W + 2 * padding
    Ho, Wo = Hp - K + 1, Wp - K + 1

    pad = ((0, 0), (0, 0), (padding, padding), (padding, padding))
    xr_p = jnp.pad(xr, pad)
    xi_p = jnp.pad(xi, pad) if has_imag else None

    # Output-row tiling: extra grid steps per core for pipelining / megacore sharding.
    # TODO(synk): for very large H, halo-tiled INPUT blocks would bound VMEM; here the
    # full padded image per (n, g) is tiny and stays resident across the h axis.
    TH = 8 if (Ho % 8 == 0 and Ho > 8) else Ho
    NH = Ho // TH

    scal = jnp.array([w_scalar, bias_scalar if use_bias else 0.0], jnp.float32)

    in_specs = [
        pl.BlockSpec(memory_space=pltpu.MemorySpace.SMEM),                 # wr
        pl.BlockSpec(memory_space=pltpu.MemorySpace.SMEM),                 # wi
        pl.BlockSpec(memory_space=pltpu.MemorySpace.SMEM),                 # [w_scalar, bias]
        pl.BlockSpec((1, Cipg, Hp, Wp), lambda n, g, h: (n, g, 0, 0)),     # x real
    ]
    inputs = [wr_flat, wi_flat, scal, xr_p]
    if has_imag:
        in_specs.append(pl.BlockSpec((1, Cipg, Hp, Wp), lambda n, g, h: (n, g, 0, 0)))
        inputs.append(xi_p)

    kernel = functools.partial(_pure_phase_conv_kernel, K=K, Copg=Copg, Cipg=Cipg,
                               TH=TH, has_imag=has_imag)

    # double-buffered input block(s) + double-buffered output tile + headroom
    n_in = 2 if has_imag else 1
    vmem_bytes = 2 * n_in * (Cipg * Hp * Wp * 4) + 2 * (Copg * TH * Wo * 4)
    vmem_limit = min(max(vmem_bytes + (4 << 20), 16 << 20), 64 << 20)

    return pl.pallas_call(
        kernel,
        out_shape=jax.ShapeDtypeStruct((N, out_c, Ho, Wo), jnp.float32),
        grid_spec=pltpu.PrefetchScalarGridSpec(
            num_scalar_prefetch=0,
            grid=(N, G, NH),
            in_specs=in_specs,
            out_specs=pl.BlockSpec((1, Copg, TH, Wo), lambda n, g, h: (n, g, h, 0)),
        ),
        compiler_params=pltpu.CompilerParams(
            dimension_semantics=("parallel", "parallel", "arbitrary"),
            vmem_limit_bytes=vmem_limit,
        ),
    )(*inputs)


def _reference(x, phase, padding, groups, w_scalar, bias_scalar, use_bias):
    """Pure-JAX reference matching the PyTorch forward."""
    k = jnp.fft.ifft2(lax.complex(jnp.cos(phase), jnp.sin(phase)), axes=(2, 3))
    kr, ki = jnp.real(k), jnp.imag(k)
    xc = x.astype(jnp.complex64)
    xr, xi = jnp.real(xc), jnp.imag(xc)
    dn = ('NCHW', 'OIHW', 'NCHW')

    def conv(a, w):
        return lax.conv_general_dilated(
            a, w, window_strides=(1, 1),
            padding=[(padding, padding), (padding, padding)],
            dimension_numbers=dn, feature_group_count=groups)

    yr = conv(xr, kr) - conv(xi, ki)
    yi = conv(xi, kr) + conv(xr, ki)
    out = jnp.square(w_scalar * jnp.sqrt(yr * yr + yi * yi))
    if use_bias:
        out = out + bias_scalar
    return out


if __name__ == "__main__":
    # Small shapes consistent with the module: NCHW input, square KxK kernel.
    N, in_c, out_c, H, W = 2, 4, 4, 16, 16
    K, padding = 3, 1

    key = jax.random.PRNGKey(0)
    kx, kp = jax.random.split(key)
    x = jax.random.normal(kx, (N, in_c, H, W), jnp.float32)

    # Config 1: groups=1, scalar=False (w=1.0), bias=False  (default module config).
    phase1 = jax.random.normal(kp, (out_c, in_c, K, K), jnp.float32)
    out1 = complex_conv2d_pure_phase(x, phase1, padding=padding, groups=1,
                                     w_scalar=1.0, bias_scalar=0.0, use_bias=False)
    out1 = jax.block_until_ready(out1)
    ref1 = _reference(x, phase1, padding, 1, 1.0, 0.0, False)
    np.testing.assert_allclose(np.asarray(out1), np.asarray(ref1), rtol=2e-3, atol=1e-4)

    # Config 2: groups=2, learned scalar (0.1) and bias (1e-4) — exercises the folded
    # group grid axis and the scalar/bias path.
    groups2 = 2
    phase2 = jax.random.normal(jax.random.PRNGKey(1),
                               (out_c, in_c // groups2, K, K), jnp.float32)
    out2 = complex_conv2d_pure_phase(x, phase2, padding=padding, groups=groups2,
                                     w_scalar=0.1, bias_scalar=1e-4, use_bias=True)
    out2 = jax.block_until_ready(out2)
    ref2 = _reference(x, phase2, padding, groups2, 0.1, 1e-4, True)
    np.testing.assert_allclose(np.asarray(out2), np.asarray(ref2), rtol=2e-3, atol=1e-5)

    print("KERNEL_OK")
</pallas_src>

<mosaic_0001>
module attributes {stable_mosaic.version = 11 : i64} {
  func.func @_pure_phase_conv_kernel(%arg0: i32, %arg1: i32, %arg2: i32, %arg3: memref<144xf32, #tpu.memory_space<smem>>, %arg4: memref<144xf32, #tpu.memory_space<smem>>, %arg5: memref<2xf32, #tpu.memory_space<smem>>, %arg6: memref<1x4x18x18xf32, #tpu.memory_space<vmem>>, %arg7: memref<1x4x8x16xf32, #tpu.memory_space<vmem>>) attributes {dimension_semantics = [#tpu.dimension_semantics<parallel>, #tpu.dimension_semantics<parallel>, #tpu.dimension_semantics<arbitrary>], iteration_bounds = array<i64: 2, 1, 2>, scalar_prefetch = 0 : i64, scratch_operands = 0 : i64, tpu.core_type = #tpu.core_type<tc>, window_params = [{transform_indices = @transform_0, window_bounds = array<i64: 144>}, {transform_indices = @transform_1, window_bounds = array<i64: 144>}, {transform_indices = @transform_2, window_bounds = array<i64: 2>}, {transform_indices = @transform_3, window_bounds = array<i64: 1, 4, 18, 18>}, {transform_indices = @transform_4, window_bounds = array<i64: 1, 4, 8, 16>}]} {
    %c8_i32 = arith.constant 8 : i32
    %0 = arith.muli %arg2, %c8_i32 : i32
    %1 = tpu.assume_multiple %0, 8 : i32
    %c144_i32 = arith.constant 144 : i32
    %2 = arith.muli %arg1, %c144_i32 : i32
    %c0 = arith.constant 0 : index
    %3 = memref.load %arg5[%c0] : memref<2xf32, #tpu.memory_space<smem>>
    %4 = arith.mulf %3, %3 : f32
    %c1 = arith.constant 1 : index
    %5 = memref.load %arg5[%c1] : memref<2xf32, #tpu.memory_space<smem>>
    %cst = arith.constant 0.000000e+00 : f32
    %6 = vector.broadcast %cst : f32 to vector<8x16xf32>
    %cst_0 = arith.constant 0.000000e+00 : f32
    %7 = vector.broadcast %cst_0 : f32 to vector<8x16xf32>
    %cst_1 = arith.constant 0.000000e+00 : f32
    %8 = vector.broadcast %cst_1 : f32 to vector<8x16xf32>
    %cst_2 = arith.constant 0.000000e+00 : f32
    %9 = vector.broadcast %cst_2 : f32 to vector<8x16xf32>
    %cst_3 = arith.constant 0.000000e+00 : f32
    %10 = vector.broadcast %cst_3 : f32 to vector<8x16xf32>
    %cst_4 = arith.constant 0.000000e+00 : f32
    %11 = vector.broadcast %cst_4 : f32 to vector<8x16xf32>
    %cst_5 = arith.constant 0.000000e+00 : f32
    %12 = vector.broadcast %cst_5 : f32 to vector<8x16xf32>
    %cst_6 = arith.constant 0.000000e+00 : f32
    %13 = vector.broadcast %cst_6 : f32 to vector<8x16xf32>
    %c0_i32 = arith.constant 0 : i32
    %14 = arith.addi %1, %c0_i32 : i32
    %c0_7 = arith.constant 0 : index
    %c0_8 = arith.constant 0 : index
    %15 = arith.index_cast %14 : i32 to index
    %c0_9 = arith.constant 0 : index
    %16 = vector.load %arg6[%c0_7, %c0_8, %15, %c0_9] : memref<1x4x18x18xf32, #tpu.memory_space<vmem>>, vector<1x1x8x16xf32>
    %17 = vector.shape_cast %16 : vector<1x1x8x16xf32> to vector<8x16xf32>
    %c0_i32_10 = arith.constant 0 : i32
    %18 = arith.addi %2, %c0_i32_10 : i32
    %c0_i32_11 = arith.constant 0 : i32
    %19 = arith.addi %18, %c0_i32_11 : i32
    %20 = arith.index_cast %19 : i32 to index
    %21 = memref.load %arg3[%20] : memref<144xf32, #tpu.memory_space<smem>>
    %22 = arith.index_cast %19 : i32 to index
    %23 = memref.load %arg4[%22] : memref<144xf32, #tpu.memory_space<smem>>
    %24 = vector.broadcast %21 : f32 to vector<8x16xf32>
    %25 = arith.mulf %17, %24 : vector<8x16xf32>
    %26 = arith.addf %6, %25 : vector<8x16xf32>
    %27 = vector.broadcast %23 : f32 to vector<8x16xf32>
    %28 = arith.mulf %17, %27 : vector<8x16xf32>
    %29 = arith.addf %10, %28 : vector<8x16xf32>
    %c36_i32 = arith.constant 36 : i32
    %30 = arith.addi %2, %c36_i32 : i32
    %c0_i32_12 = arith.constant 0 : i32
    %31 = arith.addi %30, %c0_i32_12 : i32
    %32 = arith.index_cast %31 : i32 to index
    %33 = memref.load %arg3[%32] : memref<144xf32, #tpu.memory_space<smem>>
    %34 = arith.index_cast %31 : i32 to index
    %35 = memref.load %arg4[%34] : memref<144xf32, #tpu.memory_space<smem>>
    %36 = vector.broadcast %33 : f32 to vector<8x16xf32>
    %37 = arith.mulf %17, %36 : vector<8x16xf32>
    %38 = arith.addf %7, %37 : vector<8x16xf32>
    %39 = vector.broadcast %35 : f32 to vector<8x16xf32>
    %40 = arith.mulf %17, %39 : vector<8x16xf32>
    %41 = arith.addf %11, %40 : vector<8x16xf32>
    %c72_i32 = arith.constant 72 : i32
    %42 = arith.addi %2, %c72_i32 : i32
    %c0_i32_13 = arith.constant 0 : i32
    %43 = arith.addi %42, %c0_i32_13 : i32
    %44 = arith.index_cast %43 : i32 to index
    %45 = memref.load %arg3[%44] : memref<144xf32, #tpu.memory_space<smem>>
    %46 = arith.index_cast %43 : i32 to index
    %47 = memref.load %arg4[%46] : memref<144xf32, #tpu.memory_space<smem>>
    %48 = vector.broadcast %45 : f32 to vector<8x16xf32>
    %49 = arith.mulf %17, %48 : vector<8x16xf32>
    %50 = arith.addf %8, %49 : vector<8x16xf32>
    %51 = vector.broadcast %47 : f32 to vector<8x16xf32>
    %52 = arith.mulf %17, %51 : vector<8x16xf32>
    %53 = arith.addf %12, %52 : vector<8x16xf32>
    %c108_i32 = arith.constant 108 : i32
    %54 = arith.addi %2, %c108_i32 : i32
    %c0_i32_14 = arith.constant 0 : i32
    %55 = arith.addi %54, %c0_i32_14 : i32
    %56 = arith.index_cast %55 : i32 to index
    %57 = memref.load %arg3[%56] : memref<144xf32, #tpu.memory_space<smem>>
    %58 = arith.index_cast %55 : i32 to index
    %59 = memref.load %arg4[%58] : memref<144xf32, #tpu.memory_space<smem>>
    %60 = vector.broadcast %57 : f32 to vector<8x16xf32>
    %61 = arith.mulf %17, %60 : vector<8x16xf32>
    %62 = arith.addf %9, %61 : vector<8x16xf32>
    %63 = vector.broadcast %59 : f32 to vector<8x16xf32>
    %64 = arith.mulf %17, %63 : vector<8x16xf32>
    %65 = arith.addf %13, %64 : vector<8x16xf32>
    %c0_i32_15 = arith.constant 0 : i32
    %66 = arith.addi %1, %c0_i32_15 : i32
    %c0_16 = arith.constant 0 : index
    %c0_17 = arith.constant 0 : index
    %67 = arith.index_cast %66 : i32 to index
    %c1_18 = arith.constant 1 : index
    %68 = vector.load %arg6[%c0_16, %c0_17, %67, %c1_18] : memref<1x4x18x18xf32, #tpu.memory_space<vmem>>, vector<1x1x8x16xf32>
    %69 = vector.shape_cast %68 : vector<1x1x8x16xf32> to vector<8x16xf32>
    %c0_i32_19 = arith.constant 0 : i32
    %70 = arith.addi %2, %c0_i32_19 : i32
    %c1_i32 = arith.constant 1 : i32
    %71 = arith.addi %70, %c1_i32 : i32
    %72 = arith.index_cast %71 : i32 to index
    %73 = memref.load %arg3[%72] : memref<144xf32, #tpu.memory_space<smem>>
    %74 = arith.index_cast %71 : i32 to index
    %75 = memref.load %arg4[%74] : memref<144xf32, #tpu.memory_space<smem>>
    %76 = vector.broadcast %73 : f32 to vector<8x16xf32>
    %77 = arith.mulf %69, %76 : vector<8x16xf32>
    %78 = arith.addf %26, %77 : vector<8x16xf32>
    %79 = vector.broadcast %75 : f32 to vector<8x16xf32>
    %80 = arith.mulf %69, %79 : vector<8x16xf32>
    %81 = arith.addf %29, %80 : vector<8x16xf32>
    %c36_i32_20 = arith.constant 36 : i32
    %82 = arith.addi %2, %c36_i32_20 : i32
    %c1_i32_21 = arith.constant 1 : i32
    %83 = arith.addi %82, %c1_i32_21 : i32
    %84 = arith.index_cast %83 : i32 to index
    %85 = memref.load %arg3[%84] : memref<144xf32, #tpu.memory_space<smem>>
    %86 = arith.index_cast %83 : i32 to index
    %87 = memref.load %arg4[%86] : memref<144xf32, #tpu.memory_space<smem>>
    %88 = vector.broadcast %85 : f32 to vector<8x16xf32>
    %89 = arith.mulf %69, %88 : vector<8x16xf32>
    %90 = arith.addf %38, %89 : vector<8x16xf32>
    %91 = vector.broadcast %87 : f32 to vector<8x16xf32>
    %92 = arith.mulf %69, %91 : vector<8x16xf32>
    %93 = arith.addf %41, %92 : vector<8x16xf32>
    %c72_i32_22 = arith.constant 72 : i32
    %94 = arith.addi %2, %c72_i32_22 : i32
    %c1_i32_23 = arith.constant 1 : i32
    %95 = arith.addi %94, %c1_i32_23 : i32
    %96 = arith.index_cast %95 : i32 to index
    %97 = memref.load %arg3[%96] : memref<144xf32, #tpu.memory_space<smem>>
    %98 = arith.index_cast %95 : i32 to index
    %99 = memref.load %arg4[%98] : memref<144xf32, #tpu.memory_space<smem>>
    %100 = vector.broadcast %97 : f32 to vector<8x16xf32>
    %101 = arith.mulf %69, %100 : vector<8x16xf32>
    %102 = arith.addf %50, %101 : vector<8x16xf32>
    %103 = vector.broadcast %99 : f32 to vector<8x16xf32>
    %104 = arith.mulf %69, %103 : vector<8x16xf32>
    %105 = arith.addf %53, %104 : vector<8x16xf32>
    %c108_i32_24 = arith.constant 108 : i32
    %106 = arith.addi %2, %c108_i32_24 : i32
    %c1_i32_25 = arith.constant 1 : i32
    %107 = arith.addi %106, %c1_i32_25 : i32
    %108 = arith.index_cast %107 : i32 to index
    %109 = memref.load %arg3[%108] : memref<144xf32, #tpu.memory_space<smem>>
    %110 = arith.index_cast %107 : i32 to index
    %111 = memref.load %arg4[%110] : memref<144xf32, #tpu.memory_space<smem>>
    %112 = vector.broadcast %109 : f32 to vector<8x16xf32>
    %113 = arith.mulf %69, %112 : vector<8x16xf32>
    %114 = arith.addf %62, %113 : vector<8x16xf32>
    %115 = vector.broadcast %111 : f32 to vector<8x16xf32>
    %116 = arith.mulf %69, %115 : vector<8x16xf32>
    %117 = arith.addf %65, %116 : vector<8x16xf32>
    %c0_i32_26 = arith.constant 0 : i32
    %118 = arith.addi %1, %c0_i32_26 : i32
    %c0_27 = arith.constant 0 : index
    %c0_28 = arith.constant 0 : index
    %119 = arith.index_cast %118 : i32 to index
    %c2 = arith.constant 2 : index
    %120 = vector.load %arg6[%c0_27, %c0_28, %119, %c2] : memref<1x4x18x18xf32, #tpu.memory_space<vmem>>, vector<1x1x8x16xf32>
    %121 = vector.shape_cast %120 : vector<1x1x8x16xf32> to vector<8x16xf32>
    %c0_i32_29 = arith.constant 0 : i32
    %122 = arith.addi %2, %c0_i32_29 : i32
    %c2_i32 = arith.constant 2 : i32
    %123 = arith.addi %122, %c2_i32 : i32
    %124 = arith.index_cast %123 : i32 to index
    %125 = memref.load %arg3[%124] : memref<144xf32, #tpu.memory_space<smem>>
    %126 = arith.index_cast %123 : i32 to index
    %127 = memref.load %arg4[%126] : memref<144xf32, #tpu.memory_space<smem>>
    %128 = vector.broadcast %125 : f32 to vector<8x16xf32>
    %129 = arith.mulf %121, %128 : vector<8x16xf32>
    %130 = arith.addf %78, %129 : vector<8x16xf32>
    %131 = vector.broadcast %127 : f32 to vector<8x16xf32>
    %132 = arith.mulf %121, %131 : vector<8x16xf32>
    %133 = arith.addf %81, %132 : vector<8x16xf32>
    %c36_i32_30 = arith.constant 36 : i32
    %134 = arith.addi %2, %c36_i32_30 : i32
    %c2_i32_31 = arith.constant 2 : i32
    %135 = arith.addi %134, %c2_i32_31 : i32
    %136 = arith.index_cast %135 : i32 to index
    %137 = memref.load %arg3[%136] : memref<144xf32, #tpu.memory_space<smem>>
    %138 = arith.index_cast %135 : i32 to index
    %139 = memref.load %arg4[%138] : memref<144xf32, #tpu.memory_space<smem>>
    %140 = vector.broadcast %137 : f32 to vector<8x16xf32>
    %141 = arith.mulf %121, %140 : vector<8x16xf32>
    %142 = arith.addf %90, %141 : vector<8x16xf32>
    %143 = vector.broadcast %139 : f32 to vector<8x16xf32>
    %144 = arith.mulf %121, %143 : vector<8x16xf32>
    %145 = arith.addf %93, %144 : vector<8x16xf32>
    %c72_i32_32 = arith.constant 72 : i32
    %146 = arith.addi %2, %c72_i32_32 : i32
    %c2_i32_33 = arith.constant 2 : i32
    %147 = arith.addi %146, %c2_i32_33 : i32
    %148 = arith.index_cast %147 : i32 to index
    %149 = memref.load %arg3[%148] : memref<144xf32, #tpu.memory_space<smem>>
    %150 = arith.index_cast %147 : i32 to index
    %151 = memref.load %arg4[%150] : memref<144xf32, #tpu.memory_space<smem>>
    %152 = vector.broadcast %149 : f32 to vector<8x16xf32>
    %153 = arith.mulf %121, %152 : vector<8x16xf32>
    %154 = arith.addf %102, %153 : vector<8x16xf32>
    %155 = vector.broadcast %151 : f32 to vector<8x16xf32>
    %156 = arith.mulf %121, %155 : vector<8x16xf32>
    %157 = arith.addf %105, %156 : vector<8x16xf32>
    %c108_i32_34 = arith.constant 108 : i32
    %158 = arith.addi %2, %c108_i32_34 : i32
    %c2_i32_35 = arith.constant 2 : i32
    %159 = arith.addi %158, %c2_i32_35 : i32
    %160 = arith.index_cast %159 : i32 to index
    %161 = memref.load %arg3[%160] : memref<144xf32, #tpu.memory_space<smem>>
    %162 = arith.index_cast %159 : i32 to index
    %163 = memref.load %arg4[%162] : memref<144xf32, #tpu.memory_space<smem>>
    %164 = vector.broadcast %161 : f32 to vector<8x16xf32>
    %165 = arith.mulf %121, %164 : vector<8x16xf32>
    %166 = arith.addf %114, %165 : vector<8x16xf32>
    %167 = vector.broadcast %163 : f32 to vector<8x16xf32>
    %168 = arith.mulf %121, %167 : vector<8x16xf32>
    %169 = arith.addf %117, %168 : vector<8x16xf32>
    %c1_i32_36 = arith.constant 1 : i32
    %170 = arith.addi %1, %c1_i32_36 : i32
    %c0_37 = arith.constant 0 : index
    %c0_38 = arith.constant 0 : index
    %171 = arith.index_cast %170 : i32 to index
    %c0_39 = arith.constant 0 : index
    %172 = vector.load %arg6[%c0_37, %c0_38, %171, %c0_39] : memref<1x4x18x18xf32, #tpu.memory_space<vmem>>, vector<1x1x8x16xf32>
    %173 = vector.shape_cast %172 : vector<1x1x8x16xf32> to vector<8x16xf32>
    %c0_i32_40 = arith.constant 0 : i32
    %174 = arith.addi %2, %c0_i32_40 : i32
    %c3_i32 = arith.constant 3 : i32
    %175 = arith.addi %174, %c3_i32 : i32
    %176 = arith.index_cast %175 : i32 to index
    %177 = memref.load %arg3[%176] : memref<144xf32, #tpu.memory_space<smem>>
    %178 = arith.index_cast %175 : i32 to index
    %179 = memref.load %arg4[%178] : memref<144xf32, #tpu.memory_space<smem>>
    %180 = vector.broadcast %177 : f32 to vector<8x16xf32>
    %181 = arith.mulf %173, %180 : vector<8x16xf32>
    %182 = arith.addf %130, %181 : vector<8x16xf32>
    %183 = vector.broadcast %179 : f32 to vector<8x16xf32>
    %184 = arith.mulf %173, %183 : vector<8x16xf32>
    %185 = arith.addf %133, %184 : vector<8x16xf32>
    %c36_i32_41 = arith.constant 36 : i32
    %186 = arith.addi %2, %c36_i32_41 : i32
    %c3_i32_42 = arith.constant 3 : i32
    %187 = arith.addi %186, %c3_i32_42 : i32
    %188 = arith.index_cast %187 : i32 to index
    %189 = memref.load %arg3[%188] : memref<144xf32, #tpu.memory_space<smem>>
    %190 = arith.index_cast %187 : i32 to index
    %191 = memref.load %arg4[%190] : memref<144xf32, #tpu.memory_space<smem>>
    %192 = vector.broadcast %189 : f32 to vector<8x16xf32>
    %193 = arith.mulf %173, %192 : vector<8x16xf32>
    %194 = arith.addf %142, %193 : vector<8x16xf32>
    %195 = vector.broadcast %191 : f32 to vector<8x16xf32>
    %196 = arith.mulf %173, %195 : vector<8x16xf32>
    %197 = arith.addf %145, %196 : vector<8x16xf32>
    %c72_i32_43 = arith.constant 72 : i32
    %198 = arith.addi %2, %c72_i32_43 : i32
    %c3_i32_44 = arith.constant 3 : i32
    %199 = arith.addi %198, %c3_i32_44 : i32
    %200 = arith.index_cast %199 : i32 to index
    %201 = memref.load %arg3[%200] : memref<144xf32, #tpu.memory_space<smem>>
    %202 = arith.index_cast %199 : i32 to index
    %203 = memref.load %arg4[%202] : memref<144xf32, #tpu.memory_space<smem>>
    %204 = vector.broadcast %201 : f32 to vector<8x16xf32>
    %205 = arith.mulf %173, %204 : vector<8x16xf32>
    %206 = arith.addf %154, %205 : vector<8x16xf32>
    %207 = vector.broadcast %203 : f32 to vector<8x16xf32>
    %208 = arith.mulf %173, %207 : vector<8x16xf32>
    %209 = arith.addf %157, %208 : vector<8x16xf32>
    %c108_i32_45 = arith.constant 108 : i32
    %210 = arith.addi %2, %c108_i32_45 : i32
    %c3_i32_46 = arith.constant 3 : i32
    %211 = arith.addi %210, %c3_i32_46 : i32
    %212 = arith.index_cast %211 : i32 to index
    %213 = memref.load %arg3[%212] : memref<144xf32, #tpu.memory_space<smem>>
    %214 = arith.index_cast %211 : i32 to index
    %215 = memref.load %arg4[%214] : memref<144xf32, #tpu.memory_space<smem>>
    %216 = vector.broadcast %213 : f32 to vector<8x16xf32>
    %217 = arith.mulf %173, %216 : vector<8x16xf32>
    %218 = arith.addf %166, %217 : vector<8x16xf32>
    %219 = vector.broadcast %215 : f32 to vector<8x16xf32>
    %220 = arith.mulf %173, %219 : vector<8x16xf32>
    %221 = arith.addf %169, %220 : vector<8x16xf32>
    %c1_i32_47 = arith.constant 1 : i32
    %222 = arith.addi %1, %c1_i32_47 : i32
    %c0_48 = arith.constant 0 : index
    %c0_49 = arith.constant 0 : index
    %223 = arith.index_cast %222 : i32 to index
    %c1_50 = arith.constant 1 : index
    %224 = vector.load %arg6[%c0_48, %c0_49, %223, %c1_50] : memref<1x4x18x18xf32, #tpu.memory_space<vmem>>, vector<1x1x8x16xf32>
    %225 = vector.shape_cast %224 : vector<1x1x8x16xf32> to vector<8x16xf32>
    %c0_i32_51 = arith.constant 0 : i32
    %226 = arith.addi %2, %c0_i32_51 : i32
    %c4_i32 = arith.constant 4 : i32
    %227 = arith.addi %226, %c4_i32 : i32
    %228 = arith.index_cast %227 : i32 to index
    %229 = memref.load %arg3[%228] : memref<144xf32, #tpu.memory_space<smem>>
    %230 = arith.index_cast %227 : i32 to index
    %231 = memref.load %arg4[%230] : memref<144xf32, #tpu.memory_space<smem>>
    %232 = vector.broadcast %229 : f32 to vector<8x16xf32>
    %233 = arith.mulf %225, %232 : vector<8x16xf32>
    %234 = arith.addf %182, %233 : vector<8x16xf32>
    %235 = vector.broadcast %231 : f32 to vector<8x16xf32>
    %236 = arith.mulf %225, %235 : vector<8x16xf32>
    %237 = arith.addf %185, %236 : vector<8x16xf32>
    %c36_i32_52 = arith.constant 36 : i32
    %238 = arith.addi %2, %c36_i32_52 : i32
    %c4_i32_53 = arith.constant 4 : i32
    %239 = arith.addi %238, %c4_i32_53 : i32
    %240 = arith.index_cast %239 : i32 to index
    %241 = memref.load %arg3[%240] : memref<144xf32, #tpu.memory_space<smem>>
    %242 = arith.index_cast %239 : i32 to index
    %243 = memref.load %arg4[%242] : memref<144xf32, #tpu.memory_space<smem>>
    %244 = vector.broadcast %241 : f32 to vector<8x16xf32>
    %245 = arith.mulf %225, %244 : vector<8x16xf32>
    %246 = arith.addf %194, %245 : vector<8x16xf32>
    %247 = vector.broadcast %243 : f32 to vector<8x16xf32>
    %248 = arith.mulf %225, %247 : vector<8x16xf32>
    %249 = arith.addf %197, %248 : vector<8x16xf32>
    %c72_i32_54 = arith.constant 72 : i32
    %250 = arith.addi %2, %c72_i32_54 : i32
    %c4_i32_55 = arith.constant 4 : i32
    %251 = arith.addi %250, %c4_i32_55 : i32
    %252 = arith.index_cast %251 : i32 to index
    %253 = memref.load %arg3[%252] : memref<144xf32, #tpu.memory_space<smem>>
    %254 = arith.index_cast %251 : i32 to index
    %255 = memref.load %arg4[%254] : memref<144xf32, #tpu.memory_space<smem>>
    %256 = vector.broadcast %253 : f32 to vector<8x16xf32>
    %257 = arith.mulf %225, %256 : vector<8x16xf32>
    %258 = arith.addf %206, %257 : vector<8x16xf32>
    %259 = vector.broadcast %255 : f32 to vector<8x16xf32>
    %260 = arith.mulf %225, %259 : vector<8x16xf32>
    %261 = arith.addf %209, %260 : vector<8x16xf32>
    %c108_i32_56 = arith.constant 108 : i32
    %262 = arith.addi %2, %c108_i32_56 : i32
    %c4_i32_57 = arith.constant 4 : i32
    %263 = arith.addi %262, %c4_i32_57 : i32
    %264 = arith.index_cast %263 : i32 to index
    %265 = memref.load %arg3[%264] : memref<144xf32, #tpu.memory_space<smem>>
    %266 = arith.index_cast %263 : i32 to index
    %267 = memref.load %arg4[%266] : memref<144xf32, #tpu.memory_space<smem>>
    %268 = vector.broadcast %265 : f32 to vector<8x16xf32>
    %269 = arith.mulf %225, %268 : vector<8x16xf32>
    %270 = arith.addf %218, %269 : vector<8x16xf32>
    %271 = vector.broadcast %267 : f32 to vector<8x16xf32>
    %272 = arith.mulf %225, %271 : vector<8x16xf32>
    %273 = arith.addf %221, %272 : vector<8x16xf32>
    %c1_i32_58 = arith.constant 1 : i32
    %274 = arith.addi %1, %c1_i32_58 : i32
    %c0_59 = arith.constant 0 : index
    %c0_60 = arith.constant 0 : index
    %275 = arith.index_cast %274 : i32 to index
    %c2_61 = arith.constant 2 : index
    %276 = vector.load %arg6[%c0_59, %c0_60, %275, %c2_61] : memref<1x4x18x18xf32, #tpu.memory_space<vmem>>, vector<1x1x8x16xf32>
    %277 = vector.shape_cast %276 : vector<1x1x8x16xf32> to vector<8x16xf32>
    %c0_i32_62 = arith.constant 0 : i32
    %278 = arith.addi %2, %c0_i32_62 : i32
    %c5_i32 = arith.constant 5 : i32
    %279 = arith.addi %278, %c5_i32 : i32
    %280 = arith.index_cast %279 : i32 to index
    %281 = memref.load %arg3[%280] : memref<144xf32, #tpu.memory_space<smem>>
    %282 = arith.index_cast %279 : i32 to index
    %283 = memref.load %arg4[%282] : memref<144xf32, #tpu.memory_space<smem>>
    %284 = vector.broadcast %281 : f32 to vector<8x16xf32>
    %285 = arith.mulf %277, %284 : vector<8x16xf32>
    %286 = arith.addf %234, %285 : vector<8x16xf32>
    %287 = vector.broadcast %283 : f32 to vector<8x16xf32>
    %288 = arith.mulf %277, %287 : vector<8x16xf32>
    %289 = arith.addf %237, %288 : vector<8x16xf32>
    %c36_i32_63 = arith.constant 36 : i32
    %290 = arith.addi %2, %c36_i32_63 : i32
    %c5_i32_64 = arith.constant 5 : i32
    %291 = arith.addi %290, %c5_i32_64 : i32
    %292 = arith.index_cast %291 : i32 to index
    %293 = memref.load %arg3[%292] : memref<144xf32, #tpu.memory_space<smem>>
    %294 = arith.index_cast %291 : i32 to index
    %295 = memref.load %arg4[%294] : memref<144xf32, #tpu.memory_space<smem>>
    %296 = vector.broadcast %293 : f32 to vector<8x16xf32>
    %297 = arith.mulf %277, %296 : vector<8x16xf32>
    %298 = arith.addf %246, %297 : vector<8x16xf32>
    %299 = vector.broadcast %295 : f32 to vector<8x16xf32>
    %300 = arith.mulf %277, %299 : vector<8x16xf32>
    %301 = arith.addf %249, %300 : vector<8x16xf32>
    %c72_i32_65 = arith.constant 72 : i32
    %302 = arith.addi %2, %c72_i32_65 : i32
    %c5_i32_66 = arith.constant 5 : i32
    %303 = arith.addi %302, %c5_i32_66 : i32
    %304 = arith.index_cast %303 : i32 to index
    %305 = memref.load %arg3[%304] : memref<144xf32, #tpu.memory_space<smem>>
    %306 = arith.index_cast %303 : i32 to index
    %307 = memref.load %arg4[%306] : memref<144xf32, #tpu.memory_space<smem>>
    %308 = vector.broadcast %305 : f32 to vector<8x16xf32>
    %309 = arith.mulf %277, %308 : vector<8x16xf32>
    %310 = arith.addf %258, %309 : vector<8x16xf32>
    %311 = vector.broadcast %307 : f32 to vector<8x16xf32>
    %312 = arith.mulf %277, %311 : vector<8x16xf32>
    %313 = arith.addf %261, %312 : vector<8x16xf32>
    %c108_i32_67 = arith.constant 108 : i32
    %314 = arith.addi %2, %c108_i32_67 : i32
    %c5_i32_68 = arith.constant 5 : i32
    %315 = arith.addi %314, %c5_i32_68 : i32
    %316 = arith.index_cast %315 : i32 to index
    %317 = memref.load %arg3[%316] : memref<144xf32, #tpu.memory_space<smem>>
    %318 = arith.index_cast %315 : i32 to index
    %319 = memref.load %arg4[%318] : memref<144xf32, #tpu.memory_space<smem>>
    %320 = vector.broadcast %317 : f32 to vector<8x16xf32>
    %321 = arith.mulf %277, %320 : vector<8x16xf32>
    %322 = arith.addf %270, %321 : vector<8x16xf32>
    %323 = vector.broadcast %319 : f32 to vector<8x16xf32>
    %324 = arith.mulf %277, %323 : vector<8x16xf32>
    %325 = arith.addf %273, %324 : vector<8x16xf32>
    %c2_i32_69 = arith.constant 2 : i32
    %326 = arith.addi %1, %c2_i32_69 : i32
    %c0_70 = arith.constant 0 : index
    %c0_71 = arith.constant 0 : index
    %327 = arith.index_cast %326 : i32 to index
    %c0_72 = arith.constant 0 : index
    %328 = vector.load %arg6[%c0_70, %c0_71, %327, %c0_72] : memref<1x4x18x18xf32, #tpu.memory_space<vmem>>, vector<1x1x8x16xf32>
    %329 = vector.shape_cast %328 : vector<1x1x8x16xf32> to vector<8x16xf32>
    %c0_i32_73 = arith.constant 0 : i32
    %330 = arith.addi %2, %c0_i32_73 : i32
    %c6_i32 = arith.constant 6 : i32
    %331 = arith.addi %330, %c6_i32 : i32
    %332 = arith.index_cast %331 : i32 to index
    %333 = memref.load %arg3[%332] : memref<144xf32, #tpu.memory_space<smem>>
    %334 = arith.index_cast %331 : i32 to index
    %335 = memref.load %arg4[%334] : memref<144xf32, #tpu.memory_space<smem>>
    %336 = vector.broadcast %333 : f32 to vector<8x16xf32>
    %337 = arith.mulf %329, %336 : vector<8x16xf32>
    %338 = arith.addf %286, %337 : vector<8x16xf32>
    %339 = vector.broadcast %335 : f32 to vector<8x16xf32>
    %340 = arith.mulf %329, %339 : vector<8x16xf32>
    %341 = arith.addf %289, %340 : vector<8x16xf32>
    %c36_i32_74 = arith.constant 36 : i32
    %342 = arith.addi %2, %c36_i32_74 : i32
    %c6_i32_75 = arith.constant 6 : i32
    %343 = arith.addi %342, %c6_i32_75 : i32
    %344 = arith.index_cast %343 : i32 to index
    %345 = memref.load %arg3[%344] : memref<144xf32, #tpu.memory_space<smem>>
    %346 = arith.index_cast %343 : i32 to index
    %347 = memref.load %arg4[%346] : memref<144xf32, #tpu.memory_space<smem>>
    %348 = vector.broadcast %345 : f32 to vector<8x16xf32>
    %349 = arith.mulf %329, %348 : vector<8x16xf32>
    %350 = arith.addf %298, %349 : vector<8x16xf32>
    %351 = vector.broadcast %347 : f32 to vector<8x16xf32>
    %352 = arith.mulf %329, %351 : vector<8x16xf32>
    %353 = arith.addf %301, %352 : vector<8x16xf32>
    %c72_i32_76 = arith.constant 72 : i32
    %354 = arith.addi %2, %c72_i32_76 : i32
    %c6_i32_77 = arith.constant 6 : i32
    %355 = arith.addi %354, %c6_i32_77 : i32
    %356 = arith.index_cast %355 : i32 to index
    %357 = memref.load %arg3[%356] : memref<144xf32, #tpu.memory_space<smem>>
    %358 = arith.index_cast %355 : i32 to index
    %359 = memref.load %arg4[%358] : memref<144xf32, #tpu.memory_space<smem>>
    %360 = vector.broadcast %357 : f32 to vector<8x16xf32>
    %361 = arith.mulf %329, %360 : vector<8x16xf32>
    %362 = arith.addf %310, %361 : vector<8x16xf32>
    %363 = vector.broadcast %359 : f32 to vector<8x16xf32>
    %364 = arith.mulf %329, %363 : vector<8x16xf32>
    %365 = arith.addf %313, %364 : vector<8x16xf32>
    %c108_i32_78 = arith.constant 108 : i32
    %366 = arith.addi %2, %c108_i32_78 : i32
    %c6_i32_79 = arith.constant 6 : i32
    %367 = arith.addi %366, %c6_i32_79 : i32
    %368 = arith.index_cast %367 : i32 to index
    %369 = memref.load %arg3[%368] : memref<144xf32, #tpu.memory_space<smem>>
    %370 = arith.index_cast %367 : i32 to index
    %371 = memref.load %arg4[%370] : memref<144xf32, #tpu.memory_space<smem>>
    %372 = vector.broadcast %369 : f32 to vector<8x16xf32>
    %373 = arith.mulf %329, %372 : vector<8x16xf32>
    %374 = arith.addf %322, %373 : vector<8x16xf32>
    %375 = vector.broadcast %371 : f32 to vector<8x16xf32>
    %376 = arith.mulf %329, %375 : vector<8x16xf32>
    %377 = arith.addf %325, %376 : vector<8x16xf32>
    %c2_i32_80 = arith.constant 2 : i32
    %378 = arith.addi %1, %c2_i32_80 : i32
    %c0_81 = arith.constant 0 : index
    %c0_82 = arith.constant 0 : index
    %379 = arith.index_cast %378 : i32 to index
    %c1_83 = arith.constant 1 : index
    %380 = vector.load %arg6[%c0_81, %c0_82, %379, %c1_83] : memref<1x4x18x18xf32, #tpu.memory_space<vmem>>, vector<1x1x8x16xf32>
    %381 = vector.shape_cast %380 : vector<1x1x8x16xf32> to vector<8x16xf32>
    %c0_i32_84 = arith.constant 0 : i32
    %382 = arith.addi %2, %c0_i32_84 : i32
    %c7_i32 = arith.constant 7 : i32
    %383 = arith.addi %382, %c7_i32 : i32
    %384 = arith.index_cast %383 : i32 to index
    %385 = memref.load %arg3[%384] : memref<144xf32, #tpu.memory_space<smem>>
    %386 = arith.index_cast %383 : i32 to index
    %387 = memref.load %arg4[%386] : memref<144xf32, #tpu.memory_space<smem>>
    %388 = vector.broadcast %385 : f32 to vector<8x16xf32>
    %389 = arith.mulf %381, %388 : vector<8x16xf32>
    %390 = arith.addf %338, %389 : vector<8x16xf32>
    %391 = vector.broadcast %387 : f32 to vector<8x16xf32>
    %392 = arith.mulf %381, %391 : vector<8x16xf32>
    %393 = arith.addf %341, %392 : vector<8x16xf32>
    %c36_i32_85 = arith.constant 36 : i32
    %394 = arith.addi %2, %c36_i32_85 : i32
    %c7_i32_86 = arith.constant 7 : i32
    %395 = arith.addi %394, %c7_i32_86 : i32
    %396 = arith.index_cast %395 : i32 to index
    %397 = memref.load %arg3[%396] : memref<144xf32, #tpu.memory_space<smem>>
    %398 = arith.index_cast %395 : i32 to index
    %399 = memref.load %arg4[%398] : memref<144xf32, #tpu.memory_space<smem>>
    %400 = vector.broadcast %397 : f32 to vector<8x16xf32>
    %401 = arith.mulf %381, %400 : vector<8x16xf32>
    %402 = arith.addf %350, %401 : vector<8x16xf32>
    %403 = vector.broadcast %399 : f32 to vector<8x16xf32>
    %404 = arith.mulf %381, %403 : vector<8x16xf32>
    %405 = arith.addf %353, %404 : vector<8x16xf32>
    %c72_i32_87 = arith.constant 72 : i32
    %406 = arith.addi %2, %c72_i32_87 : i32
    %c7_i32_88 = arith.constant 7 : i32
    %407 = arith.addi %406, %c7_i32_88 : i32
    %408 = arith.index_cast %407 : i32 to index
    %409 = memref.load %arg3[%408] : memref<144xf32, #tpu.memory_space<smem>>
    %410 = arith.index_cast %407 : i32 to index
    %411 = memref.load %arg4[%410] : memref<144xf32, #tpu.memory_space<smem>>
    %412 = vector.broadcast %409 : f32 to vector<8x16xf32>
    %413 = arith.mulf %381, %412 : vector<8x16xf32>
    %414 = arith.addf %362, %413 : vector<8x16xf32>
    %415 = vector.broadcast %411 : f32 to vector<8x16xf32>
    %416 = arith.mulf %381, %415 : vector<8x16xf32>
    %417 = arith.addf %365, %416 : vector<8x16xf32>
    %c108_i32_89 = arith.constant 108 : i32
    %418 = arith.addi %2, %c108_i32_89 : i32
    %c7_i32_90 = arith.constant 7 : i32
    %419 = arith.addi %418, %c7_i32_90 : i32
    %420 = arith.index_cast %419 : i32 to index
    %421 = memref.load %arg3[%420] : memref<144xf32, #tpu.memory_space<smem>>
    %422 = arith.index_cast %419 : i32 to index
    %423 = memref.load %arg4[%422] : memref<144xf32, #tpu.memory_space<smem>>
    %424 = vector.broadcast %421 : f32 to vector<8x16xf32>
    %425 = arith.mulf %381, %424 : vector<8x16xf32>
    %426 = arith.addf %374, %425 : vector<8x16xf32>
    %427 = vector.broadcast %423 : f32 to vector<8x16xf32>
    %428 = arith.mulf %381, %427 : vector<8x16xf32>
    %429 = arith.addf %377, %428 : vector<8x16xf32>
    %c2_i32_91 = arith.constant 2 : i32
    %430 = arith.addi %1, %c2_i32_91 : i32
    %c0_92 = arith.constant 0 : index
    %c0_93 = arith.constant 0 : index
    %431 = arith.index_cast %430 : i32 to index
    %c2_94 = arith.constant 2 : index
    %432 = vector.load %arg6[%c0_92, %c0_93, %431, %c2_94] : memref<1x4x18x18xf32, #tpu.memory_space<vmem>>, vector<1x1x8x16xf32>
    %433 = vector.shape_cast %432 : vector<1x1x8x16xf32> to vector<8x16xf32>
    %c0_i32_95 = arith.constant 0 : i32
    %434 = arith.addi %2, %c0_i32_95 : i32
    %c8_i32_96 = arith.constant 8 : i32
    %435 = arith.addi %434, %c8_i32_96 : i32
    %436 = arith.index_cast %435 : i32 to index
    %437 = memref.load %arg3[%436] : memref<144xf32, #tpu.memory_space<smem>>
    %438 = arith.index_cast %435 : i32 to index
    %439 = memref.load %arg4[%438] : memref<144xf32, #tpu.memory_space<smem>>
    %440 = vector.broadcast %437 : f32 to vector<8x16xf32>
    %441 = arith.mulf %433, %440 : vector<8x16xf32>
    %442 = arith.addf %390, %441 : vector<8x16xf32>
    %443 = vector.broadcast %439 : f32 to vector<8x16xf32>
    %444 = arith.mulf %433, %443 : vector<8x16xf32>
    %445 = arith.addf %393, %444 : vector<8x16xf32>
    %c36_i32_97 = arith.constant 36 : i32
    %446 = arith.addi %2, %c36_i32_97 : i32
    %c8_i32_98 = arith.constant 8 : i32
    %447 = arith.addi %446, %c8_i32_98 : i32
    %448 = arith.index_cast %447 : i32 to index
    %449 = memref.load %arg3[%448] : memref<144xf32, #tpu.memory_space<smem>>
    %450 = arith.index_cast %447 : i32 to index
    %451 = memref.load %arg4[%450] : memref<144xf32, #tpu.memory_space<smem>>
    %452 = vector.broadcast %449 : f32 to vector<8x16xf32>
    %453 = arith.mulf %433, %452 : vector<8x16xf32>
    %454 = arith.addf %402, %453 : vector<8x16xf32>
    %455 = vector.broadcast %451 : f32 to vector<8x16xf32>
    %456 = arith.mulf %433, %455 : vector<8x16xf32>
    %457 = arith.addf %405, %456 : vector<8x16xf32>
    %c72_i32_99 = arith.constant 72 : i32
    %458 = arith.addi %2, %c72_i32_99 : i32
    %c8_i32_100 = arith.constant 8 : i32
    %459 = arith.addi %458, %c8_i32_100 : i32
    %460 = arith.index_cast %459 : i32 to index
    %461 = memref.load %arg3[%460] : memref<144xf32, #tpu.memory_space<smem>>
    %462 = arith.index_cast %459 : i32 to index
    %463 = memref.load %arg4[%462] : memref<144xf32, #tpu.memory_space<smem>>
    %464 = vector.broadcast %461 : f32 to vector<8x16xf32>
    %465 = arith.mulf %433, %464 : vector<8x16xf32>
    %466 = arith.addf %414, %465 : vector<8x16xf32>
    %467 = vector.broadcast %463 : f32 to vector<8x16xf32>
    %468 = arith.mulf %433, %467 : vector<8x16xf32>
    %469 = arith.addf %417, %468 : vector<8x16xf32>
    %c108_i32_101 = arith.constant 108 : i32
    %470 = arith.addi %2, %c108_i32_101 : i32
    %c8_i32_102 = arith.constant 8 : i32
    %471 = arith.addi %470, %c8_i32_102 : i32
    %472 = arith.index_cast %471 : i32 to index
    %473 = memref.load %arg3[%472] : memref<144xf32, #tpu.memory_space<smem>>
    %474 = arith.index_cast %471 : i32 to index
    %475 = memref.load %arg4[%474] : memref<144xf32, #tpu.memory_space<smem>>
    %476 = vector.broadcast %473 : f32 to vector<8x16xf32>
    %477 = arith.mulf %433, %476 : vector<8x16xf32>
    %478 = arith.addf %426, %477 : vector<8x16xf32>
    %479 = vector.broadcast %475 : f32 to vector<8x16xf32>
    %480 = arith.mulf %433, %479 : vector<8x16xf32>
    %481 = arith.addf %429, %480 : vector<8x16xf32>
    %c0_i32_103 = arith.constant 0 : i32
    %482 = arith.addi %1, %c0_i32_103 : i32
    %c0_104 = arith.constant 0 : index
    %c1_105 = arith.constant 1 : index
    %483 = arith.index_cast %482 : i32 to index
    %c0_106 = arith.constant 0 : index
    %484 = vector.load %arg6[%c0_104, %c1_105, %483, %c0_106] : memref<1x4x18x18xf32, #tpu.memory_space<vmem>>, vector<1x1x8x16xf32>
    %485 = vector.shape_cast %484 : vector<1x1x8x16xf32> to vector<8x16xf32>
    %c0_i32_107 = arith.constant 0 : i32
    %486 = arith.addi %2, %c0_i32_107 : i32
    %c9_i32 = arith.constant 9 : i32
    %487 = arith.addi %486, %c9_i32 : i32
    %488 = arith.index_cast %487 : i32 to index
    %489 = memref.load %arg3[%488] : memref<144xf32, #tpu.memory_space<smem>>
    %490 = arith.index_cast %487 : i32 to index
    %491 = memref.load %arg4[%490] : memref<144xf32, #tpu.memory_space<smem>>
    %492 = vector.broadcast %489 : f32 to vector<8x16xf32>
    %493 = arith.mulf %485, %492 : vector<8x16xf32>
    %494 = arith.addf %442, %493 : vector<8x16xf32>
    %495 = vector.broadcast %491 : f32 to vector<8x16xf32>
    %496 = arith.mulf %485, %495 : vector<8x16xf32>
    %497 = arith.addf %445, %496 : vector<8x16xf32>
    %c36_i32_108 = arith.constant 36 : i32
    %498 = arith.addi %2, %c36_i32_108 : i32
    %c9_i32_109 = arith.constant 9 : i32
    %499 = arith.addi %498, %c9_i32_109 : i32
    %500 = arith.index_cast %499 : i32 to index
    %501 = memref.load %arg3[%500] : memref<144xf32, #tpu.memory_space<smem>>
    %502 = arith.index_cast %499 : i32 to index
    %503 = memref.load %arg4[%502] : memref<144xf32, #tpu.memory_space<smem>>
    %504 = vector.broadcast %501 : f32 to vector<8x16xf32>
    %505 = arith.mulf %485, %504 : vector<8x16xf32>
    %506 = arith.addf %454, %505 : vector<8x16xf32>
    %507 = vector.broadcast %503 : f32 to vector<8x16xf32>
    %508 = arith.mulf %485, %507 : vector<8x16xf32>
    %509 = arith.addf %457, %508 : vector<8x16xf32>
    %c72_i32_110 = arith.constant 72 : i32
    %510 = arith.addi %2, %c72_i32_110 : i32
    %c9_i32_111 = arith.constant 9 : i32
    %511 = arith.addi %510, %c9_i32_111 : i32
    %512 = arith.index_cast %511 : i32 to index
    %513 = memref.load %arg3[%512] : memref<144xf32, #tpu.memory_space<smem>>
    %514 = arith.index_cast %511 : i32 to index
    %515 = memref.load %arg4[%514] : memref<144xf32, #tpu.memory_space<smem>>
    %516 = vector.broadcast %513 : f32 to vector<8x16xf32>
    %517 = arith.mulf %485, %516 : vector<8x16xf32>
    %518 = arith.addf %466, %517 : vector<8x16xf32>
    %519 = vector.broadcast %515 : f32 to vector<8x16xf32>
    %520 = arith.mulf %485, %519 : vector<8x16xf32>
    %521 = arith.addf %469, %520 : vector<8x16xf32>
    %c108_i32_112 = arith.constant 108 : i32
    %522 = arith.addi %2, %c108_i32_112 : i32
    %c9_i32_113 = arith.constant 9 : i32
    %523 = arith.addi %522, %c9_i32_113 : i32
    %524 = arith.index_cast %523 : i32 to index
    %525 = memref.load %arg3[%524] : memref<144xf32, #tpu.memory_space<smem>>
    %526 = arith.index_cast %523 : i32 to index
    %527 = memref.load %arg4[%526] : memref<144xf32, #tpu.memory_space<smem>>
    %528 = vector.broadcast %525 : f32 to vector<8x16xf32>
    %529 = arith.mulf %485, %528 : vector<8x16xf32>
    %530 = arith.addf %478, %529 : vector<8x16xf32>
    %531 = vector.broadcast %527 : f32 to vector<8x16xf32>
    %532 = arith.mulf %485, %531 : vector<8x16xf32>
    %533 = arith.addf %481, %532 : vector<8x16xf32>
    %c0_i32_114 = arith.constant 0 : i32
    %534 = arith.addi %1, %c0_i32_114 : i32
    %c0_115 = arith.constant 0 : index
    %c1_116 = arith.constant 1 : index
    %535 = arith.index_cast %534 : i32 to index
    %c1_117 = arith.constant 1 : index
    %536 = vector.load %arg6[%c0_115, %c1_116, %535, %c1_117] : memref<1x4x18x18xf32, #tpu.memory_space<vmem>>, vector<1x1x8x16xf32>
    %537 = vector.shape_cast %536 : vector<1x1x8x16xf32> to vector<8x16xf32>
    %c0_i32_118 = arith.constant 0 : i32
    %538 = arith.addi %2, %c0_i32_118 : i32
    %c10_i32 = arith.constant 10 : i32
    %539 = arith.addi %538, %c10_i32 : i32
    %540 = arith.index_cast %539 : i32 to index
    %541 = memref.load %arg3[%540] : memref<144xf32, #tpu.memory_space<smem>>
    %542 = arith.index_cast %539 : i32 to index
    %543 = memref.load %arg4[%542] : memref<144xf32, #tpu.memory_space<smem>>
    %544 = vector.broadcast %541 : f32 to vector<8x16xf32>
    %545 = arith.mulf %537, %544 : vector<8x16xf32>
    %546 = arith.addf %494, %545 : vector<8x16xf32>
    %547 = vector.broadcast %543 : f32 to vector<8x16xf32>
    %548 = arith.mulf %537, %547 : vector<8x16xf32>
    %549 = arith.addf %497, %548 : vector<8x16xf32>
    %c36_i32_119 = arith.constant 36 : i32
    %550 = arith.addi %2, %c36_i32_119 : i32
    %c10_i32_120 = arith.constant 10 : i32
    %551 = arith.addi %550, %c10_i32_120 : i32
    %552 = arith.index_cast %551 : i32 to index
    %553 = memref.load %arg3[%552] : memref<144xf32, #tpu.memory_space<smem>>
    %554 = arith.index_cast %551 : i32 to index
    %555 = memref.load %arg4[%554] : memref<144xf32, #tpu.memory_space<smem>>
    %556 = vector.broadcast %553 : f32 to vector<8x16xf32>
    %557 = arith.mulf %537, %556 : vector<8x16xf32>
    %558 = arith.addf %506, %557 : vector<8x16xf32>
    %559 = vector.broadcast %555 : f32 to vector<8x16xf32>
    %560 = arith.mulf %537, %559 : vector<8x16xf32>
    %561 = arith.addf %509, %560 : vector<8x16xf32>
    %c72_i32_121 = arith.constant 72 : i32
    %562 = arith.addi %2, %c72_i32_121 : i32
    %c10_i32_122 = arith.constant 10 : i32
    %563 = arith.addi %562, %c10_i32_122 : i32
    %564 = arith.index_cast %563 : i32 to index
    %565 = memref.load %arg3[%564] : memref<144xf32, #tpu.memory_space<smem>>
    %566 = arith.index_cast %563 : i32 to index
    %567 = memref.load %arg4[%566] : memref<144xf32, #tpu.memory_space<smem>>
    %568 = vector.broadcast %565 : f32 to vector<8x16xf32>
    %569 = arith.mulf %537, %568 : vector<8x16xf32>
    %570 = arith.addf %518, %569 : vector<8x16xf32>
    %571 = vector.broadcast %567 : f32 to vector<8x16xf32>
    %572 = arith.mulf %537, %571 : vector<8x16xf32>
    %573 = arith.addf %521, %572 : vector<8x16xf32>
    %c108_i32_123 = arith.constant 108 : i32
    %574 = arith.addi %2, %c108_i32_123 : i32
    %c10_i32_124 = arith.constant 10 : i32
    %575 = arith.addi %574, %c10_i32_124 : i32
    %576 = arith.index_cast %575 : i32 to index
    %577 = memref.load %arg3[%576] : memref<144xf32, #tpu.memory_space<smem>>
    %578 = arith.index_cast %575 : i32 to index
    %579 = memref.load %arg4[%578] : memref<144xf32, #tpu.memory_space<smem>>
    %580 = vector.broadcast %577 : f32 to vector<8x16xf32>
    %581 = arith.mulf %537, %580 : vector<8x16xf32>
    %582 = arith.addf %530, %581 : vector<8x16xf32>
    %583 = vector.broadcast %579 : f32 to vector<8x16xf32>
    %584 = arith.mulf %537, %583 : vector<8x16xf32>
    %585 = arith.addf %533, %584 : vector<8x16xf32>
    %c0_i32_125 = arith.constant 0 : i32
    %586 = arith.addi %1, %c0_i32_125 : i32
    %c0_126 = arith.constant 0 : index
    %c1_127 = arith.constant 1 : index
    %587 = arith.index_cast %586 : i32 to index
    %c2_128 = arith.constant 2 : index
    %588 = vector.load %arg6[%c0_126, %c1_127, %587, %c2_128] : memref<1x4x18x18xf32, #tpu.memory_space<vmem>>, vector<1x1x8x16xf32>
    %589 = vector.shape_cast %588 : vector<1x1x8x16xf32> to vector<8x16xf32>
    %c0_i32_129 = arith.constant 0 : i32
    %590 = arith.addi %2, %c0_i32_129 : i32
    %c11_i32 = arith.constant 11 : i32
    %591 = arith.addi %590, %c11_i32 : i32
    %592 = arith.index_cast %591 : i32 to index
    %593 = memref.load %arg3[%592] : memref<144xf32, #tpu.memory_space<smem>>
    %594 = arith.index_cast %591 : i32 to index
    %595 = memref.load %arg4[%594] : memref<144xf32, #tpu.memory_space<smem>>
    %596 = vector.broadcast %593 : f32 to vector<8x16xf32>
    %597 = arith.mulf %589, %596 : vector<8x16xf32>
    %598 = arith.addf %546, %597 : vector<8x16xf32>
    %599 = vector.broadcast %595 : f32 to vector<8x16xf32>
    %600 = arith.mulf %589, %599 : vector<8x16xf32>
    %601 = arith.addf %549, %600 : vector<8x16xf32>
    %c36_i32_130 = arith.constant 36 : i32
    %602 = arith.addi %2, %c36_i32_130 : i32
    %c11_i32_131 = arith.constant 11 : i32
    %603 = arith.addi %602, %c11_i32_131 : i32
    %604 = arith.index_cast %603 : i32 to index
    %605 = memref.load %arg3[%604] : memref<144xf32, #tpu.memory_space<smem>>
    %606 = arith.index_cast %603 : i32 to index
    %607 = memref.load %arg4[%606] : memref<144xf32, #tpu.memory_space<smem>>
    %608 = vector.broadcast %605 : f32 to vector<8x16xf32>
    %609 = arith.mulf %589, %608 : vector<8x16xf32>
    %610 = arith.addf %558, %609 : vector<8x16xf32>
    %611 = vector.broadcast %607 : f32 to vector<8x16xf32>
    %612 = arith.mulf %589, %611 : vector<8x16xf32>
    %613 = arith.addf %561, %612 : vector<8x16xf32>
    %c72_i32_132 = arith.constant 72 : i32
    %614 = arith.addi %2, %c72_i32_132 : i32
    %c11_i32_133 = arith.constant 11 : i32
    %615 = arith.addi %614, %c11_i32_133 : i32
    %616 = arith.index_cast %615 : i32 to index
    %617 = memref.load %arg3[%616] : memref<144xf32, #tpu.memory_space<smem>>
    %618 = arith.index_cast %615 : i32 to index
    %619 = memref.load %arg4[%618] : memref<144xf32, #tpu.memory_space<smem>>
    %620 = vector.broadcast %617 : f32 to vector<8x16xf32>
    %621 = arith.mulf %589, %620 : vector<8x16xf32>
    %622 = arith.addf %570, %621 : vector<8x16xf32>
    %623 = vector.broadcast %619 : f32 to vector<8x16xf32>
    %624 = arith.mulf %589, %623 : vector<8x16xf32>
    %625 = arith.addf %573, %624 : vector<8x16xf32>
    %c108_i32_134 = arith.constant 108 : i32
    %626 = arith.addi %2, %c108_i32_134 : i32
    %c11_i32_135 = arith.constant 11 : i32
    %627 = arith.addi %626, %c11_i32_135 : i32
    %628 = arith.index_cast %627 : i32 to index
    %629 = memref.load %arg3[%628] : memref<144xf32, #tpu.memory_space<smem>>
    %630 = arith.index_cast %627 : i32 to index
    %631 = memref.load %arg4[%630] : memref<144xf32, #tpu.memory_space<smem>>
    %632 = vector.broadcast %629 : f32 to vector<8x16xf32>
    %633 = arith.mulf %589, %632 : vector<8x16xf32>
    %634 = arith.addf %582, %633 : vector<8x16xf32>
    %635 = vector.broadcast %631 : f32 to vector<8x16xf32>
    %636 = arith.mulf %589, %635 : vector<8x16xf32>
    %637 = arith.addf %585, %636 : vector<8x16xf32>
    %c1_i32_136 = arith.constant 1 : i32
    %638 = arith.addi %1, %c1_i32_136 : i32
    %c0_137 = arith.constant 0 : index
    %c1_138 = arith.constant 1 : index
    %639 = arith.index_cast %638 : i32 to index
    %c0_139 = arith.constant 0 : index
    %640 = vector.load %arg6[%c0_137, %c1_138, %639, %c0_139] : memref<1x4x18x18xf32, #tpu.memory_space<vmem>>, vector<1x1x8x16xf32>
    %641 = vector.shape_cast %640 : vector<1x1x8x16xf32> to vector<8x16xf32>
    %c0_i32_140 = arith.constant 0 : i32
    %642 = arith.addi %2, %c0_i32_140 : i32
    %c12_i32 = arith.constant 12 : i32
    %643 = arith.addi %642, %c12_i32 : i32
    %644 = arith.index_cast %643 : i32 to index
    %645 = memref.load %arg3[%644] : memref<144xf32, #tpu.memory_space<smem>>
    %646 = arith.index_cast %643 : i32 to index
    %647 = memref.load %arg4[%646] : memref<144xf32, #tpu.memory_space<smem>>
    %648 = vector.broadcast %645 : f32 to vector<8x16xf32>
    %649 = arith.mulf %641, %648 : vector<8x16xf32>
    %650 = arith.addf %598, %649 : vector<8x16xf32>
    %651 = vector.broadcast %647 : f32 to vector<8x16xf32>
    %652 = arith.mulf %641, %651 : vector<8x16xf32>
    %653 = arith.addf %601, %652 : vector<8x16xf32>
    %c36_i32_141 = arith.constant 36 : i32
    %654 = arith.addi %2, %c36_i32_141 : i32
    %c12_i32_142 = arith.constant 12 : i32
    %655 = arith.addi %654, %c12_i32_142 : i32
    %656 = arith.index_cast %655 : i32 to index
    %657 = memref.load %arg3[%656] : memref<144xf32, #tpu.memory_space<smem>>
    %658 = arith.index_cast %655 : i32 to index
    %659 = memref.load %arg4[%658] : memref<144xf32, #tpu.memory_space<smem>>
    %660 = vector.broadcast %657 : f32 to vector<8x16xf32>
    %661 = arith.mulf %641, %660 : vector<8x16xf32>
    %662 = arith.addf %610, %661 : vector<8x16xf32>
    %663 = vector.broadcast %659 : f32 to vector<8x16xf32>
    %664 = arith.mulf %641, %663 : vector<8x16xf32>
    %665 = arith.addf %613, %664 : vector<8x16xf32>
    %c72_i32_143 = arith.constant 72 : i32
    %666 = arith.addi %2, %c72_i32_143 : i32
    %c12_i32_144 = arith.constant 12 : i32
    %667 = arith.addi %666, %c12_i32_144 : i32
    %668 = arith.index_cast %667 : i32 to index
    %669 = memref.load %arg3[%668] : memref<144xf32, #tpu.memory_space<smem>>
    %670 = arith.index_cast %667 : i32 to index
    %671 = memref.load %arg4[%670] : memref<144xf32, #tpu.memory_space<smem>>
    %672 = vector.broadcast %669 : f32 to vector<8x16xf32>
    %673 = arith.mulf %641, %672 : vector<8x16xf32>
    %674 = arith.addf %622, %673 : vector<8x16xf32>
    %675 = vector.broadcast %671 : f32 to vector<8x16xf32>
    %676 = arith.mulf %641, %675 : vector<8x16xf32>
    %677 = arith.addf %625, %676 : vector<8x16xf32>
    %c108_i32_145 = arith.constant 108 : i32
    %678 = arith.addi %2, %c108_i32_145 : i32
    %c12_i32_146 = arith.constant 12 : i32
    %679 = arith.addi %678, %c12_i32_146 : i32
    %680 = arith.index_cast %679 : i32 to index
    %681 = memref.load %arg3[%680] : memref<144xf32, #tpu.memory_space<smem>>
    %682 = arith.index_cast %679 : i32 to index
    %683 = memref.load %arg4[%682] : memref<144xf32, #tpu.memory_space<smem>>
    %684 = vector.broadcast %681 : f32 to vector<8x16xf32>
    %685 = arith.mulf %641, %684 : vector<8x16xf32>
    %686 = arith.addf %634, %685 : vector<8x16xf32>
    %687 = vector.broadcast %683 : f32 to vector<8x16xf32>
    %688 = arith.mulf %641, %687 : vector<8x16xf32>
    %689 = arith.addf %637, %688 : vector<8x16xf32>
    %c1_i32_147 = arith.constant 1 : i32
    %690 = arith.addi %1, %c1_i32_147 : i32
    %c0_148 = arith.constant 0 : index
    %c1_149 = arith.constant 1 : index
    %691 = arith.index_cast %690 : i32 to index
    %c1_150 = arith.constant 1 : index
    %692 = vector.load %arg6[%c0_148, %c1_149, %691, %c1_150] : memref<1x4x18x18xf32, #tpu.memory_space<vmem>>, vector<1x1x8x16xf32>
    %693 = vector.shape_cast %692 : vector<1x1x8x16xf32> to vector<8x16xf32>
    %c0_i32_151 = arith.constant 0 : i32
    %694 = arith.addi %2, %c0_i32_151 : i32
    %c13_i32 = arith.constant 13 : i32
    %695 = arith.addi %694, %c13_i32 : i32
    %696 = arith.index_cast %695 : i32 to index
    %697 = memref.load %arg3[%696] : memref<144xf32, #tpu.memory_space<smem>>
    %698 = arith.index_cast %695 : i32 to index
    %699 = memref.load %arg4[%698] : memref<144xf32, #tpu.memory_space<smem>>
    %700 = vector.broadcast %697 : f32 to vector<8x16xf32>
    %701 = arith.mulf %693, %700 : vector<8x16xf32>
    %702 = arith.addf %650, %701 : vector<8x16xf32>
    %703 = vector.broadcast %699 : f32 to vector<8x16xf32>
    %704 = arith.mulf %693, %703 : vector<8x16xf32>
    %705 = arith.addf %653, %704 : vector<8x16xf32>
    %c36_i32_152 = arith.constant 36 : i32
    %706 = arith.addi %2, %c36_i32_152 : i32
    %c13_i32_153 = arith.constant 13 : i32
    %707 = arith.addi %706, %c13_i32_153 : i32
    %708 = arith.index_cast %707 : i32 to index
    %709 = memref.load %arg3[%708] : memref<144xf32, #tpu.memory_space<smem>>
    %710 = arith.index_cast %707 : i32 to index
    %711 = memref.load %arg4[%710] : memref<144xf32, #tpu.memory_space<smem>>
    %712 = vector.broadcast %709 : f32 to vector<8x16xf32>
    %713 = arith.mulf %693, %712 : vector<8x16xf32>
    %714 = arith.addf %662, %713 : vector<8x16xf32>
    %715 = vector.broadcast %711 : f32 to vector<8x16xf32>
    %716 = arith.mulf %693, %715 : vector<8x16xf32>
    %717 = arith.addf %665, %716 : vector<8x16xf32>
    %c72_i32_154 = arith.constant 72 : i32
    %718 = arith.addi %2, %c72_i32_154 : i32
    %c13_i32_155 = arith.constant 13 : i32
    %719 = arith.addi %718, %c13_i32_155 : i32
    %720 = arith.index_cast %719 : i32 to index
    %721 = memref.load %arg3[%720] : memref<144xf32, #tpu.memory_space<smem>>
    %722 = arith.index_cast %719 : i32 to index
    %723 = memref.load %arg4[%722] : memref<144xf32, #tpu.memory_space<smem>>
    %724 = vector.broadcast %721 : f32 to vector<8x16xf32>
    %725 = arith.mulf %693, %724 : vector<8x16xf32>
    %726 = arith.addf %674, %725 : vector<8x16xf32>
    %727 = vector.broadcast %723 : f32 to vector<8x16xf32>
    %728 = arith.mulf %693, %727 : vector<8x16xf32>
    %729 = arith.addf %677, %728 : vector<8x16xf32>
    %c108_i32_156 = arith.constant 108 : i32
    %730 = arith.addi %2, %c108_i32_156 : i32
    %c13_i32_157 = arith.constant 13 : i32
    %731 = arith.addi %730, %c13_i32_157 : i32
    %732 = arith.index_cast %731 : i32 to index
    %733 = memref.load %arg3[%732] : memref<144xf32, #tpu.memory_space<smem>>
    %734 = arith.index_cast %731 : i32 to index
    %735 = memref.load %arg4[%734] : memref<144xf32, #tpu.memory_space<smem>>
    %736 = vector.broadcast %733 : f32 to vector<8x16xf32>
    %737 = arith.mulf %693, %736 : vector<8x16xf32>
    %738 = arith.addf %686, %737 : vector<8x16xf32>
    %739 = vector.broadcast %735 : f32 to vector<8x16xf32>
    %740 = arith.mulf %693, %739 : vector<8x16xf32>
    %741 = arith.addf %689, %740 : vector<8x16xf32>
    %c1_i32_158 = arith.constant 1 : i32
    %742 = arith.addi %1, %c1_i32_158 : i32
    %c0_159 = arith.constant 0 : index
    %c1_160 = arith.constant 1 : index
    %743 = arith.index_cast %742 : i32 to index
    %c2_161 = arith.constant 2 : index
    %744 = vector.load %arg6[%c0_159, %c1_160, %743, %c2_161] : memref<1x4x18x18xf32, #tpu.memory_space<vmem>>, vector<1x1x8x16xf32>
    %745 = vector.shape_cast %744 : vector<1x1x8x16xf32> to vector<8x16xf32>
    %c0_i32_162 = arith.constant 0 : i32
    %746 = arith.addi %2, %c0_i32_162 : i32
    %c14_i32 = arith.constant 14 : i32
    %747 = arith.addi %746, %c14_i32 : i32
    %748 = arith.index_cast %747 : i32 to index
    %749 = memref.load %arg3[%748] : memref<144xf32, #tpu.memory_space<smem>>
    %750 = arith.index_cast %747 : i32 to index
    %751 = memref.load %arg4[%750] : memref<144xf32, #tpu.memory_space<smem>>
    %752 = vector.broadcast %749 : f32 to vector<8x16xf32>
    %753 = arith.mulf %745, %752 : vector<8x16xf32>
    %754 = arith.addf %702, %753 : vector<8x16xf32>
    %755 = vector.broadcast %751 : f32 to vector<8x16xf32>
    %756 = arith.mulf %745, %755 : vector<8x16xf32>
    %757 = arith.addf %705, %756 : vector<8x16xf32>
    %c36_i32_163 = arith.constant 36 : i32
    %758 = arith.addi %2, %c36_i32_163 : i32
    %c14_i32_164 = arith.constant 14 : i32
    %759 = arith.addi %758, %c14_i32_164 : i32
    %760 = arith.index_cast %759 : i32 to index
    %761 = memref.load %arg3[%760] : memref<144xf32, #tpu.memory_space<smem>>
    %762 = arith.index_cast %759 : i32 to index
    %763 = memref.load %arg4[%762] : memref<144xf32, #tpu.memory_space<smem>>
    %764 = vector.broadcast %761 : f32 to vector<8x16xf32>
    %765 = arith.mulf %745, %764 : vector<8x16xf32>
    %766 = arith.addf %714, %765 : vector<8x16xf32>
    %767 = vector.broadcast %763 : f32 to vector<8x16xf32>
    %768 = arith.mulf %745, %767 : vector<8x16xf32>
    %769 = arith.addf %717, %768 : vector<8x16xf32>
    %c72_i32_165 = arith.constant 72 : i32
    %770 = arith.addi %2, %c72_i32_165 : i32
    %c14_i32_166 = arith.constant 14 : i32
    %771 = arith.addi %770, %c14_i32_166 : i32
    %772 = arith.index_cast %771 : i32 to index
    %773 = memref.load %arg3[%772] : memref<144xf32, #tpu.memory_space<smem>>
    %774 = arith.index_cast %771 : i32 to index
    %775 = memref.load %arg4[%774] : memref<144xf32, #tpu.memory_space<smem>>
    %776 = vector.broadcast %773 : f32 to vector<8x16xf32>
    %777 = arith.mulf %745, %776 : vector<8x16xf32>
    %778 = arith.addf %726, %777 : vector<8x16xf32>
    %779 = vector.broadcast %775 : f32 to vector<8x16xf32>
    %780 = arith.mulf %745, %779 : vector<8x16xf32>
    %781 = arith.addf %729, %780 : vector<8x16xf32>
    %c108_i32_167 = arith.constant 108 : i32
    %782 = arith.addi %2, %c108_i32_167 : i32
    %c14_i32_168 = arith.constant 14 : i32
    %783 = arith.addi %782, %c14_i32_168 : i32
    %784 = arith.index_cast %783 : i32 to index
    %785 = memref.load %arg3[%784] : memref<144xf32, #tpu.memory_space<smem>>
    %786 = arith.index_cast %783 : i32 to index
    %787 = memref.load %arg4[%786] : memref<144xf32, #tpu.memory_space<smem>>
    %788 = vector.broadcast %785 : f32 to vector<8x16xf32>
    %789 = arith.mulf %745, %788 : vector<8x16xf32>
    %790 = arith.addf %738, %789 : vector<8x16xf32>
    %791 = vector.broadcast %787 : f32 to vector<8x16xf32>
    %792 = arith.mulf %745, %791 : vector<8x16xf32>
    %793 = arith.addf %741, %792 : vector<8x16xf32>
    %c2_i32_169 = arith.constant 2 : i32
    %794 = arith.addi %1, %c2_i32_169 : i32
    %c0_170 = arith.constant 0 : index
    %c1_171 = arith.constant 1 : index
    %795 = arith.index_cast %794 : i32 to index
    %c0_172 = arith.constant 0 : index
    %796 = vector.load %arg6[%c0_170, %c1_171, %795, %c0_172] : memref<1x4x18x18xf32, #tpu.memory_space<vmem>>, vector<1x1x8x16xf32>
    %797 = vector.shape_cast %796 : vector<1x1x8x16xf32> to vector<8x16xf32>
    %c0_i32_173 = arith.constant 0 : i32
    %798 = arith.addi %2, %c0_i32_173 : i32
    %c15_i32 = arith.constant 15 : i32
    %799 = arith.addi %798, %c15_i32 : i32
    %800 = arith.index_cast %799 : i32 to index
    %801 = memref.load %arg3[%800] : memref<144xf32, #tpu.memory_space<smem>>
    %802 = arith.index_cast %799 : i32 to index
    %803 = memref.load %arg4[%802] : memref<144xf32, #tpu.memory_space<smem>>
    %804 = vector.broadcast %801 : f32 to vector<8x16xf32>
    %805 = arith.mulf %797, %804 : vector<8x16xf32>
    %806 = arith.addf %754, %805 : vector<8x16xf32>
    %807 = vector.broadcast %803 : f32 to vector<8x16xf32>
    %808 = arith.mulf %797, %807 : vector<8x16xf32>
    %809 = arith.addf %757, %808 : vector<8x16xf32>
    %c36_i32_174 = arith.constant 36 : i32
    %810 = arith.addi %2, %c36_i32_174 : i32
    %c15_i32_175 = arith.constant 15 : i32
    %811 = arith.addi %810, %c15_i32_175 : i32
    %812 = arith.index_cast %811 : i32 to index
    %813 = memref.load %arg3[%812] : memref<144xf32, #tpu.memory_space<smem>>
    %814 = arith.index_cast %811 : i32 to index
    %815 = memref.load %arg4[%814] : memref<144xf32, #tpu.memory_space<smem>>
    %816 = vector.broadcast %813 : f32 to vector<8x16xf32>
    %817 = arith.mulf %797, %816 : vector<8x16xf32>
    %818 = arith.addf %766, %817 : vector<8x16xf32>
    %819 = vector.broadcast %815 : f32 to vector<8x16xf32>
    %820 = arith.mulf %797, %819 : vector<8x16xf32>
    %821 = arith.addf %769, %820 : vector<8x16xf32>
    %c72_i32_176 = arith.constant 72 : i32
    %822 = arith.addi %2, %c72_i32_176 : i32
    %c15_i32_177 = arith.constant 15 : i32
    %823 = arith.addi %822, %c15_i32_177 : i32
    %824 = arith.index_cast %823 : i32 to index
    %825 = memref.load %arg3[%824] : memref<144xf32, #tpu.memory_space<smem>>
    %826 = arith.index_cast %823 : i32 to index
    %827 = memref.load %arg4[%826] : memref<144xf32, #tpu.memory_space<smem>>
    %828 = vector.broadcast %825 : f32 to vector<8x16xf32>
    %829 = arith.mulf %797, %828 : vector<8x16xf32>
    %830 = arith.addf %778, %829 : vector<8x16xf32>
    %831 = vector.broadcast %827 : f32 to vector<8x16xf32>
    %832 = arith.mulf %797, %831 : vector<8x16xf32>
    %833 = arith.addf %781, %832 : vector<8x16xf32>
    %c108_i32_178 = arith.constant 108 : i32
    %834 = arith.addi %2, %c108_i32_178 : i32
    %c15_i32_179 = arith.constant 15 : i32
    %835 = arith.addi %834, %c15_i32_179 : i32
    %836 = arith.index_cast %835 : i32 to index
    %837 = memref.load %arg3[%836] : memref<144xf32, #tpu.memory_space<smem>>
    %838 = arith.index_cast %835 : i32 to index
    %839 = memref.load %arg4[%838] : memref<144xf32, #tpu.memory_space<smem>>
    %840 = vector.broadcast %837 : f32 to vector<8x16xf32>
    %841 = arith.mulf %797, %840 : vector<8x16xf32>
    %842 = arith.addf %790, %841 : vector<8x16xf32>
    %843 = vector.broadcast %839 : f32 to vector<8x16xf32>
    %844 = arith.mulf %797, %843 : vector<8x16xf32>
    %845 = arith.addf %793, %844 : vector<8x16xf32>
    %c2_i32_180 = arith.constant 2 : i32
    %846 = arith.addi %1, %c2_i32_180 : i32
    %c0_181 = arith.constant 0 : index
    %c1_182 = arith.constant 1 : index
    %847 = arith.index_cast %846 : i32 to index
    %c1_183 = arith.constant 1 : index
    %848 = vector.load %arg6[%c0_181, %c1_182, %847, %c1_183] : memref<1x4x18x18xf32, #tpu.memory_space<vmem>>, vector<1x1x8x16xf32>
    %849 = vector.shape_cast %848 : vector<1x1x8x16xf32> to vector<8x16xf32>
    %c0_i32_184 = arith.constant 0 : i32
    %850 = arith.addi %2, %c0_i32_184 : i32
    %c16_i32 = arith.constant 16 : i32
    %851 = arith.addi %850, %c16_i32 : i32
    %852 = arith.index_cast %851 : i32 to index
    %853 = memref.load %arg3[%852] : memref<144xf32, #tpu.memory_space<smem>>
    %854 = arith.index_cast %851 : i32 to index
    %855 = memref.load %arg4[%854] : memref<144xf32, #tpu.memory_space<smem>>
    %856 = vector.broadcast %853 : f32 to vector<8x16xf32>
    %857 = arith.mulf %849, %856 : vector<8x16xf32>
    %858 = arith.addf %806, %857 : vector<8x16xf32>
    %859 = vector.broadcast %855 : f32 to vector<8x16xf32>
    %860 = arith.mulf %849, %859 : vector<8x16xf32>
    %861 = arith.addf %809, %860 : vector<8x16xf32>
    %c36_i32_185 = arith.constant 36 : i32
    %862 = arith.addi %2, %c36_i32_185 : i32
    %c16_i32_186 = arith.constant 16 : i32
    %863 = arith.addi %862, %c16_i32_186 : i32
    %864 = arith.index_cast %863 : i32 to index
    %865 = memref.load %arg3[%864] : memref<144xf32, #tpu.memory_space<smem>>
    %866 = arith.index_cast %863 : i32 to index
    %867 = memref.load %arg4[%866] : memref<144xf32, #tpu.memory_space<smem>>
    %868 = vector.broadcast %865 : f32 to vector<8x16xf32>
    %869 = arith.mulf %849, %868 : vector<8x16xf32>
    %870 = arith.addf %818, %869 : vector<8x16xf32>
    %871 = vector.broadcast %867 : f32 to vector<8x16xf32>
    %872 = arith.mulf %849, %871 : vector<8x16xf32>
    %873 = arith.addf %821, %872 : vector<8x16xf32>
    %c72_i32_187 = arith.constant 72 : i32
    %874 = arith.addi %2, %c72_i32_187 : i32
    %c16_i32_188 = arith.constant 16 : i32
    %875 = arith.addi %874, %c16_i32_188 : i32
    %876 = arith.index_cast %875 : i32 to index
    %877 = memref.load %arg3[%876] : memref<144xf32, #tpu.memory_space<smem>>
    %878 = arith.index_cast %875 : i32 to index
    %879 = memref.load %arg4[%878] : memref<144xf32, #tpu.memory_space<smem>>
    %880 = vector.broadcast %877 : f32 to vector<8x16xf32>
    %881 = arith.mulf %849, %880 : vector<8x16xf32>
    %882 = arith.addf %830, %881 : vector<8x16xf32>
    %883 = vector.broadcast %879 : f32 to vector<8x16xf32>
    %884 = arith.mulf %849, %883 : vector<8x16xf32>
    %885 = arith.addf %833, %884 : vector<8x16xf32>
    %c108_i32_189 = arith.constant 108 : i32
    %886 = arith.addi %2, %c108_i32_189 : i32
    %c16_i32_190 = arith.constant 16 : i32
    %887 = arith.addi %886, %c16_i32_190 : i32
    %888 = arith.index_cast %887 : i32 to index
    %889 = memref.load %arg3[%888] : memref<144xf32, #tpu.memory_space<smem>>
    %890 = arith.index_cast %887 : i32 to index
    %891 = memref.load %arg4[%890] : memref<144xf32, #tpu.memory_space<smem>>
    %892 = vector.broadcast %889 : f32 to vector<8x16xf32>
    %893 = arith.mulf %849, %892 : vector<8x16xf32>
    %894 = arith.addf %842, %893 : vector<8x16xf32>
    %895 = vector.broadcast %891 : f32 to vector<8x16xf32>
    %896 = arith.mulf %849, %895 : vector<8x16xf32>
    %897 = arith.addf %845, %896 : vector<8x16xf32>
    %c2_i32_191 = arith.constant 2 : i32
    %898 = arith.addi %1, %c2_i32_191 : i32
    %c0_192 = arith.constant 0 : index
    %c1_193 = arith.constant 1 : index
    %899 = arith.index_cast %898 : i32 to index
    %c2_194 = arith.constant 2 : index
    %900 = vector.load %arg6[%c0_192, %c1_193, %899, %c2_194] : memref<1x4x18x18xf32, #tpu.memory_space<vmem>>, vector<1x1x8x16xf32>
    %901 = vector.shape_cast %900 : vector<1x1x8x16xf32> to vector<8x16xf32>
    %c0_i32_195 = arith.constant 0 : i32
    %902 = arith.addi %2, %c0_i32_195 : i32
    %c17_i32 = arith.constant 17 : i32
    %903 = arith.addi %902, %c17_i32 : i32
    %904 = arith.index_cast %903 : i32 to index
    %905 = memref.load %arg3[%904] : memref<144xf32, #tpu.memory_space<smem>>
    %906 = arith.index_cast %903 : i32 to index
    %907 = memref.load %arg4[%906] : memref<144xf32, #tpu.memory_space<smem>>
    %908 = vector.broadcast %905 : f32 to vector<8x16xf32>
    %909 = arith.mulf %901, %908 : vector<8x16xf32>
    %910 = arith.addf %858, %909 : vector<8x16xf32>
    %911 = vector.broadcast %907 : f32 to vector<8x16xf32>
    %912 = arith.mulf %901, %911 : vector<8x16xf32>
    %913 = arith.addf %861, %912 : vector<8x16xf32>
    %c36_i32_196 = arith.constant 36 : i32
    %914 = arith.addi %2, %c36_i32_196 : i32
    %c17_i32_197 = arith.constant 17 : i32
    %915 = arith.addi %914, %c17_i32_197 : i32
    %916 = arith.index_cast %915 : i32 to index
    %917 = memref.load %arg3[%916] : memref<144xf32, #tpu.memory_space<smem>>
    %918 = arith.index_cast %915 : i32 to index
    %919 = memref.load %arg4[%918] : memref<144xf32, #tpu.memory_space<smem>>
    %920 = vector.broadcast %917 : f32 to vector<8x16xf32>
    %921 = arith.mulf %901, %920 : vector<8x16xf32>
    %922 = arith.addf %870, %921 : vector<8x16xf32>
    %923 = vector.broadcast %919 : f32 to vector<8x16xf32>
    %924 = arith.mulf %901, %923 : vector<8x16xf32>
    %925 = arith.addf %873, %924 : vector<8x16xf32>
    %c72_i32_198 = arith.constant 72 : i32
    %926 = arith.addi %2, %c72_i32_198 : i32
    %c17_i32_199 = arith.constant 17 : i32
    %927 = arith.addi %926, %c17_i32_199 : i32
    %928 = arith.index_cast %927 : i32 to index
    %929 = memref.load %arg3[%928] : memref<144xf32, #tpu.memory_space<smem>>
    %930 = arith.index_cast %927 : i32 to index
    %931 = memref.load %arg4[%930] : memref<144xf32, #tpu.memory_space<smem>>
    %932 = vector.broadcast %929 : f32 to vector<8x16xf32>
    %933 = arith.mulf %901, %932 : vector<8x16xf32>
    %934 = arith.addf %882, %933 : vector<8x16xf32>
    %935 = vector.broadcast %931 : f32 to vector<8x16xf32>
    %936 = arith.mulf %901, %935 : vector<8x16xf32>
    %937 = arith.addf %885, %936 : vector<8x16xf32>
    %c108_i32_200 = arith.constant 108 : i32
    %938 = arith.addi %2, %c108_i32_200 : i32
    %c17_i32_201 = arith.constant 17 : i32
    %939 = arith.addi %938, %c17_i32_201 : i32
    %940 = arith.index_cast %939 : i32 to index
    %941 = memref.load %arg3[%940] : memref<144xf32, #tpu.memory_space<smem>>
    %942 = arith.index_cast %939 : i32 to index
    %943 = memref.load %arg4[%942] : memref<144xf32, #tpu.memory_space<smem>>
    %944 = vector.broadcast %941 : f32 to vector<8x16xf32>
    %945 = arith.mulf %901, %944 : vector<8x16xf32>
    %946 = arith.addf %894, %945 : vector<8x16xf32>
    %947 = vector.broadcast %943 : f32 to vector<8x16xf32>
    %948 = arith.mulf %901, %947 : vector<8x16xf32>
    %949 = arith.addf %897, %948 : vector<8x16xf32>
    %c0_i32_202 = arith.constant 0 : i32
    %950 = arith.addi %1, %c0_i32_202 : i32
    %c0_203 = arith.constant 0 : index
    %c2_204 = arith.constant 2 : index
    %951 = arith.index_cast %950 : i32 to index
    %c0_205 = arith.constant 0 : index
    %952 = vector.load %arg6[%c0_203, %c2_204, %951, %c0_205] : memref<1x4x18x18xf32, #tpu.memory_space<vmem>>, vector<1x1x8x16xf32>
    %953 = vector.shape_cast %952 : vector<1x1x8x16xf32> to vector<8x16xf32>
    %c0_i32_206 = arith.constant 0 : i32
    %954 = arith.addi %2, %c0_i32_206 : i32
    %c18_i32 = arith.constant 18 : i32
    %955 = arith.addi %954, %c18_i32 : i32
    %956 = arith.index_cast %955 : i32 to index
    %957 = memref.load %arg3[%956] : memref<144xf32, #tpu.memory_space<smem>>
    %958 = arith.index_cast %955 : i32 to index
    %959 = memref.load %arg4[%958] : memref<144xf32, #tpu.memory_space<smem>>
    %960 = vector.broadcast %957 : f32 to vector<8x16xf32>
    %961 = arith.mulf %953, %960 : vector<8x16xf32>
    %962 = arith.addf %910, %961 : vector<8x16xf32>
    %963 = vector.broadcast %959 : f32 to vector<8x16xf32>
    %964 = arith.mulf %953, %963 : vector<8x16xf32>
    %965 = arith.addf %913, %964 : vector<8x16xf32>
    %c36_i32_207 = arith.constant 36 : i32
    %966 = arith.addi %2, %c36_i32_207 : i32
    %c18_i32_208 = arith.constant 18 : i32
    %967 = arith.addi %966, %c18_i32_208 : i32
    %968 = arith.index_cast %967 : i32 to index
    %969 = memref.load %arg3[%968] : memref<144xf32, #tpu.memory_space<smem>>
    %970 = arith.index_cast %967 : i32 to index
    %971 = memref.load %arg4[%970] : memref<144xf32, #tpu.memory_space<smem>>
    %972 = vector.broadcast %969 : f32 to vector<8x16xf32>
    %973 = arith.mulf %953, %972 : vector<8x16xf32>
    %974 = arith.addf %922, %973 : vector<8x16xf32>
    %975 = vector.broadcast %971 : f32 to vector<8x16xf32>
    %976 = arith.mulf %953, %975 : vector<8x16xf32>
    %977 = arith.addf %925, %976 : vector<8x16xf32>
    %c72_i32_209 = arith.constant 72 : i32
    %978 = arith.addi %2, %c72_i32_209 : i32
    %c18_i32_210 = arith.constant 18 : i32
    %979 = arith.addi %978, %c18_i32_210 : i32
    %980 = arith.index_cast %979 : i32 to index
    %981 = memref.load %arg3[%980] : memref<144xf32, #tpu.memory_space<smem>>
    %982 = arith.index_cast %979 : i32 to index
    %983 = memref.load %arg4[%982] : memref<144xf32, #tpu.memory_space<smem>>
    %984 = vector.broadcast %981 : f32 to vector<8x16xf32>
    %985 = arith.mulf %953, %984 : vector<8x16xf32>
    %986 = arith.addf %934, %985 : vector<8x16xf32>
    %987 = vector.broadcast %983 : f32 to vector<8x16xf32>
    %988 = arith.mulf %953, %987 : vector<8x16xf32>
    %989 = arith.addf %937, %988 : vector<8x16xf32>
    %c108_i32_211 = arith.constant 108 : i32
    %990 = arith.addi %2, %c108_i32_211 : i32
    %c18_i32_212 = arith.constant 18 : i32
    %991 = arith.addi %990, %c18_i32_212 : i32
    %992 = arith.index_cast %991 : i32 to index
    %993 = memref.load %arg3[%992] : memref<144xf32, #tpu.memory_space<smem>>
    %994 = arith.index_cast %991 : i32 to index
    %995 = memref.load %arg4[%994] : memref<144xf32, #tpu.memory_space<smem>>
    %996 = vector.broadcast %993 : f32 to vector<8x16xf32>
    %997 = arith.mulf %953, %996 : vector<8x16xf32>
    %998 = arith.addf %946, %997 : vector<8x16xf32>
    %999 = vector.broadcast %995 : f32 to vector<8x16xf32>
    %1000 = arith.mulf %953, %999 : vector<8x16xf32>
    %1001 = arith.addf %949, %1000 : vector<8x16xf32>
    %c0_i32_213 = arith.constant 0 : i32
    %1002 = arith.addi %1, %c0_i32_213 : i32
    %c0_214 = arith.constant 0 : index
    %c2_215 = arith.constant 2 : index
    %1003 = arith.index_cast %1002 : i32 to index
    %c1_216 = arith.constant 1 : index
    %1004 = vector.load %arg6[%c0_214, %c2_215, %1003, %c1_216] : memref<1x4x18x18xf32, #tpu.memory_space<vmem>>, vector<1x1x8x16xf32>
    %1005 = vector.shape_cast %1004 : vector<1x1x8x16xf32> to vector<8x16xf32>
    %c0_i32_217 = arith.constant 0 : i32
    %1006 = arith.addi %2, %c0_i32_217 : i32
    %c19_i32 = arith.constant 19 : i32
    %1007 = arith.addi %1006, %c19_i32 : i32
    %1008 = arith.index_cast %1007 : i32 to index
    %1009 = memref.load %arg3[%1008] : memref<144xf32, #tpu.memory_space<smem>>
    %1010 = arith.index_cast %1007 : i32 to index
    %1011 = memref.load %arg4[%1010] : memref<144xf32, #tpu.memory_space<smem>>
    %1012 = vector.broadcast %1009 : f32 to vector<8x16xf32>
    %1013 = arith.mulf %1005, %1012 : vector<8x16xf32>
    %1014 = arith.addf %962, %1013 : vector<8x16xf32>
    %1015 = vector.broadcast %1011 : f32 to vector<8x16xf32>
    %1016 = arith.mulf %1005, %1015 : vector<8x16xf32>
    %1017 = arith.addf %965, %1016 : vector<8x16xf32>
    %c36_i32_218 = arith.constant 36 : i32
    %1018 = arith.addi %2, %c36_i32_218 : i32
    %c19_i32_219 = arith.constant 19 : i32
    %1019 = arith.addi %1018, %c19_i32_219 : i32
    %1020 = arith.index_cast %1019 : i32 to index
    %1021 = memref.load %arg3[%1020] : memref<144xf32, #tpu.memory_space<smem>>
    %1022 = arith.index_cast %1019 : i32 to index
    %1023 = memref.load %arg4[%1022] : memref<144xf32, #tpu.memory_space<smem>>
    %1024 = vector.broadcast %1021 : f32 to vector<8x16xf32>
    %1025 = arith.mulf %1005, %1024 : vector<8x16xf32>
    %1026 = arith.addf %974, %1025 : vector<8x16xf32>
    %1027 = vector.broadcast %1023 : f32 to vector<8x16xf32>
    %1028 = arith.mulf %1005, %1027 : vector<8x16xf32>
    %1029 = arith.addf %977, %1028 : vector<8x16xf32>
    %c72_i32_220 = arith.constant 72 : i32
    %1030 = arith.addi %2, %c72_i32_220 : i32
    %c19_i32_221 = arith.constant 19 : i32
    %1031 = arith.addi %1030, %c19_i32_221 : i32
    %1032 = arith.index_cast %1031 : i32 to index
    %1033 = memref.load %arg3[%1032] : memref<144xf32, #tpu.memory_space<smem>>
    %1034 = arith.index_cast %1031 : i32 to index
    %1035 = memref.load %arg4[%1034] : memref<144xf32, #tpu.memory_space<smem>>
    %1036 = vector.broadcast %1033 : f32 to vector<8x16xf32>
    %1037 = arith.mulf %1005, %1036 : vector<8x16xf32>
    %1038 = arith.addf %986, %1037 : vector<8x16xf32>
    %1039 = vector.broadcast %1035 : f32 to vector<8x16xf32>
    %1040 = arith.mulf %1005, %1039 : vector<8x16xf32>
    %1041 = arith.addf %989, %1040 : vector<8x16xf32>
    %c108_i32_222 = arith.constant 108 : i32
    %1042 = arith.addi %2, %c108_i32_222 : i32
    %c19_i32_223 = arith.constant 19 : i32
    %1043 = arith.addi %1042, %c19_i32_223 : i32
    %1044 = arith.index_cast %1043 : i32 to index
    %1045 = memref.load %arg3[%1044] : memref<144xf32, #tpu.memory_space<smem>>
    %1046 = arith.index_cast %1043 : i32 to index
    %1047 = memref.load %arg4[%1046] : memref<144xf32, #tpu.memory_space<smem>>
    %1048 = vector.broadcast %1045 : f32 to vector<8x16xf32>
    %1049 = arith.mulf %1005, %1048 : vector<8x16xf32>
    %1050 = arith.addf %998, %1049 : vector<8x16xf32>
    %1051 = vector.broadcast %1047 : f32 to vector<8x16xf32>
    %1052 = arith.mulf %1005, %1051 : vector<8x16xf32>
    %1053 = arith.addf %1001, %1052 : vector<8x16xf32>
    %c0_i32_224 = arith.constant 0 : i32
    %1054 = arith.addi %1, %c0_i32_224 : i32
    %c0_225 = arith.constant 0 : index
    %c2_226 = arith.constant 2 : index
    %1055 = arith.index_cast %1054 : i32 to index
    %c2_227 = arith.constant 2 : index
    %1056 = vector.load %arg6[%c0_225, %c2_226, %1055, %c2_227] : memref<1x4x18x18xf32, #tpu.memory_space<vmem>>, vector<1x1x8x16xf32>
    %1057 = vector.shape_cast %1056 : vector<1x1x8x16xf32> to vector<8x16xf32>
    %c0_i32_228 = arith.constant 0 : i32
    %1058 = arith.addi %2, %c0_i32_228 : i32
    %c20_i32 = arith.constant 20 : i32
    %1059 = arith.addi %1058, %c20_i32 : i32
    %1060 = arith.index_cast %1059 : i32 to index
    %1061 = memref.load %arg3[%1060] : memref<144xf32, #tpu.memory_space<smem>>
    %1062 = arith.index_cast %1059 : i32 to index
    %1063 = memref.load %arg4[%1062] : memref<144xf32, #tpu.memory_space<smem>>
    %1064 = vector.broadcast %1061 : f32 to vector<8x16xf32>
    %1065 = arith.mulf %1057, %1064 : vector<8x16xf32>
    %1066 = arith.addf %1014, %1065 : vector<8x16xf32>
    %1067 = vector.broadcast %1063 : f32 to vector<8x16xf32>
    %1068 = arith.mulf %1057, %1067 : vector<8x16xf32>
    %1069 = arith.addf %1017, %1068 : vector<8x16xf32>
    %c36_i32_229 = arith.constant 36 : i32
    %1070 = arith.addi %2, %c36_i32_229 : i32
    %c20_i32_230 = arith.constant 20 : i32
    %1071 = arith.addi %1070, %c20_i32_230 : i32
    %1072 = arith.index_cast %1071 : i32 to index
    %1073 = memref.load %arg3[%1072] : memref<144xf32, #tpu.memory_space<smem>>
    %1074 = arith.index_cast %1071 : i32 to index
    %1075 = memref.load %arg4[%1074] : memref<144xf32, #tpu.memory_space<smem>>
    %1076 = vector.broadcast %1073 : f32 to vector<8x16xf32>
    %1077 = arith.mulf %1057, %1076 : vector<8x16xf32>
    %1078 = arith.addf %1026, %1077 : vector<8x16xf32>
    %1079 = vector.broadcast %1075 : f32 to vector<8x16xf32>
    %1080 = arith.mulf %1057, %1079 : vector<8x16xf32>
    %1081 = arith.addf %1029, %1080 : vector<8x16xf32>
    %c72_i32_231 = arith.constant 72 : i32
    %1082 = arith.addi %2, %c72_i32_231 : i32
    %c20_i32_232 = arith.constant 20 : i32
    %1083 = arith.addi %1082, %c20_i32_232 : i32
    %1084 = arith.index_cast %1083 : i32 to index
    %1085 = memref.load %arg3[%1084] : memref<144xf32, #tpu.memory_space<smem>>
    %1086 = arith.index_cast %1083 : i32 to index
    %1087 = memref.load %arg4[%1086] : memref<144xf32, #tpu.memory_space<smem>>
    %1088 = vector.broadcast %1085 : f32 to vector<8x16xf32>
    %1089 = arith.mulf %1057, %1088 : vector<8x16xf32>
    %1090 = arith.addf %1038, %1089 : vector<8x16xf32>
    %1091 = vector.broadcast %1087 : f32 to vector<8x16xf32>
    %1092 = arith.mulf %1057, %1091 : vector<8x16xf32>
    %1093 = arith.addf %1041, %1092 : vector<8x16xf32>
    %c108_i32_233 = arith.constant 108 : i32
    %1094 = arith.addi %2, %c108_i32_233 : i32
    %c20_i32_234 = arith.constant 20 : i32
    %1095 = arith.addi %1094, %c20_i32_234 : i32
    %1096 = arith.index_cast %1095 : i32 to index
    %1097 = memref.load %arg3[%1096] : memref<144xf32, #tpu.memory_space<smem>>
    %1098 = arith.index_cast %1095 : i32 to index
    %1099 = memref.load %arg4[%1098] : memref<144xf32, #tpu.memory_space<smem>>
    %1100 = vector.broadcast %1097 : f32 to vector<8x16xf32>
    %1101 = arith.mulf %1057, %1100 : vector<8x16xf32>
    %1102 = arith.addf %1050, %1101 : vector<8x16xf32>
    %1103 = vector.broadcast %1099 : f32 to vector<8x16xf32>
    %1104 = arith.mulf %1057, %1103 : vector<8x16xf32>
    %1105 = arith.addf %1053, %1104 : vector<8x16xf32>
    %c1_i32_235 = arith.constant 1 : i32
    %1106 = arith.addi %1, %c1_i32_235 : i32
    %c0_236 = arith.constant 0 : index
    %c2_237 = arith.constant 2 : index
    %1107 = arith.index_cast %1106 : i32 to index
    %c0_238 = arith.constant 0 : index
    %1108 = vector.load %arg6[%c0_236, %c2_237, %1107, %c0_238] : memref<1x4x18x18xf32, #tpu.memory_space<vmem>>, vector<1x1x8x16xf32>
    %1109 = vector.shape_cast %1108 : vector<1x1x8x16xf32> to vector<8x16xf32>
    %c0_i32_239 = arith.constant 0 : i32
    %1110 = arith.addi %2, %c0_i32_239 : i32
    %c21_i32 = arith.constant 21 : i32
    %1111 = arith.addi %1110, %c21_i32 : i32
    %1112 = arith.index_cast %1111 : i32 to index
    %1113 = memref.load %arg3[%1112] : memref<144xf32, #tpu.memory_space<smem>>
    %1114 = arith.index_cast %1111 : i32 to index
    %1115 = memref.load %arg4[%1114] : memref<144xf32, #tpu.memory_space<smem>>
    %1116 = vector.broadcast %1113 : f32 to vector<8x16xf32>
    %1117 = arith.mulf %1109, %1116 : vector<8x16xf32>
    %1118 = arith.addf %1066, %1117 : vector<8x16xf32>
    %1119 = vector.broadcast %1115 : f32 to vector<8x16xf32>
    %1120 = arith.mulf %1109, %1119 : vector<8x16xf32>
    %1121 = arith.addf %1069, %1120 : vector<8x16xf32>
    %c36_i32_240 = arith.constant 36 : i32
    %1122 = arith.addi %2, %c36_i32_240 : i32
    %c21_i32_241 = arith.constant 21 : i32
    %1123 = arith.addi %1122, %c21_i32_241 : i32
    %1124 = arith.index_cast %1123 : i32 to index
    %1125 = memref.load %arg3[%1124] : memref<144xf32, #tpu.memory_space<smem>>
    %1126 = arith.index_cast %1123 : i32 to index
    %1127 = memref.load %arg4[%1126] : memref<144xf32, #tpu.memory_space<smem>>
    %1128 = vector.broadcast %1125 : f32 to vector<8x16xf32>
    %1129 = arith.mulf %1109, %1128 : vector<8x16xf32>
    %1130 = arith.addf %1078, %1129 : vector<8x16xf32>
    %1131 = vector.broadcast %1127 : f32 to vector<8x16xf32>
    %1132 = arith.mulf %1109, %1131 : vector<8x16xf32>
    %1133 = arith.addf %1081, %1132 : vector<8x16xf32>
    %c72_i32_242 = arith.constant 72 : i32
    %1134 = arith.addi %2, %c72_i32_242 : i32
    %c21_i32_243 = arith.constant 21 : i32
    %1135 = arith.addi %1134, %c21_i32_243 : i32
    %1136 = arith.index_cast %1135 : i32 to index
    %1137 = memref.load %arg3[%1136] : memref<144xf32, #tpu.memory_space<smem>>
    %1138 = arith.index_cast %1135 : i32 to index
    %1139 = memref.load %arg4[%1138] : memref<144xf32, #tpu.memory_space<smem>>
    %1140 = vector.broadcast %1137 : f32 to vector<8x16xf32>
    %1141 = arith.mulf %1109, %1140 : vector<8x16xf32>
    %1142 = arith.addf %1090, %1141 : vector<8x16xf32>
    %1143 = vector.broadcast %1139 : f32 to vector<8x16xf32>
    %1144 = arith.mulf %1109, %1143 : vector<8x16xf32>
    %1145 = arith.addf %1093, %1144 : vector<8x16xf32>
    %c108_i32_244 = arith.constant 108 : i32
    %1146 = arith.addi %2, %c108_i32_244 : i32
    %c21_i32_245 = arith.constant 21 : i32
    %1147 = arith.addi %1146, %c21_i32_245 : i32
    %1148 = arith.index_cast %1147 : i32 to index
    %1149 = memref.load %arg3[%1148] : memref<144xf32, #tpu.memory_space<smem>>
    %1150 = arith.index_cast %1147 : i32 to index
    %1151 = memref.load %arg4[%1150] : memref<144xf32, #tpu.memory_space<smem>>
    %1152 = vector.broadcast %1149 : f32 to vector<8x16xf32>
    %1153 = arith.mulf %1109, %1152 : vector<8x16xf32>
    %1154 = arith.addf %1102, %1153 : vector<8x16xf32>
    %1155 = vector.broadcast %1151 : f32 to vector<8x16xf32>
    %1156 = arith.mulf %1109, %1155 : vector<8x16xf32>
    %1157 = arith.addf %1105, %1156 : vector<8x16xf32>
    %c1_i32_246 = arith.constant 1 : i32
    %1158 = arith.addi %1, %c1_i32_246 : i32
    %c0_247 = arith.constant 0 : index
    %c2_248 = arith.constant 2 : index
    %1159 = arith.index_cast %1158 : i32 to index
    %c1_249 = arith.constant 1 : index
    %1160 = vector.load %arg6[%c0_247, %c2_248, %1159, %c1_249] : memref<1x4x18x18xf32, #tpu.memory_space<vmem>>, vector<1x1x8x16xf32>
    %1161 = vector.shape_cast %1160 : vector<1x1x8x16xf32> to vector<8x16xf32>
    %c0_i32_250 = arith.constant 0 : i32
    %1162 = arith.addi %2, %c0_i32_250 : i32
    %c22_i32 = arith.constant 22 : i32
    %1163 = arith.addi %1162, %c22_i32 : i32
    %1164 = arith.index_cast %1163 : i32 to index
    %1165 = memref.load %arg3[%1164] : memref<144xf32, #tpu.memory_space<smem>>
    %1166 = arith.index_cast %1163 : i32 to index
    %1167 = memref.load %arg4[%1166] : memref<144xf32, #tpu.memory_space<smem>>
    %1168 = vector.broadcast %1165 : f32 to vector<8x16xf32>
    %1169 = arith.mulf %1161, %1168 : vector<8x16xf32>
    %1170 = arith.addf %1118, %1169 : vector<8x16xf32>
    %1171 = vector.broadcast %1167 : f32 to vector<8x16xf32>
    %1172 = arith.mulf %1161, %1171 : vector<8x16xf32>
    %1173 = arith.addf %1121, %1172 : vector<8x16xf32>
    %c36_i32_251 = arith.constant 36 : i32
    %1174 = arith.addi %2, %c36_i32_251 : i32
    %c22_i32_252 = arith.constant 22 : i32
    %1175 = arith.addi %1174, %c22_i32_252 : i32
    %1176 = arith.index_cast %1175 : i32 to index
    %1177 = memref.load %arg3[%1176] : memref<144xf32, #tpu.memory_space<smem>>
    %1178 = arith.index_cast %1175 : i32 to index
    %1179 = memref.load %arg4[%1178] : memref<144xf32, #tpu.memory_space<smem>>
    %1180 = vector.broadcast %1177 : f32 to vector<8x16xf32>
    %1181 = arith.mulf %1161, %1180 : vector<8x16xf32>
    %1182 = arith.addf %1130, %1181 : vector<8x16xf32>
    %1183 = vector.broadcast %1179 : f32 to vector<8x16xf32>
    %1184 = arith.mulf %1161, %1183 : vector<8x16xf32>
    %1185 = arith.addf %1133, %1184 : vector<8x16xf32>
    %c72_i32_253 = arith.constant 72 : i32
    %1186 = arith.addi %2, %c72_i32_253 : i32
    %c22_i32_254 = arith.constant 22 : i32
    %1187 = arith.addi %1186, %c22_i32_254 : i32
    %1188 = arith.index_cast %1187 : i32 to index
    %1189 = memref.load %arg3[%1188] : memref<144xf32, #tpu.memory_space<smem>>
    %1190 = arith.index_cast %1187 : i32 to index
    %1191 = memref.load %arg4[%1190] : memref<144xf32, #tpu.memory_space<smem>>
    %1192 = vector.broadcast %1189 : f32 to vector<8x16xf32>
    %1193 = arith.mulf %1161, %1192 : vector<8x16xf32>
    %1194 = arith.addf %1142, %1193 : vector<8x16xf32>
    %1195 = vector.broadcast %1191 : f32 to vector<8x16xf32>
    %1196 = arith.mulf %1161, %1195 : vector<8x16xf32>
    %1197 = arith.addf %1145, %1196 : vector<8x16xf32>
    %c108_i32_255 = arith.constant 108 : i32
    %1198 = arith.addi %2, %c108_i32_255 : i32
    %c22_i32_256 = arith.constant 22 : i32
    %1199 = arith.addi %1198, %c22_i32_256 : i32
    %1200 = arith.index_cast %1199 : i32 to index
    %1201 = memref.load %arg3[%1200] : memref<144xf32, #tpu.memory_space<smem>>
    %1202 = arith.index_cast %1199 : i32 to index
    %1203 = memref.load %arg4[%1202] : memref<144xf32, #tpu.memory_space<smem>>
    %1204 = vector.broadcast %1201 : f32 to vector<8x16xf32>
    %1205 = arith.mulf %1161, %1204 : vector<8x16xf32>
    %1206 = arith.addf %1154, %1205 : vector<8x16xf32>
    %1207 = vector.broadcast %1203 : f32 to vector<8x16xf32>
    %1208 = arith.mulf %1161, %1207 : vector<8x16xf32>
    %1209 = arith.addf %1157, %1208 : vector<8x16xf32>
    %c1_i32_257 = arith.constant 1 : i32
    %1210 = arith.addi %1, %c1_i32_257 : i32
    %c0_258 = arith.constant 0 : index
    %c2_259 = arith.constant 2 : index
    %1211 = arith.index_cast %1210 : i32 to index
    %c2_260 = arith.constant 2 : index
    %1212 = vector.load %arg6[%c0_258, %c2_259, %1211, %c2_260] : memref<1x4x18x18xf32, #tpu.memory_space<vmem>>, vector<1x1x8x16xf32>
    %1213 = vector.shape_cast %1212 : vector<1x1x8x16xf32> to vector<8x16xf32>
    %c0_i32_261 = arith.constant 0 : i32
    %1214 = arith.addi %2, %c0_i32_261 : i32
    %c23_i32 = arith.constant 23 : i32
    %1215 = arith.addi %1214, %c23_i32 : i32
    %1216 = arith.index_cast %1215 : i32 to index
    %1217 = memref.load %arg3[%1216] : memref<144xf32, #tpu.memory_space<smem>>
    %1218 = arith.index_cast %1215 : i32 to index
    %1219 = memref.load %arg4[%1218] : memref<144xf32, #tpu.memory_space<smem>>
    %1220 = vector.broadcast %1217 : f32 to vector<8x16xf32>
    %1221 = arith.mulf %1213, %1220 : vector<8x16xf32>
    %1222 = arith.addf %1170, %1221 : vector<8x16xf32>
    %1223 = vector.broadcast %1219 : f32 to vector<8x16xf32>
    %1224 = arith.mulf %1213, %1223 : vector<8x16xf32>
    %1225 = arith.addf %1173, %1224 : vector<8x16xf32>
    %c36_i32_262 = arith.constant 36 : i32
    %1226 = arith.addi %2, %c36_i32_262 : i32
    %c23_i32_263 = arith.constant 23 : i32
    %1227 = arith.addi %1226, %c23_i32_263 : i32
    %1228 = arith.index_cast %1227 : i32 to index
    %1229 = memref.load %arg3[%1228] : memref<144xf32, #tpu.memory_space<smem>>
    %1230 = arith.index_cast %1227 : i32 to index
    %1231 = memref.load %arg4[%1230] : memref<144xf32, #tpu.memory_space<smem>>
    %1232 = vector.broadcast %1229 : f32 to vector<8x16xf32>
    %1233 = arith.mulf %1213, %1232 : vector<8x16xf32>
    %1234 = arith.addf %1182, %1233 : vector<8x16xf32>
    %1235 = vector.broadcast %1231 : f32 to vector<8x16xf32>
    %1236 = arith.mulf %1213, %1235 : vector<8x16xf32>
    %1237 = arith.addf %1185, %1236 : vector<8x16xf32>
    %c72_i32_264 = arith.constant 72 : i32
    %1238 = arith.addi %2, %c72_i32_264 : i32
    %c23_i32_265 = arith.constant 23 : i32
    %1239 = arith.addi %1238, %c23_i32_265 : i32
    %1240 = arith.index_cast %1239 : i32 to index
    %1241 = memref.load %arg3[%1240] : memref<144xf32, #tpu.memory_space<smem>>
    %1242 = arith.index_cast %1239 : i32 to index
    %1243 = memref.load %arg4[%1242] : memref<144xf32, #tpu.memory_space<smem>>
    %1244 = vector.broadcast %1241 : f32 to vector<8x16xf32>
    %1245 = arith.mulf %1213, %1244 : vector<8x16xf32>
    %1246 = arith.addf %1194, %1245 : vector<8x16xf32>
    %1247 = vector.broadcast %1243 : f32 to vector<8x16xf32>
    %1248 = arith.mulf %1213, %1247 : vector<8x16xf32>
    %1249 = arith.addf %1197, %1248 : vector<8x16xf32>
    %c108_i32_266 = arith.constant 108 : i32
    %1250 = arith.addi %2, %c108_i32_266 : i32
    %c23_i32_267 = arith.constant 23 : i32
    %1251 = arith.addi %1250, %c23_i32_267 : i32
    %1252 = arith.index_cast %1251 : i32 to index
    %1253 = memref.load %arg3[%1252] : memref<144xf32, #tpu.memory_space<smem>>
    %1254 = arith.index_cast %1251 : i32 to index
    %1255 = memref.load %arg4[%1254] : memref<144xf32, #tpu.memory_space<smem>>
    %1256 = vector.broadcast %1253 : f32 to vector<8x16xf32>
    %1257 = arith.mulf %1213, %1256 : vector<8x16xf32>
    %1258 = arith.addf %1206, %1257 : vector<8x16xf32>
    %1259 = vector.broadcast %1255 : f32 to vector<8x16xf32>
    %1260 = arith.mulf %1213, %1259 : vector<8x16xf32>
    %1261 = arith.addf %1209, %1260 : vector<8x16xf32>
    %c2_i32_268 = arith.constant 2 : i32
    %1262 = arith.addi %1, %c2_i32_268 : i32
    %c0_269 = arith.constant 0 : index
    %c2_270 = arith.constant 2 : index
    %1263 = arith.index_cast %1262 : i32 to index
    %c0_271 = arith.constant 0 : index
    %1264 = vector.load %arg6[%c0_269, %c2_270, %1263, %c0_271] : memref<1x4x18x18xf32, #tpu.memory_space<vmem>>, vector<1x1x8x16xf32>
    %1265 = vector.shape_cast %1264 : vector<1x1x8x16xf32> to vector<8x16xf32>
    %c0_i32_272 = arith.constant 0 : i32
    %1266 = arith.addi %2, %c0_i32_272 : i32
    %c24_i32 = arith.constant 24 : i32
    %1267 = arith.addi %1266, %c24_i32 : i32
    %1268 = arith.index_cast %1267 : i32 to index
    %1269 = memref.load %arg3[%1268] : memref<144xf32, #tpu.memory_space<smem>>
    %1270 = arith.index_cast %1267 : i32 to index
    %1271 = memref.load %arg4[%1270] : memref<144xf32, #tpu.memory_space<smem>>
    %1272 = vector.broadcast %1269 : f32 to vector<8x16xf32>
    %1273 = arith.mulf %1265, %1272 : vector<8x16xf32>
    %1274 = arith.addf %1222, %1273 : vector<8x16xf32>
    %1275 = vector.broadcast %1271 : f32 to vector<8x16xf32>
    %1276 = arith.mulf %1265, %1275 : vector<8x16xf32>
    %1277 = arith.addf %1225, %1276 : vector<8x16xf32>
    %c36_i32_273 = arith.constant 36 : i32
    %1278 = arith.addi %2, %c36_i32_273 : i32
    %c24_i32_274 = arith.constant 24 : i32
    %1279 = arith.addi %1278, %c24_i32_274 : i32
    %1280 = arith.index_cast %1279 : i32 to index
    %1281 = memref.load %arg3[%1280] : memref<144xf32, #tpu.memory_space<smem>>
    %1282 = arith.index_cast %1279 : i32 to index
    %1283 = memref.load %arg4[%1282] : memref<144xf32, #tpu.memory_space<smem>>
    %1284 = vector.broadcast %1281 : f32 to vector<8x16xf32>
    %1285 = arith.mulf %1265, %1284 : vector<8x16xf32>
    %1286 = arith.addf %1234, %1285 : vector<8x16xf32>
    %1287 = vector.broadcast %1283 : f32 to vector<8x16xf32>
    %1288 = arith.mulf %1265, %1287 : vector<8x16xf32>
    %1289 = arith.addf %1237, %1288 : vector<8x16xf32>
    %c72_i32_275 = arith.constant 72 : i32
    %1290 = arith.addi %2, %c72_i32_275 : i32
    %c24_i32_276 = arith.constant 24 : i32
    %1291 = arith.addi %1290, %c24_i32_276 : i32
    %1292 = arith.index_cast %1291 : i32 to index
    %1293 = memref.load %arg3[%1292] : memref<144xf32, #tpu.memory_space<smem>>
    %1294 = arith.index_cast %1291 : i32 to index
    %1295 = memref.load %arg4[%1294] : memref<144xf32, #tpu.memory_space<smem>>
    %1296 = vector.broadcast %1293 : f32 to vector<8x16xf32>
    %1297 = arith.mulf %1265, %1296 : vector<8x16xf32>
    %1298 = arith.addf %1246, %1297 : vector<8x16xf32>
    %1299 = vector.broadcast %1295 : f32 to vector<8x16xf32>
    %1300 = arith.mulf %1265, %1299 : vector<8x16xf32>
    %1301 = arith.addf %1249, %1300 : vector<8x16xf32>
    %c108_i32_277 = arith.constant 108 : i32
    %1302 = arith.addi %2, %c108_i32_277 : i32
    %c24_i32_278 = arith.constant 24 : i32
    %1303 = arith.addi %1302, %c24_i32_278 : i32
    %1304 = arith.index_cast %1303 : i32 to index
    %1305 = memref.load %arg3[%1304] : memref<144xf32, #tpu.memory_space<smem>>
    %1306 = arith.index_cast %1303 : i32 to index
    %1307 = memref.load %arg4[%1306] : memref<144xf32, #tpu.memory_space<smem>>
    %1308 = vector.broadcast %1305 : f32 to vector<8x16xf32>
    %1309 = arith.mulf %1265, %1308 : vector<8x16xf32>
    %1310 = arith.addf %1258, %1309 : vector<8x16xf32>
    %1311 = vector.broadcast %1307 : f32 to vector<8x16xf32>
    %1312 = arith.mulf %1265, %1311 : vector<8x16xf32>
    %1313 = arith.addf %1261, %1312 : vector<8x16xf32>
    %c2_i32_279 = arith.constant 2 : i32
    %1314 = arith.addi %1, %c2_i32_279 : i32
    %c0_280 = arith.constant 0 : index
    %c2_281 = arith.constant 2 : index
    %1315 = arith.index_cast %1314 : i32 to index
    %c1_282 = arith.constant 1 : index
    %1316 = vector.load %arg6[%c0_280, %c2_281, %1315, %c1_282] : memref<1x4x18x18xf32, #tpu.memory_space<vmem>>, vector<1x1x8x16xf32>
    %1317 = vector.shape_cast %1316 : vector<1x1x8x16xf32> to vector<8x16xf32>
    %c0_i32_283 = arith.constant 0 : i32
    %1318 = arith.addi %2, %c0_i32_283 : i32
    %c25_i32 = arith.constant 25 : i32
    %1319 = arith.addi %1318, %c25_i32 : i32
    %1320 = arith.index_cast %1319 : i32 to index
    %1321 = memref.load %arg3[%1320] : memref<144xf32, #tpu.memory_space<smem>>
    %1322 = arith.index_cast %1319 : i32 to index
    %1323 = memref.load %arg4[%1322] : memref<144xf32, #tpu.memory_space<smem>>
    %1324 = vector.broadcast %1321 : f32 to vector<8x16xf32>
    %1325 = arith.mulf %1317, %1324 : vector<8x16xf32>
    %1326 = arith.addf %1274, %1325 : vector<8x16xf32>
    %1327 = vector.broadcast %1323 : f32 to vector<8x16xf32>
    %1328 = arith.mulf %1317, %1327 : vector<8x16xf32>
    %1329 = arith.addf %1277, %1328 : vector<8x16xf32>
    %c36_i32_284 = arith.constant 36 : i32
    %1330 = arith.addi %2, %c36_i32_284 : i32
    %c25_i32_285 = arith.constant 25 : i32
    %1331 = arith.addi %1330, %c25_i32_285 : i32
    %1332 = arith.index_cast %1331 : i32 to index
    %1333 = memref.load %arg3[%1332] : memref<144xf32, #tpu.memory_space<smem>>
    %1334 = arith.index_cast %1331 : i32 to index
    %1335 = memref.load %arg4[%1334] : memref<144xf32, #tpu.memory_space<smem>>
    %1336 = vector.broadcast %1333 : f32 to vector<8x16xf32>
    %1337 = arith.mulf %1317, %1336 : vector<8x16xf32>
    %1338 = arith.addf %1286, %1337 : vector<8x16xf32>
    %1339 = vector.broadcast %1335 : f32 to vector<8x16xf32>
    %1340 = arith.mulf %1317, %1339 : vector<8x16xf32>
    %1341 = arith.addf %1289, %1340 : vector<8x16xf32>
    %c72_i32_286 = arith.constant 72 : i32
    %1342 = arith.addi %2, %c72_i32_286 : i32
    %c25_i32_287 = arith.constant 25 : i32
    %1343 = arith.addi %1342, %c25_i32_287 : i32
    %1344 = arith.index_cast %1343 : i32 to index
    %1345 = memref.load %arg3[%1344] : memref<144xf32, #tpu.memory_space<smem>>
    %1346 = arith.index_cast %1343 : i32 to index
    %1347 = memref.load %arg4[%1346] : memref<144xf32, #tpu.memory_space<smem>>
    %1348 = vector.broadcast %1345 : f32 to vector<8x16xf32>
    %1349 = arith.mulf %1317, %1348 : vector<8x16xf32>
    %1350 = arith.addf %1298, %1349 : vector<8x16xf32>
    %1351 = vector.broadcast %1347 : f32 to vector<8x16xf32>
    %1352 = arith.mulf %1317, %1351 : vector<8x16xf32>
    %1353 = arith.addf %1301, %1352 : vector<8x16xf32>
    %c108_i32_288 = arith.constant 108 : i32
    %1354 = arith.addi %2, %c108_i32_288 : i32
    %c25_i32_289 = arith.constant 25 : i32
    %1355 = arith.addi %1354, %c25_i32_289 : i32
    %1356 = arith.index_cast %1355 : i32 to index
    %1357 = memref.load %arg3[%1356] : memref<144xf32, #tpu.memory_space<smem>>
    %1358 = arith.index_cast %1355 : i32 to index
    %1359 = memref.load %arg4[%1358] : memref<144xf32, #tpu.memory_space<smem>>
    %1360 = vector.broadcast %1357 : f32 to vector<8x16xf32>
    %1361 = arith.mulf %1317, %1360 : vector<8x16xf32>
    %1362 = arith.addf %1310, %1361 : vector<8x16xf32>
    %1363 = vector.broadcast %1359 : f32 to vector<8x16xf32>
    %1364 = arith.mulf %1317, %1363 : vector<8x16xf32>
    %1365 = arith.addf %1313, %1364 : vector<8x16xf32>
    %c2_i32_290 = arith.constant 2 : i32
    %1366 = arith.addi %1, %c2_i32_290 : i32
    %c0_291 = arith.constant 0 : index
    %c2_292 = arith.constant 2 : index
    %1367 = arith.index_cast %1366 : i32 to index
    %c2_293 = arith.constant 2 : index
    %1368 = vector.load %arg6[%c0_291, %c2_292, %1367, %c2_293] : memref<1x4x18x18xf32, #tpu.memory_space<vmem>>, vector<1x1x8x16xf32>
    %1369 = vector.shape_cast %1368 : vector<1x1x8x16xf32> to vector<8x16xf32>
    %c0_i32_294 = arith.constant 0 : i32
    %1370 = arith.addi %2, %c0_i32_294 : i32
    %c26_i32 = arith.constant 26 : i32
    %1371 = arith.addi %1370, %c26_i32 : i32
    %1372 = arith.index_cast %1371 : i32 to index
    %1373 = memref.load %arg3[%1372] : memref<144xf32, #tpu.memory_space<smem>>
    %1374 = arith.index_cast %1371 : i32 to index
    %1375 = memref.load %arg4[%1374] : memref<144xf32, #tpu.memory_space<smem>>
    %1376 = vector.broadcast %1373 : f32 to vector<8x16xf32>
    %1377 = arith.mulf %1369, %1376 : vector<8x16xf32>
    %1378 = arith.addf %1326, %1377 : vector<8x16xf32>
    %1379 = vector.broadcast %1375 : f32 to vector<8x16xf32>
    %1380 = arith.mulf %1369, %1379 : vector<8x16xf32>
    %1381 = arith.addf %1329, %1380 : vector<8x16xf32>
    %c36_i32_295 = arith.constant 36 : i32
    %1382 = arith.addi %2, %c36_i32_295 : i32
    %c26_i32_296 = arith.constant 26 : i32
    %1383 = arith.addi %1382, %c26_i32_296 : i32
    %1384 = arith.index_cast %1383 : i32 to index
    %1385 = memref.load %arg3[%1384] : memref<144xf32, #tpu.memory_space<smem>>
    %1386 = arith.index_cast %1383 : i32 to index
    %1387 = memref.load %arg4[%1386] : memref<144xf32, #tpu.memory_space<smem>>
    %1388 = vector.broadcast %1385 : f32 to vector<8x16xf32>
    %1389 = arith.mulf %1369, %1388 : vector<8x16xf32>
    %1390 = arith.addf %1338, %1389 : vector<8x16xf32>
    %1391 = vector.broadcast %1387 : f32 to vector<8x16xf32>
    %1392 = arith.mulf %1369, %1391 : vector<8x16xf32>
    %1393 = arith.addf %1341, %1392 : vector<8x16xf32>
    %c72_i32_297 = arith.constant 72 : i32
    %1394 = arith.addi %2, %c72_i32_297 : i32
    %c26_i32_298 = arith.constant 26 : i32
    %1395 = arith.addi %1394, %c26_i32_298 : i32
    %1396 = arith.index_cast %1395 : i32 to index
    %1397 = memref.load %arg3[%1396] : memref<144xf32, #tpu.memory_space<smem>>
    %1398 = arith.index_cast %1395 : i32 to index
    %1399 = memref.load %arg4[%1398] : memref<144xf32, #tpu.memory_space<smem>>
    %1400 = vector.broadcast %1397 : f32 to vector<8x16xf32>
    %1401 = arith.mulf %1369, %1400 : vector<8x16xf32>
    %1402 = arith.addf %1350, %1401 : vector<8x16xf32>
    %1403 = vector.broadcast %1399 : f32 to vector<8x16xf32>
    %1404 = arith.mulf %1369, %1403 : vector<8x16xf32>
    %1405 = arith.addf %1353, %1404 : vector<8x16xf32>
    %c108_i32_299 = arith.constant 108 : i32
    %1406 = arith.addi %2, %c108_i32_299 : i32
    %c26_i32_300 = arith.constant 26 : i32
    %1407 = arith.addi %1406, %c26_i32_300 : i32
    %1408 = arith.index_cast %1407 : i32 to index
    %1409 = memref.load %arg3[%1408] : memref<144xf32, #tpu.memory_space<smem>>
    %1410 = arith.index_cast %1407 : i32 to index
    %1411 = memref.load %arg4[%1410] : memref<144xf32, #tpu.memory_space<smem>>
    %1412 = vector.broadcast %1409 : f32 to vector<8x16xf32>
    %1413 = arith.mulf %1369, %1412 : vector<8x16xf32>
    %1414 = arith.addf %1362, %1413 : vector<8x16xf32>
    %1415 = vector.broadcast %1411 : f32 to vector<8x16xf32>
    %1416 = arith.mulf %1369, %1415 : vector<8x16xf32>
    %1417 = arith.addf %1365, %1416 : vector<8x16xf32>
    %c0_i32_301 = arith.constant 0 : i32
    %1418 = arith.addi %1, %c0_i32_301 : i32
    %c0_302 = arith.constant 0 : index
    %c3 = arith.constant 3 : index
    %1419 = arith.index_cast %1418 : i32 to index
    %c0_303 = arith.constant 0 : index
    %1420 = vector.load %arg6[%c0_302, %c3, %1419, %c0_303] : memref<1x4x18x18xf32, #tpu.memory_space<vmem>>, vector<1x1x8x16xf32>
    %1421 = vector.shape_cast %1420 : vector<1x1x8x16xf32> to vector<8x16xf32>
    %c0_i32_304 = arith.constant 0 : i32
    %1422 = arith.addi %2, %c0_i32_304 : i32
    %c27_i32 = arith.constant 27 : i32
    %1423 = arith.addi %1422, %c27_i32 : i32
    %1424 = arith.index_cast %1423 : i32 to index
    %1425 = memref.load %arg3[%1424] : memref<144xf32, #tpu.memory_space<smem>>
    %1426 = arith.index_cast %1423 : i32 to index
    %1427 = memref.load %arg4[%1426] : memref<144xf32, #tpu.memory_space<smem>>
    %1428 = vector.broadcast %1425 : f32 to vector<8x16xf32>
    %1429 = arith.mulf %1421, %1428 : vector<8x16xf32>
    %1430 = arith.addf %1378, %1429 : vector<8x16xf32>
    %1431 = vector.broadcast %1427 : f32 to vector<8x16xf32>
    %1432 = arith.mulf %1421, %1431 : vector<8x16xf32>
    %1433 = arith.addf %1381, %1432 : vector<8x16xf32>
    %c36_i32_305 = arith.constant 36 : i32
    %1434 = arith.addi %2, %c36_i32_305 : i32
    %c27_i32_306 = arith.constant 27 : i32
    %1435 = arith.addi %1434, %c27_i32_306 : i32
    %1436 = arith.index_cast %1435 : i32 to index
    %1437 = memref.load %arg3[%1436] : memref<144xf32, #tpu.memory_space<smem>>
    %1438 = arith.index_cast %1435 : i32 to index
    %1439 = memref.load %arg4[%1438] : memref<144xf32, #tpu.memory_space<smem>>
    %1440 = vector.broadcast %1437 : f32 to vector<8x16xf32>
    %1441 = arith.mulf %1421, %1440 : vector<8x16xf32>
    %1442 = arith.addf %1390, %1441 : vector<8x16xf32>
    %1443 = vector.broadcast %1439 : f32 to vector<8x16xf32>
    %1444 = arith.mulf %1421, %1443 : vector<8x16xf32>
    %1445 = arith.addf %1393, %1444 : vector<8x16xf32>
    %c72_i32_307 = arith.constant 72 : i32
    %1446 = arith.addi %2, %c72_i32_307 : i32
    %c27_i32_308 = arith.constant 27 : i32
    %1447 = arith.addi %1446, %c27_i32_308 : i32
    %1448 = arith.index_cast %1447 : i32 to index
    %1449 = memref.load %arg3[%1448] : memref<144xf32, #tpu.memory_space<smem>>
    %1450 = arith.index_cast %1447 : i32 to index
    %1451 = memref.load %arg4[%1450] : memref<144xf32, #tpu.memory_space<smem>>
    %1452 = vector.broadcast %1449 : f32 to vector<8x16xf32>
    %1453 = arith.mulf %1421, %1452 : vector<8x16xf32>
    %1454 = arith.addf %1402, %1453 : vector<8x16xf32>
    %1455 = vector.broadcast %1451 : f32 to vector<8x16xf32>
    %1456 = arith.mulf %1421, %1455 : vector<8x16xf32>
    %1457 = arith.addf %1405, %1456 : vector<8x16xf32>
    %c108_i32_309 = arith.constant 108 : i32
    %1458 = arith.addi %2, %c108_i32_309 : i32
    %c27_i32_310 = arith.constant 27 : i32
    %1459 = arith.addi %1458, %c27_i32_310 : i32
    %1460 = arith.index_cast %1459 : i32 to index
    %1461 = memref.load %arg3[%1460] : memref<144xf32, #tpu.memory_space<smem>>
    %1462 = arith.index_cast %1459 : i32 to index
    %1463 = memref.load %arg4[%1462] : memref<144xf32, #tpu.memory_space<smem>>
    %1464 = vector.broadcast %1461 : f32 to vector<8x16xf32>
    %1465 = arith.mulf %1421, %1464 : vector<8x16xf32>
    %1466 = arith.addf %1414, %1465 : vector<8x16xf32>
    %1467 = vector.broadcast %1463 : f32 to vector<8x16xf32>
    %1468 = arith.mulf %1421, %1467 : vector<8x16xf32>
    %1469 = arith.addf %1417, %1468 : vector<8x16xf32>
    %c0_i32_311 = arith.constant 0 : i32
    %1470 = arith.addi %1, %c0_i32_311 : i32
    %c0_312 = arith.constant 0 : index
    %c3_313 = arith.constant 3 : index
    %1471 = arith.index_cast %1470 : i32 to index
    %c1_314 = arith.constant 1 : index
    %1472 = vector.load %arg6[%c0_312, %c3_313, %1471, %c1_314] : memref<1x4x18x18xf32, #tpu.memory_space<vmem>>, vector<1x1x8x16xf32>
    %1473 = vector.shape_cast %1472 : vector<1x1x8x16xf32> to vector<8x16xf32>
    %c0_i32_315 = arith.constant 0 : i32
    %1474 = arith.addi %2, %c0_i32_315 : i32
    %c28_i32 = arith.constant 28 : i32
    %1475 = arith.addi %1474, %c28_i32 : i32
    %1476 = arith.index_cast %1475 : i32 to index
    %1477 = memref.load %arg3[%1476] : memref<144xf32, #tpu.memory_space<smem>>
    %1478 = arith.index_cast %1475 : i32 to index
    %1479 = memref.load %arg4[%1478] : memref<144xf32, #tpu.memory_space<smem>>
    %1480 = vector.broadcast %1477 : f32 to vector<8x16xf32>
    %1481 = arith.mulf %1473, %1480 : vector<8x16xf32>
    %1482 = arith.addf %1430, %1481 : vector<8x16xf32>
    %1483 = vector.broadcast %1479 : f32 to vector<8x16xf32>
    %1484 = arith.mulf %1473, %1483 : vector<8x16xf32>
    %1485 = arith.addf %1433, %1484 : vector<8x16xf32>
    %c36_i32_316 = arith.constant 36 : i32
    %1486 = arith.addi %2, %c36_i32_316 : i32
    %c28_i32_317 = arith.constant 28 : i32
    %1487 = arith.addi %1486, %c28_i32_317 : i32
    %1488 = arith.index_cast %1487 : i32 to index
    %1489 = memref.load %arg3[%1488] : memref<144xf32, #tpu.memory_space<smem>>
    %1490 = arith.index_cast %1487 : i32 to index
    %1491 = memref.load %arg4[%1490] : memref<144xf32, #tpu.memory_space<smem>>
    %1492 = vector.broadcast %1489 : f32 to vector<8x16xf32>
    %1493 = arith.mulf %1473, %1492 : vector<8x16xf32>
    %1494 = arith.addf %1442, %1493 : vector<8x16xf32>
    %1495 = vector.broadcast %1491 : f32 to vector<8x16xf32>
    %1496 = arith.mulf %1473, %1495 : vector<8x16xf32>
    %1497 = arith.addf %1445, %1496 : vector<8x16xf32>
    %c72_i32_318 = arith.constant 72 : i32
    %1498 = arith.addi %2, %c72_i32_318 : i32
    %c28_i32_319 = arith.constant 28 : i32
    %1499 = arith.addi %1498, %c28_i32_319 : i32
    %1500 = arith.index_cast %1499 : i32 to index
    %1501 = memref.load %arg3[%1500] : memref<144xf32, #tpu.memory_space<smem>>
    %1502 = arith.index_cast %1499 : i32 to index
    %1503 = memref.load %arg4[%1502] : memref<144xf32, #tpu.memory_space<smem>>
    %1504 = vector.broadcast %1501 : f32 to vector<8x16xf32>
    %1505 = arith.mulf %1473, %1504 : vector<8x16xf32>
    %1506 = arith.addf %1454, %1505 : vector<8x16xf32>
    %1507 = vector.broadcast %1503 : f32 to vector<8x16xf32>
    %1508 = arith.mulf %1473, %1507 : vector<8x16xf32>
    %1509 = arith.addf %1457, %1508 : vector<8x16xf32>
    %c108_i32_320 = arith.constant 108 : i32
    %1510 = arith.addi %2, %c108_i32_320 : i32
    %c28_i32_321 = arith.constant 28 : i32
    %1511 = arith.addi %1510, %c28_i32_321 : i32
    %1512 = arith.index_cast %1511 : i32 to index
    %1513 = memref.load %arg3[%1512] : memref<144xf32, #tpu.memory_space<smem>>
    %1514 = arith.index_cast %1511 : i32 to index
    %1515 = memref.load %arg4[%1514] : memref<144xf32, #tpu.memory_space<smem>>
    %1516 = vector.broadcast %1513 : f32 to vector<8x16xf32>
    %1517 = arith.mulf %1473, %1516 : vector<8x16xf32>
    %1518 = arith.addf %1466, %1517 : vector<8x16xf32>
    %1519 = vector.broadcast %1515 : f32 to vector<8x16xf32>
    %1520 = arith.mulf %1473, %1519 : vector<8x16xf32>
    %1521 = arith.addf %1469, %1520 : vector<8x16xf32>
    %c0_i32_322 = arith.constant 0 : i32
    %1522 = arith.addi %1, %c0_i32_322 : i32
    %c0_323 = arith.constant 0 : index
    %c3_324 = arith.constant 3 : index
    %1523 = arith.index_cast %1522 : i32 to index
    %c2_325 = arith.constant 2 : index
    %1524 = vector.load %arg6[%c0_323, %c3_324, %1523, %c2_325] : memref<1x4x18x18xf32, #tpu.memory_space<vmem>>, vector<1x1x8x16xf32>
    %1525 = vector.shape_cast %1524 : vector<1x1x8x16xf32> to vector<8x16xf32>
    %c0_i32_326 = arith.constant 0 : i32
    %1526 = arith.addi %2, %c0_i32_326 : i32
    %c29_i32 = arith.constant 29 : i32
    %1527 = arith.addi %1526, %c29_i32 : i32
    %1528 = arith.index_cast %1527 : i32 to index
    %1529 = memref.load %arg3[%1528] : memref<144xf32, #tpu.memory_space<smem>>
    %1530 = arith.index_cast %1527 : i32 to index
    %1531 = memref.load %arg4[%1530] : memref<144xf32, #tpu.memory_space<smem>>
    %1532 = vector.broadcast %1529 : f32 to vector<8x16xf32>
    %1533 = arith.mulf %1525, %1532 : vector<8x16xf32>
    %1534 = arith.addf %1482, %1533 : vector<8x16xf32>
    %1535 = vector.broadcast %1531 : f32 to vector<8x16xf32>
    %1536 = arith.mulf %1525, %1535 : vector<8x16xf32>
    %1537 = arith.addf %1485, %1536 : vector<8x16xf32>
    %c36_i32_327 = arith.constant 36 : i32
    %1538 = arith.addi %2, %c36_i32_327 : i32
    %c29_i32_328 = arith.constant 29 : i32
    %1539 = arith.addi %1538, %c29_i32_328 : i32
    %1540 = arith.index_cast %1539 : i32 to index
    %1541 = memref.load %arg3[%1540] : memref<144xf32, #tpu.memory_space<smem>>
    %1542 = arith.index_cast %1539 : i32 to index
    %1543 = memref.load %arg4[%1542] : memref<144xf32, #tpu.memory_space<smem>>
    %1544 = vector.broadcast %1541 : f32 to vector<8x16xf32>
    %1545 = arith.mulf %1525, %1544 : vector<8x16xf32>
    %1546 = arith.addf %1494, %1545 : vector<8x16xf32>
    %1547 = vector.broadcast %1543 : f32 to vector<8x16xf32>
    %1548 = arith.mulf %1525, %1547 : vector<8x16xf32>
    %1549 = arith.addf %1497, %1548 : vector<8x16xf32>
    %c72_i32_329 = arith.constant 72 : i32
    %1550 = arith.addi %2, %c72_i32_329 : i32
    %c29_i32_330 = arith.constant 29 : i32
    %1551 = arith.addi %1550, %c29_i32_330 : i32
    %1552 = arith.index_cast %1551 : i32 to index
    %1553 = memref.load %arg3[%1552] : memref<144xf32, #tpu.memory_space<smem>>
    %1554 = arith.index_cast %1551 : i32 to index
    %1555 = memref.load %arg4[%1554] : memref<144xf32, #tpu.memory_space<smem>>
    %1556 = vector.broadcast %1553 : f32 to vector<8x16xf32>
    %1557 = arith.mulf %1525, %1556 : vector<8x16xf32>
    %1558 = arith.addf %1506, %1557 : vector<8x16xf32>
    %1559 = vector.broadcast %1555 : f32 to vector<8x16xf32>
    %1560 = arith.mulf %1525, %1559 : vector<8x16xf32>
    %1561 = arith.addf %1509, %1560 : vector<8x16xf32>
    %c108_i32_331 = arith.constant 108 : i32
    %1562 = arith.addi %2, %c108_i32_331 : i32
    %c29_i32_332 = arith.constant 29 : i32
    %1563 = arith.addi %1562, %c29_i32_332 : i32
    %1564 = arith.index_cast %1563 : i32 to index
    %1565 = memref.load %arg3[%1564] : memref<144xf32, #tpu.memory_space<smem>>
    %1566 = arith.index_cast %1563 : i32 to index
    %1567 = memref.load %arg4[%1566] : memref<144xf32, #tpu.memory_space<smem>>
    %1568 = vector.broadcast %1565 : f32 to vector<8x16xf32>
    %1569 = arith.mulf %1525, %1568 : vector<8x16xf32>
    %1570 = arith.addf %1518, %1569 : vector<8x16xf32>
    %1571 = vector.broadcast %1567 : f32 to vector<8x16xf32>
    %1572 = arith.mulf %1525, %1571 : vector<8x16xf32>
    %1573 = arith.addf %1521, %1572 : vector<8x16xf32>
    %c1_i32_333 = arith.constant 1 : i32
    %1574 = arith.addi %1, %c1_i32_333 : i32
    %c0_334 = arith.constant 0 : index
    %c3_335 = arith.constant 3 : index
    %1575 = arith.index_cast %1574 : i32 to index
    %c0_336 = arith.constant 0 : index
    %1576 = vector.load %arg6[%c0_334, %c3_335, %1575, %c0_336] : memref<1x4x18x18xf32, #tpu.memory_space<vmem>>, vector<1x1x8x16xf32>
    %1577 = vector.shape_cast %1576 : vector<1x1x8x16xf32> to vector<8x16xf32>
    %c0_i32_337 = arith.constant 0 : i32
    %1578 = arith.addi %2, %c0_i32_337 : i32
    %c30_i32 = arith.constant 30 : i32
    %1579 = arith.addi %1578, %c30_i32 : i32
    %1580 = arith.index_cast %1579 : i32 to index
    %1581 = memref.load %arg3[%1580] : memref<144xf32, #tpu.memory_space<smem>>
    %1582 = arith.index_cast %1579 : i32 to index
    %1583 = memref.load %arg4[%1582] : memref<144xf32, #tpu.memory_space<smem>>
    %1584 = vector.broadcast %1581 : f32 to vector<8x16xf32>
    %1585 = arith.mulf %1577, %1584 : vector<8x16xf32>
    %1586 = arith.addf %1534, %1585 : vector<8x16xf32>
    %1587 = vector.broadcast %1583 : f32 to vector<8x16xf32>
    %1588 = arith.mulf %1577, %1587 : vector<8x16xf32>
    %1589 = arith.addf %1537, %1588 : vector<8x16xf32>
    %c36_i32_338 = arith.constant 36 : i32
    %1590 = arith.addi %2, %c36_i32_338 : i32
    %c30_i32_339 = arith.constant 30 : i32
    %1591 = arith.addi %1590, %c30_i32_339 : i32
    %1592 = arith.index_cast %1591 : i32 to index
    %1593 = memref.load %arg3[%1592] : memref<144xf32, #tpu.memory_space<smem>>
    %1594 = arith.index_cast %1591 : i32 to index
    %1595 = memref.load %arg4[%1594] : memref<144xf32, #tpu.memory_space<smem>>
    %1596 = vector.broadcast %1593 : f32 to vector<8x16xf32>
    %1597 = arith.mulf %1577, %1596 : vector<8x16xf32>
    %1598 = arith.addf %1546, %1597 : vector<8x16xf32>
    %1599 = vector.broadcast %1595 : f32 to vector<8x16xf32>
    %1600 = arith.mulf %1577, %1599 : vector<8x16xf32>
    %1601 = arith.addf %1549, %1600 : vector<8x16xf32>
    %c72_i32_340 = arith.constant 72 : i32
    %1602 = arith.addi %2, %c72_i32_340 : i32
    %c30_i32_341 = arith.constant 30 : i32
    %1603 = arith.addi %1602, %c30_i32_341 : i32
    %1604 = arith.index_cast %1603 : i32 to index
    %1605 = memref.load %arg3[%1604] : memref<144xf32, #tpu.memory_space<smem>>
    %1606 = arith.index_cast %1603 : i32 to index
    %1607 = memref.load %arg4[%1606] : memref<144xf32, #tpu.memory_space<smem>>
    %1608 = vector.broadcast %1605 : f32 to vector<8x16xf32>
    %1609 = arith.mulf %1577, %1608 : vector<8x16xf32>
    %1610 = arith.addf %1558, %1609 : vector<8x16xf32>
    %1611 = vector.broadcast %1607 : f32 to vector<8x16xf32>
    %1612 = arith.mulf %1577, %1611 : vector<8x16xf32>
    %1613 = arith.addf %1561, %1612 : vector<8x16xf32>
    %c108_i32_342 = arith.constant 108 : i32
    %1614 = arith.addi %2, %c108_i32_342 : i32
    %c30_i32_343 = arith.constant 30 : i32
    %1615 = arith.addi %1614, %c30_i32_343 : i32
    %1616 = arith.index_cast %1615 : i32 to index
    %1617 = memref.load %arg3[%1616] : memref<144xf32, #tpu.memory_space<smem>>
    %1618 = arith.index_cast %1615 : i32 to index
    %1619 = memref.load %arg4[%1618] : memref<144xf32, #tpu.memory_space<smem>>
    %1620 = vector.broadcast %1617 : f32 to vector<8x16xf32>
    %1621 = arith.mulf %1577, %1620 : vector<8x16xf32>
    %1622 = arith.addf %1570, %1621 : vector<8x16xf32>
    %1623 = vector.broadcast %1619 : f32 to vector<8x16xf32>
    %1624 = arith.mulf %1577, %1623 : vector<8x16xf32>
    %1625 = arith.addf %1573, %1624 : vector<8x16xf32>
    %c1_i32_344 = arith.constant 1 : i32
    %1626 = arith.addi %1, %c1_i32_344 : i32
    %c0_345 = arith.constant 0 : index
    %c3_346 = arith.constant 3 : index
    %1627 = arith.index_cast %1626 : i32 to index
    %c1_347 = arith.constant 1 : index
    %1628 = vector.load %arg6[%c0_345, %c3_346, %1627, %c1_347] : memref<1x4x18x18xf32, #tpu.memory_space<vmem>>, vector<1x1x8x16xf32>
    %1629 = vector.shape_cast %1628 : vector<1x1x8x16xf32> to vector<8x16xf32>
    %c0_i32_348 = arith.constant 0 : i32
    %1630 = arith.addi %2, %c0_i32_348 : i32
    %c31_i32 = arith.constant 31 : i32
    %1631 = arith.addi %1630, %c31_i32 : i32
    %1632 = arith.index_cast %1631 : i32 to index
    %1633 = memref.load %arg3[%1632] : memref<144xf32, #tpu.memory_space<smem>>
    %1634 = arith.index_cast %1631 : i32 to index
    %1635 = memref.load %arg4[%1634] : memref<144xf32, #tpu.memory_space<smem>>
    %1636 = vector.broadcast %1633 : f32 to vector<8x16xf32>
    %1637 = arith.mulf %1629, %1636 : vector<8x16xf32>
    %1638 = arith.addf %1586, %1637 : vector<8x16xf32>
    %1639 = vector.broadcast %1635 : f32 to vector<8x16xf32>
    %1640 = arith.mulf %1629, %1639 : vector<8x16xf32>
    %1641 = arith.addf %1589, %1640 : vector<8x16xf32>
    %c36_i32_349 = arith.constant 36 : i32
    %1642 = arith.addi %2, %c36_i32_349 : i32
    %c31_i32_350 = arith.constant 31 : i32
    %1643 = arith.addi %1642, %c31_i32_350 : i32
    %1644 = arith.index_cast %1643 : i32 to index
    %1645 = memref.load %arg3[%1644] : memref<144xf32, #tpu.memory_space<smem>>
    %1646 = arith.index_cast %1643 : i32 to index
    %1647 = memref.load %arg4[%1646] : memref<144xf32, #tpu.memory_space<smem>>
    %1648 = vector.broadcast %1645 : f32 to vector<8x16xf32>
    %1649 = arith.mulf %1629, %1648 : vector<8x16xf32>
    %1650 = arith.addf %1598, %1649 : vector<8x16xf32>
    %1651 = vector.broadcast %1647 : f32 to vector<8x16xf32>
    %1652 = arith.mulf %1629, %1651 : vector<8x16xf32>
    %1653 = arith.addf %1601, %1652 : vector<8x16xf32>
    %c72_i32_351 = arith.constant 72 : i32
    %1654 = arith.addi %2, %c72_i32_351 : i32
    %c31_i32_352 = arith.constant 31 : i32
    %1655 = arith.addi %1654, %c31_i32_352 : i32
    %1656 = arith.index_cast %1655 : i32 to index
    %1657 = memref.load %arg3[%1656] : memref<144xf32, #tpu.memory_space<smem>>
    %1658 = arith.index_cast %1655 : i32 to index
    %1659 = memref.load %arg4[%1658] : memref<144xf32, #tpu.memory_space<smem>>
    %1660 = vector.broadcast %1657 : f32 to vector<8x16xf32>
    %1661 = arith.mulf %1629, %1660 : vector<8x16xf32>
    %1662 = arith.addf %1610, %1661 : vector<8x16xf32>
    %1663 = vector.broadcast %1659 : f32 to vector<8x16xf32>
    %1664 = arith.mulf %1629, %1663 : vector<8x16xf32>
    %1665 = arith.addf %1613, %1664 : vector<8x16xf32>
    %c108_i32_353 = arith.constant 108 : i32
    %1666 = arith.addi %2, %c108_i32_353 : i32
    %c31_i32_354 = arith.constant 31 : i32
    %1667 = arith.addi %1666, %c31_i32_354 : i32
    %1668 = arith.index_cast %1667 : i32 to index
    %1669 = memref.load %arg3[%1668] : memref<144xf32, #tpu.memory_space<smem>>
    %1670 = arith.index_cast %1667 : i32 to index
    %1671 = memref.load %arg4[%1670] : memref<144xf32, #tpu.memory_space<smem>>
    %1672 = vector.broadcast %1669 : f32 to vector<8x16xf32>
    %1673 = arith.mulf %1629, %1672 : vector<8x16xf32>
    %1674 = arith.addf %1622, %1673 : vector<8x16xf32>
    %1675 = vector.broadcast %1671 : f32 to vector<8x16xf32>
    %1676 = arith.mulf %1629, %1675 : vector<8x16xf32>
    %1677 = arith.addf %1625, %1676 : vector<8x16xf32>
    %c1_i32_355 = arith.constant 1 : i32
    %1678 = arith.addi %1, %c1_i32_355 : i32
    %c0_356 = arith.constant 0 : index
    %c3_357 = arith.constant 3 : index
    %1679 = arith.index_cast %1678 : i32 to index
    %c2_358 = arith.constant 2 : index
    %1680 = vector.load %arg6[%c0_356, %c3_357, %1679, %c2_358] : memref<1x4x18x18xf32, #tpu.memory_space<vmem>>, vector<1x1x8x16xf32>
    %1681 = vector.shape_cast %1680 : vector<1x1x8x16xf32> to vector<8x16xf32>
    %c0_i32_359 = arith.constant 0 : i32
    %1682 = arith.addi %2, %c0_i32_359 : i32
    %c32_i32 = arith.constant 32 : i32
    %1683 = arith.addi %1682, %c32_i32 : i32
    %1684 = arith.index_cast %1683 : i32 to index
    %1685 = memref.load %arg3[%1684] : memref<144xf32, #tpu.memory_space<smem>>
    %1686 = arith.index_cast %1683 : i32 to index
    %1687 = memref.load %arg4[%1686] : memref<144xf32, #tpu.memory_space<smem>>
    %1688 = vector.broadcast %1685 : f32 to vector<8x16xf32>
    %1689 = arith.mulf %1681, %1688 : vector<8x16xf32>
    %1690 = arith.addf %1638, %1689 : vector<8x16xf32>
    %1691 = vector.broadcast %1687 : f32 to vector<8x16xf32>
    %1692 = arith.mulf %1681, %1691 : vector<8x16xf32>
    %1693 = arith.addf %1641, %1692 : vector<8x16xf32>
    %c36_i32_360 = arith.constant 36 : i32
    %1694 = arith.addi %2, %c36_i32_360 : i32
    %c32_i32_361 = arith.constant 32 : i32
    %1695 = arith.addi %1694, %c32_i32_361 : i32
    %1696 = arith.index_cast %1695 : i32 to index
    %1697 = memref.load %arg3[%1696] : memref<144xf32, #tpu.memory_space<smem>>
    %1698 = arith.index_cast %1695 : i32 to index
    %1699 = memref.load %arg4[%1698] : memref<144xf32, #tpu.memory_space<smem>>
    %1700 = vector.broadcast %1697 : f32 to vector<8x16xf32>
    %1701 = arith.mulf %1681, %1700 : vector<8x16xf32>
    %1702 = arith.addf %1650, %1701 : vector<8x16xf32>
    %1703 = vector.broadcast %1699 : f32 to vector<8x16xf32>
    %1704 = arith.mulf %1681, %1703 : vector<8x16xf32>
    %1705 = arith.addf %1653, %1704 : vector<8x16xf32>
    %c72_i32_362 = arith.constant 72 : i32
    %1706 = arith.addi %2, %c72_i32_362 : i32
    %c32_i32_363 = arith.constant 32 : i32
    %1707 = arith.addi %1706, %c32_i32_363 : i32
    %1708 = arith.index_cast %1707 : i32 to index
    %1709 = memref.load %arg3[%1708] : memref<144xf32, #tpu.memory_space<smem>>
    %1710 = arith.index_cast %1707 : i32 to index
    %1711 = memref.load %arg4[%1710] : memref<144xf32, #tpu.memory_space<smem>>
    %1712 = vector.broadcast %1709 : f32 to vector<8x16xf32>
    %1713 = arith.mulf %1681, %1712 : vector<8x16xf32>
    %1714 = arith.addf %1662, %1713 : vector<8x16xf32>
    %1715 = vector.broadcast %1711 : f32 to vector<8x16xf32>
    %1716 = arith.mulf %1681, %1715 : vector<8x16xf32>
    %1717 = arith.addf %1665, %1716 : vector<8x16xf32>
    %c108_i32_364 = arith.constant 108 : i32
    %1718 = arith.addi %2, %c108_i32_364 : i32
    %c32_i32_365 = arith.constant 32 : i32
    %1719 = arith.addi %1718, %c32_i32_365 : i32
    %1720 = arith.index_cast %1719 : i32 to index
    %1721 = memref.load %arg3[%1720] : memref<144xf32, #tpu.memory_space<smem>>
    %1722 = arith.index_cast %1719 : i32 to index
    %1723 = memref.load %arg4[%1722] : memref<144xf32, #tpu.memory_space<smem>>
    %1724 = vector.broadcast %1721 : f32 to vector<8x16xf32>
    %1725 = arith.mulf %1681, %1724 : vector<8x16xf32>
    %1726 = arith.addf %1674, %1725 : vector<8x16xf32>
    %1727 = vector.broadcast %1723 : f32 to vector<8x16xf32>
    %1728 = arith.mulf %1681, %1727 : vector<8x16xf32>
    %1729 = arith.addf %1677, %1728 : vector<8x16xf32>
    %c2_i32_366 = arith.constant 2 : i32
    %1730 = arith.addi %1, %c2_i32_366 : i32
    %c0_367 = arith.constant 0 : index
    %c3_368 = arith.constant 3 : index
    %1731 = arith.index_cast %1730 : i32 to index
    %c0_369 = arith.constant 0 : index
    %1732 = vector.load %arg6[%c0_367, %c3_368, %1731, %c0_369] : memref<1x4x18x18xf32, #tpu.memory_space<vmem>>, vector<1x1x8x16xf32>
    %1733 = vector.shape_cast %1732 : vector<1x1x8x16xf32> to vector<8x16xf32>
    %c0_i32_370 = arith.constant 0 : i32
    %1734 = arith.addi %2, %c0_i32_370 : i32
    %c33_i32 = arith.constant 33 : i32
    %1735 = arith.addi %1734, %c33_i32 : i32
    %1736 = arith.index_cast %1735 : i32 to index
    %1737 = memref.load %arg3[%1736] : memref<144xf32, #tpu.memory_space<smem>>
    %1738 = arith.index_cast %1735 : i32 to index
    %1739 = memref.load %arg4[%1738] : memref<144xf32, #tpu.memory_space<smem>>
    %1740 = vector.broadcast %1737 : f32 to vector<8x16xf32>
    %1741 = arith.mulf %1733, %1740 : vector<8x16xf32>
    %1742 = arith.addf %1690, %1741 : vector<8x16xf32>
    %1743 = vector.broadcast %1739 : f32 to vector<8x16xf32>
    %1744 = arith.mulf %1733, %1743 : vector<8x16xf32>
    %1745 = arith.addf %1693, %1744 : vector<8x16xf32>
    %c36_i32_371 = arith.constant 36 : i32
    %1746 = arith.addi %2, %c36_i32_371 : i32
    %c33_i32_372 = arith.constant 33 : i32
    %1747 = arith.addi %1746, %c33_i32_372 : i32
    %1748 = arith.index_cast %1747 : i32 to index
    %1749 = memref.load %arg3[%1748] : memref<144xf32, #tpu.memory_space<smem>>
    %1750 = arith.index_cast %1747 : i32 to index
    %1751 = memref.load %arg4[%1750] : memref<144xf32, #tpu.memory_space<smem>>
    %1752 = vector.broadcast %1749 : f32 to vector<8x16xf32>
    %1753 = arith.mulf %1733, %1752 : vector<8x16xf32>
    %1754 = arith.addf %1702, %1753 : vector<8x16xf32>
    %1755 = vector.broadcast %1751 : f32 to vector<8x16xf32>
    %1756 = arith.mulf %1733, %1755 : vector<8x16xf32>
    %1757 = arith.addf %1705, %1756 : vector<8x16xf32>
    %c72_i32_373 = arith.constant 72 : i32
    %1758 = arith.addi %2, %c72_i32_373 : i32
    %c33_i32_374 = arith.constant 33 : i32
    %1759 = arith.addi %1758, %c33_i32_374 : i32
    %1760 = arith.index_cast %1759 : i32 to index
    %1761 = memref.load %arg3[%1760] : memref<144xf32, #tpu.memory_space<smem>>
    %1762 = arith.index_cast %1759 : i32 to index
    %1763 = memref.load %arg4[%1762] : memref<144xf32, #tpu.memory_space<smem>>
    %1764 = vector.broadcast %1761 : f32 to vector<8x16xf32>
    %1765 = arith.mulf %1733, %1764 : vector<8x16xf32>
    %1766 = arith.addf %1714, %1765 : vector<8x16xf32>
    %1767 = vector.broadcast %1763 : f32 to vector<8x16xf32>
    %1768 = arith.mulf %1733, %1767 : vector<8x16xf32>
    %1769 = arith.addf %1717, %1768 : vector<8x16xf32>
    %c108_i32_375 = arith.constant 108 : i32
    %1770 = arith.addi %2, %c108_i32_375 : i32
    %c33_i32_376 = arith.constant 33 : i32
    %1771 = arith.addi %1770, %c33_i32_376 : i32
    %1772 = arith.index_cast %1771 : i32 to index
    %1773 = memref.load %arg3[%1772] : memref<144xf32, #tpu.memory_space<smem>>
    %1774 = arith.index_cast %1771 : i32 to index
    %1775 = memref.load %arg4[%1774] : memref<144xf32, #tpu.memory_space<smem>>
    %1776 = vector.broadcast %1773 : f32 to vector<8x16xf32>
    %1777 = arith.mulf %1733, %1776 : vector<8x16xf32>
    %1778 = arith.addf %1726, %1777 : vector<8x16xf32>
    %1779 = vector.broadcast %1775 : f32 to vector<8x16xf32>
    %1780 = arith.mulf %1733, %1779 : vector<8x16xf32>
    %1781 = arith.addf %1729, %1780 : vector<8x16xf32>
    %c2_i32_377 = arith.constant 2 : i32
    %1782 = arith.addi %1, %c2_i32_377 : i32
    %c0_378 = arith.constant 0 : index
    %c3_379 = arith.constant 3 : index
    %1783 = arith.index_cast %1782 : i32 to index
    %c1_380 = arith.constant 1 : index
    %1784 = vector.load %arg6[%c0_378, %c3_379, %1783, %c1_380] : memref<1x4x18x18xf32, #tpu.memory_space<vmem>>, vector<1x1x8x16xf32>
    %1785 = vector.shape_cast %1784 : vector<1x1x8x16xf32> to vector<8x16xf32>
    %c0_i32_381 = arith.constant 0 : i32
    %1786 = arith.addi %2, %c0_i32_381 : i32
    %c34_i32 = arith.constant 34 : i32
    %1787 = arith.addi %1786, %c34_i32 : i32
    %1788 = arith.index_cast %1787 : i32 to index
    %1789 = memref.load %arg3[%1788] : memref<144xf32, #tpu.memory_space<smem>>
    %1790 = arith.index_cast %1787 : i32 to index
    %1791 = memref.load %arg4[%1790] : memref<144xf32, #tpu.memory_space<smem>>
    %1792 = vector.broadcast %1789 : f32 to vector<8x16xf32>
    %1793 = arith.mulf %1785, %1792 : vector<8x16xf32>
    %1794 = arith.addf %1742, %1793 : vector<8x16xf32>
    %1795 = vector.broadcast %1791 : f32 to vector<8x16xf32>
    %1796 = arith.mulf %1785, %1795 : vector<8x16xf32>
    %1797 = arith.addf %1745, %1796 : vector<8x16xf32>
    %c36_i32_382 = arith.constant 36 : i32
    %1798 = arith.addi %2, %c36_i32_382 : i32
    %c34_i32_383 = arith.constant 34 : i32
    %1799 = arith.addi %1798, %c34_i32_383 : i32
    %1800 = arith.index_cast %1799 : i32 to index
    %1801 = memref.load %arg3[%1800] : memref<144xf32, #tpu.memory_space<smem>>
    %1802 = arith.index_cast %1799 : i32 to index
    %1803 = memref.load %arg4[%1802] : memref<144xf32, #tpu.memory_space<smem>>
    %1804 = vector.broadcast %1801 : f32 to vector<8x16xf32>
    %1805 = arith.mulf %1785, %1804 : vector<8x16xf32>
    %1806 = arith.addf %1754, %1805 : vector<8x16xf32>
    %1807 = vector.broadcast %1803 : f32 to vector<8x16xf32>
    %1808 = arith.mulf %1785, %1807 : vector<8x16xf32>
    %1809 = arith.addf %1757, %1808 : vector<8x16xf32>
    %c72_i32_384 = arith.constant 72 : i32
    %1810 = arith.addi %2, %c72_i32_384 : i32
    %c34_i32_385 = arith.constant 34 : i32
    %1811 = arith.addi %1810, %c34_i32_385 : i32
    %1812 = arith.index_cast %1811 : i32 to index
    %1813 = memref.load %arg3[%1812] : memref<144xf32, #tpu.memory_space<smem>>
    %1814 = arith.index_cast %1811 : i32 to index
    %1815 = memref.load %arg4[%1814] : memref<144xf32, #tpu.memory_space<smem>>
    %1816 = vector.broadcast %1813 : f32 to vector<8x16xf32>
    %1817 = arith.mulf %1785, %1816 : vector<8x16xf32>
    %1818 = arith.addf %1766, %1817 : vector<8x16xf32>
    %1819 = vector.broadcast %1815 : f32 to vector<8x16xf32>
    %1820 = arith.mulf %1785, %1819 : vector<8x16xf32>
    %1821 = arith.addf %1769, %1820 : vector<8x16xf32>
    %c108_i32_386 = arith.constant 108 : i32
    %1822 = arith.addi %2, %c108_i32_386 : i32
    %c34_i32_387 = arith.constant 34 : i32
    %1823 = arith.addi %1822, %c34_i32_387 : i32
    %1824 = arith.index_cast %1823 : i32 to index
    %1825 = memref.load %arg3[%1824] : memref<144xf32, #tpu.memory_space<smem>>
    %1826 = arith.index_cast %1823 : i32 to index
    %1827 = memref.load %arg4[%1826] : memref<144xf32, #tpu.memory_space<smem>>
    %1828 = vector.broadcast %1825 : f32 to vector<8x16xf32>
    %1829 = arith.mulf %1785, %1828 : vector<8x16xf32>
    %1830 = arith.addf %1778, %1829 : vector<8x16xf32>
    %1831 = vector.broadcast %1827 : f32 to vector<8x16xf32>
    %1832 = arith.mulf %1785, %1831 : vector<8x16xf32>
    %1833 = arith.addf %1781, %1832 : vector<8x16xf32>
    %c2_i32_388 = arith.constant 2 : i32
    %1834 = arith.addi %1, %c2_i32_388 : i32
    %c0_389 = arith.constant 0 : index
    %c3_390 = arith.constant 3 : index
    %1835 = arith.index_cast %1834 : i32 to index
    %c2_391 = arith.constant 2 : index
    %1836 = vector.load %arg6[%c0_389, %c3_390, %1835, %c2_391] : memref<1x4x18x18xf32, #tpu.memory_space<vmem>>, vector<1x1x8x16xf32>
    %1837 = vector.shape_cast %1836 : vector<1x1x8x16xf32> to vector<8x16xf32>
    %c0_i32_392 = arith.constant 0 : i32
    %1838 = arith.addi %2, %c0_i32_392 : i32
    %c35_i32 = arith.constant 35 : i32
    %1839 = arith.addi %1838, %c35_i32 : i32
    %1840 = arith.index_cast %1839 : i32 to index
    %1841 = memref.load %arg3[%1840] : memref<144xf32, #tpu.memory_space<smem>>
    %1842 = arith.index_cast %1839 : i32 to index
    %1843 = memref.load %arg4[%1842] : memref<144xf32, #tpu.memory_space<smem>>
    %1844 = vector.broadcast %1841 : f32 to vector<8x16xf32>
    %1845 = arith.mulf %1837, %1844 : vector<8x16xf32>
    %1846 = arith.addf %1794, %1845 : vector<8x16xf32>
    %1847 = vector.broadcast %1843 : f32 to vector<8x16xf32>
    %1848 = arith.mulf %1837, %1847 : vector<8x16xf32>
    %1849 = arith.addf %1797, %1848 : vector<8x16xf32>
    %c36_i32_393 = arith.constant 36 : i32
    %1850 = arith.addi %2, %c36_i32_393 : i32
    %c35_i32_394 = arith.constant 35 : i32
    %1851 = arith.addi %1850, %c35_i32_394 : i32
    %1852 = arith.index_cast %1851 : i32 to index
    %1853 = memref.load %arg3[%1852] : memref<144xf32, #tpu.memory_space<smem>>
    %1854 = arith.index_cast %1851 : i32 to index
    %1855 = memref.load %arg4[%1854] : memref<144xf32, #tpu.memory_space<smem>>
    %1856 = vector.broadcast %1853 : f32 to vector<8x16xf32>
    %1857 = arith.mulf %1837, %1856 : vector<8x16xf32>
    %1858 = arith.addf %1806, %1857 : vector<8x16xf32>
    %1859 = vector.broadcast %1855 : f32 to vector<8x16xf32>
    %1860 = arith.mulf %1837, %1859 : vector<8x16xf32>
    %1861 = arith.addf %1809, %1860 : vector<8x16xf32>
    %c72_i32_395 = arith.constant 72 : i32
    %1862 = arith.addi %2, %c72_i32_395 : i32
    %c35_i32_396 = arith.constant 35 : i32
    %1863 = arith.addi %1862, %c35_i32_396 : i32
    %1864 = arith.index_cast %1863 : i32 to index
    %1865 = memref.load %arg3[%1864] : memref<144xf32, #tpu.memory_space<smem>>
    %1866 = arith.index_cast %1863 : i32 to index
    %1867 = memref.load %arg4[%1866] : memref<144xf32, #tpu.memory_space<smem>>
    %1868 = vector.broadcast %1865 : f32 to vector<8x16xf32>
    %1869 = arith.mulf %1837, %1868 : vector<8x16xf32>
    %1870 = arith.addf %1818, %1869 : vector<8x16xf32>
    %1871 = vector.broadcast %1867 : f32 to vector<8x16xf32>
    %1872 = arith.mulf %1837, %1871 : vector<8x16xf32>
    %1873 = arith.addf %1821, %1872 : vector<8x16xf32>
    %c108_i32_397 = arith.constant 108 : i32
    %1874 = arith.addi %2, %c108_i32_397 : i32
    %c35_i32_398 = arith.constant 35 : i32
    %1875 = arith.addi %1874, %c35_i32_398 : i32
    %1876 = arith.index_cast %1875 : i32 to index
    %1877 = memref.load %arg3[%1876] : memref<144xf32, #tpu.memory_space<smem>>
    %1878 = arith.index_cast %1875 : i32 to index
    %1879 = memref.load %arg4[%1878] : memref<144xf32, #tpu.memory_space<smem>>
    %1880 = vector.broadcast %1877 : f32 to vector<8x16xf32>
    %1881 = arith.mulf %1837, %1880 : vector<8x16xf32>
    %1882 = arith.addf %1830, %1881 : vector<8x16xf32>
    %1883 = vector.broadcast %1879 : f32 to vector<8x16xf32>
    %1884 = arith.mulf %1837, %1883 : vector<8x16xf32>
    %1885 = arith.addf %1833, %1884 : vector<8x16xf32>
    %1886 = arith.mulf %1846, %1846 : vector<8x16xf32>
    %1887 = arith.mulf %1849, %1849 : vector<8x16xf32>
    %1888 = arith.addf %1886, %1887 : vector<8x16xf32>
    %1889 = vector.broadcast %4 : f32 to vector<8x16xf32>
    %1890 = arith.mulf %1889, %1888 : vector<8x16xf32>
    %1891 = vector.broadcast %5 : f32 to vector<8x16xf32>
    %1892 = arith.addf %1890, %1891 : vector<8x16xf32>
    %c0_399 = arith.constant 0 : index
    %c0_400 = arith.constant 0 : index
    %c0_401 = arith.constant 0 : index
    %c0_402 = arith.constant 0 : index
    %1893 = vector.load %arg7[%c0_399, %c0_400, %c0_401, %c0_402] : memref<1x4x8x16xf32, #tpu.memory_space<vmem>>, vector<1x1x8x16xf32>
    %1894 = vector.shape_cast %1893 : vector<1x1x8x16xf32> to vector<8x16xf32>
    %1895 = vector.shape_cast %1892 : vector<8x16xf32> to vector<1x1x8x16xf32>
    tpu.vector_store %arg7[%c0_399, %c0_400, %c0_401, %c0_402], %1895 {strides = array<i32>} : memref<1x4x8x16xf32, #tpu.memory_space<vmem>>, vector<1x1x8x16xf32>,
    %1896 = arith.mulf %1858, %1858 : vector<8x16xf32>
    %1897 = arith.mulf %1861, %1861 : vector<8x16xf32>
    %1898 = arith.addf %1896, %1897 : vector<8x16xf32>
    %1899 = vector.broadcast %4 : f32 to vector<8x16xf32>
    %1900 = arith.mulf %1899, %1898 : vector<8x16xf32>
    %1901 = vector.broadcast %5 : f32 to vector<8x16xf32>
    %1902 = arith.addf %1900, %1901 : vector<8x16xf32>
    %c0_403 = arith.constant 0 : index
    %c1_404 = arith.constant 1 : index
    %c0_405 = arith.constant 0 : index
    %c0_406 = arith.constant 0 : index
    %1903 = vector.load %arg7[%c0_403, %c1_404, %c0_405, %c0_406] : memref<1x4x8x16xf32, #tpu.memory_space<vmem>>, vector<1x1x8x16xf32>
    %1904 = vector.shape_cast %1903 : vector<1x1x8x16xf32> to vector<8x16xf32>
    %1905 = vector.shape_cast %1902 : vector<8x16xf32> to vector<1x1x8x16xf32>
    tpu.vector_store %arg7[%c0_403, %c1_404, %c0_405, %c0_406], %1905 {strides = array<i32>} : memref<1x4x8x16xf32, #tpu.memory_space<vmem>>, vector<1x1x8x16xf32>,
    %1906 = arith.mulf %1870, %1870 : vector<8x16xf32>
    %1907 = arith.mulf %1873, %1873 : vector<8x16xf32>
    %1908 = arith.addf %1906, %1907 : vector<8x16xf32>
    %1909 = vector.broadcast %4 : f32 to vector<8x16xf32>
    %1910 = arith.mulf %1909, %1908 : vector<8x16xf32>
    %1911 = vector.broadcast %5 : f32 to vector<8x16xf32>
    %1912 = arith.addf %1910, %1911 : vector<8x16xf32>
    %c0_407 = arith.constant 0 : index
    %c2_408 = arith.constant 2 : index
    %c0_409 = arith.constant 0 : index
    %c0_410 = arith.constant 0 : index
    %1913 = vector.load %arg7[%c0_407, %c2_408, %c0_409, %c0_410] : memref<1x4x8x16xf32, #tpu.memory_space<vmem>>, vector<1x1x8x16xf32>
    %1914 = vector.shape_cast %1913 : vector<1x1x8x16xf32> to vector<8x16xf32>
    %1915 = vector.shape_cast %1912 : vector<8x16xf32> to vector<1x1x8x16xf32>
    tpu.vector_store %arg7[%c0_407, %c2_408, %c0_409, %c0_410], %1915 {strides = array<i32>} : memref<1x4x8x16xf32, #tpu.memory_space<vmem>>, vector<1x1x8x16xf32>,
    %1916 = arith.mulf %1882, %1882 : vector<8x16xf32>
    %1917 = arith.mulf %1885, %1885 : vector<8x16xf32>
    %1918 = arith.addf %1916, %1917 : vector<8x16xf32>
    %1919 = vector.broadcast %4 : f32 to vector<8x16xf32>
    %1920 = arith.mulf %1919, %1918 : vector<8x16xf32>
    %1921 = vector.broadcast %5 : f32 to vector<8x16xf32>
    %1922 = arith.addf %1920, %1921 : vector<8x16xf32>
    %c0_411 = arith.constant 0 : index
    %c3_412 = arith.constant 3 : index
    %c0_413 = arith.constant 0 : index
    %c0_414 = arith.constant 0 : index
    %1923 = vector.load %arg7[%c0_411, %c3_412, %c0_413, %c0_414] : memref<1x4x8x16xf32, #tpu.memory_space<vmem>>, vector<1x1x8x16xf32>
    %1924 = vector.shape_cast %1923 : vector<1x1x8x16xf32> to vector<8x16xf32>
    %1925 = vector.shape_cast %1922 : vector<8x16xf32> to vector<1x1x8x16xf32>
    tpu.vector_store %arg7[%c0_411, %c3_412, %c0_413, %c0_414], %1925 {strides = array<i32>} : memref<1x4x8x16xf32, #tpu.memory_space<vmem>>, vector<1x1x8x16xf32>,
    return
  }
  func.func @transform_0(%arg0: i32, %arg1: i32, %arg2: i32) -> i32 {
    %c0_i32 = arith.constant 0 : i32
    %c0_i32_0 = arith.constant 0 : i32
    return %c0_i32 : i32
  }
  func.func @transform_1(%arg0: i32, %arg1: i32, %arg2: i32) -> i32 {
    %c0_i32 = arith.constant 0 : i32
    %c0_i32_0 = arith.constant 0 : i32
    return %c0_i32 : i32
  }
  func.func @transform_2(%arg0: i32, %arg1: i32, %arg2: i32) -> i32 {
    %c0_i32 = arith.constant 0 : i32
    %c0_i32_0 = arith.constant 0 : i32
    return %c0_i32 : i32
  }
  func.func @transform_3(%arg0: i32, %arg1: i32, %arg2: i32) -> (i32, i32, i32, i32) {
    %c0_i32 = arith.constant 0 : i32
    %c0_i32_0 = arith.constant 0 : i32
    %c0_i32_1 = arith.constant 0 : i32
    return %arg0, %arg1, %c0_i32, %c0_i32_0 : i32, i32, i32, i32
  }
  func.func @transform_4(%arg0: i32, %arg1: i32, %arg2: i32) -> (i32, i32, i32, i32) {
    %c0_i32 = arith.constant 0 : i32
    %c0_i32_0 = arith.constant 0 : i32
    return %arg0, %arg1, %arg2, %c0_i32 : i32, i32, i32, i32
  }
}

</mosaic_0001>

<bundles_post_ra>
// kernel: tpu_custom_call.1
= control target key start
LH: loop header
LB: loop body
LE: loop exit
PB: predicated region body
PF: predicated region fallthrough
CT: control target
= control target key end

     0   :  { %s4915_s0 = inlined_call_operand.vmem [shape: f32[144], index: 0, kind: input, shape index: {}]   ;;  %s4916_s1 = inlined_call_operand.vmem [shape: f32[144], index: 1, kind: input, shape index: {}]   ;;  %s4917_s2 = inlined_call_operand.vmem [shape: f32[2], index: 2, kind: input, shape index: {}]   ;;  %s4918_s3 = inlined_call_operand.vmem [shape: f32[2,4,18,18], index: 3, kind: input, shape index: {}]   ;;  %s4919_s4 = inlined_call_operand.hbm [shape: f32[2,4,16,16], index: 4, kind: output, shape index: {}]  }
   0x1   :  { %4937 = sst [smem:[#allocation35_spill]] %s4915_s0 }
   0x2   :  { %4938 = sst [smem:[#allocation36_spill]] %s4916_s1 }
   0x3   :  { %4939 = sst [smem:[#allocation37_spill]] %s4917_s2 }
   0x4   :  { %4940 = sst [smem:[#allocation38_spill]] %s4918_s3 }
   0x5   :  { %9 = vsyncpa [#allocation4], 0 }
   0x6   :  { %10 = vsyncpa [#allocation6], 0 }
   0x7   :  { %11 = vsyncpa [#allocation3], 0 }
   0x8   :  { %13 = vsyncpa [#allocation3 + $0x1], 0  ;;  %s3210_s15 = smov 0   ;;  %s3212_s16 = smov 0  }
   0x9   :  { %s3214_s17 = smov 0   ;;  %s3216_s18 = smov 0  }
   0xa   :  { %s3218_s19 = smov 0   ;;  %s3220_s20 = smov 0  }
   0xb   :  { %s3222_s21 = smov 0   ;;  %s3224_s22 = smov 0  }
   0xc LB: > { %4941 = sst [smem:[#allocation12_spill]] %s3154_s17  ;;  %s2584_s23 = sadd.s32 4294967295, %s3174_s22   ;;  %s3174_s22 = sphi %s3224_s22, %s19_s22   ;;  %s3170_s21 = sphi %s3222_s21, %s5001_s21   ;;  %s3166_s20 = sphi %s3220_s20, %s5000_s20   ;;  %s3162_s19 = sphi %s3218_s19, %s4999_s19   ;;  %s3158_s18 = sphi %s3216_s18, %s4998_s18   ;;  %s3154_s17 = sphi %s3214_s17, %s4997_s17   ;;  %s3150_s16 = sphi %s3212_s16, %s5003_s16   ;;  %s3146_s15 = sphi %s3210_s15, %s5002_s15  }
   0xd   : > { %4942 = sst [smem:[#allocation13_spill]] %s3166_s20  ;;  %s2585_s24 = sadd.s32 4294967294, %s3174_s22  }
   0xe   : > { %4943 = sst [smem:[#allocation14_spill]] %s3170_s21  ;;  %s31_s25 = sadd.s32 1, %s3166_s20 }
   0xf   : > { %s38_s26 = sadd.s32 1, %s3170_s21  ;;  %p32_p0 = scmp.ge.s32.totalorder %s31_s25, 2 }
  0x10   : > { %s140_s27 = sadd.s32 1, %s3154_s17  ;;  %p150_p1 = scmp.ne.s32.totalorder %s3154_s17, %s3150_s16 }
  0x11   : > { %p151_p2 = scmp.eq.s32.totalorder %s2584_s23, 3  ;;  %s5005_s25 = smov (%p32_p0, %s31_s25), 0 }
  0x12   : > { %4944 = sst [smem:[#allocation15_spill]] %s5005_s25  ;;  %s5007_s26 = smov (!%p32_p0, %s38_s26), %s3170_s21 }
  0x13   : > { %s136_s28 = ssub.s32 %s3166_s20, %s5005_s25  ;;  %p3262_p3 = por %p151_p2, %p150_p1 }
  0x14   : > { %p40_p4 = scmp.ge.s32.totalorder %s5007_s26, 2  ;;  %p156_p5 = scmp.ne.s32.totalorder %s3150_s16, %s3146_s15 }
  0x15   : > { %s4945_s29 = scalar_select %p3262_p3, 1, 0 }
  0x16   : > { %p157_p6 = scmp.eq.s32.totalorder %s2585_s24, 3  ;;  %p2586_p7 = scmp.ge.s32.totalorder %s3174_s22, 1 }
  0x17   : > { %s5009_s26 = smov (%p40_p4, %s5007_s26), 0  ;;  %p164_p9 = scmp.lt.s32.totalorder %s3174_s22, 5 }
  0x18   : > { %4946 = sst [smem:[#allocation16_spill]] %s5009_s26  ;;  %p3271_p8 = por %p157_p6, %p156_p5 }
  0x19   : > { %s133_s5 = ssub.s32 %s3170_s21, %s5009_s26  ;;  %p3278_p10 = pnand %p2586_p7, %p164_p9 }
  0x1a   : > { %s4947_s30 = scalar_select %p3271_p8, 1, 0 }
  0x1b   : > { %s137_s6 = sor.u32 %s136_s28, %s133_s5  ;;  %p3282_p12 = scmp.eq.s32.totalorder %s2584_s23, 0 }
  0x1c   : > { %4948 = sst [smem:[#allocation17_spill]] %s4947_s30  ;;  %p138_p11 = scmp.eq.s32.totalorder %s137_s6, 0 }
  0x1d   : > { %s4949_s7 = scalar_select %p3278_p10, 1, 0 }
  0x1e   : > { %s4950_s8 = scalar_select %p3282_p12, 1, 0 }
  0x1f   : > { %p2930_p13 = pneg %p3278_p10  ;;  %s4951_s1 = sld [smem:[#allocation36_spill]] }
  0x20   : > { %s3292_s12 = scalar_select %p138_p11, %s3154_s17, %s140_s27  }
  0x21   : > { %p3296_p0 = pnand %p3282_p12, %p2930_p13 }
  0x22   : > { %4952 = sst [smem:[#allocation18_spill]] %s3292_s12 }
  0x23   : > { %p3029_p2 = pneg %p3296_p0 }
  0x25   : > { %s188_s11 = sshll.u32 %s4951_s1, 4  ;;  %s189_s11 = int_to_ptr.vmem [resolvable:$true] %s188_s11 }
  0x26   : > { %s3027_s14 = scalar_lea.vmem %s189_s11, 32  ;;  %p3035_p6 = scmp.lt.s32.totalorder %s189_s11, %s189_s11 }
  0x27   : > { %p3028_p1 = scmp.ne.s32.totalorder %s189_s11, %s3027_s14  ;;  %p3036_p7 = scmp.lt.s32.totalorder %s3027_s14, %s3027_s14 }
  0x29   : > { %p3030_p4 = pnand %p3029_p2, %p3028_p1  ;;  %p3037_p9 = por %p3036_p7, %p3035_p6 }
  0x2b   : > { %p3031_p5 = pneg %p3030_p4 }
  0x2d   : > { %p3038_p11 = pnand %p3037_p9, %p3031_p5 }
  0x2f   : > { %3041 = shalt.err (!%p3038_p11)
}
  0x30   : > { %s3176_s23 = smov [#allocation5]   ;;  %s4954_s0 = sld [smem:[#allocation35_spill]] }
  0x31   : > { %2936 = dma.vmem_to_smem (!%p3296_p0), %s189_s11, 32, %s3176_s23, [#allocation6]  }
  0x32   : > { %s4955_s2 = sld [smem:[#allocation37_spill]] }
  0x36   : > { %s177_s28 = sshll.u32 %s4954_s0, 4  ;;  %s178_s28 = int_to_ptr.vmem [resolvable:$true] %s177_s28 }
  0x37   : > { %s3042_s10 = scalar_lea.vmem %s178_s28, 32  ;;  %p3050_p5 = scmp.lt.s32.totalorder %s178_s28, %s178_s28 }
  0x38   : > { %s199_s9 = sshll.u32 %s4955_s2, 4  ;;  %p3043_p13 = scmp.ne.s32.totalorder %s178_s28, %s3042_s10  ;;  %s200_s9 = int_to_ptr.vmem [resolvable:$true] %s199_s9 }
  0x39   : > { %p3051_p6 = scmp.lt.s32.totalorder %s3042_s10, %s3042_s10 }
  0x3a   : > { %p3045_p1 = pnand %p3043_p13, %p3029_p2 }
  0x3b   : > { %p3052_p7 = por %p3051_p6, %p3050_p5 }
  0x3c   : > { %p3046_p4 = pneg %p3045_p1 }
  0x3e   : > { %p3053_p9 = pnand %p3052_p7, %p3046_p4 }
  0x40   : > { %3056 = shalt.err (!%p3053_p9)
}
  0x41   : > { %s3177_s11 = smov [#allocation2]   ;;  %s3057_s14 = scalar_lea.vmem %s200_s9, 16 }
  0x42   : > { %2933 = dma.vmem_to_smem (!%p3296_p0), %s178_s28, 32, %s3177_s11, [#allocation4]  }
  0x43   : > { %p3058_p11 = scmp.ne.s32.totalorder %s200_s9, %s3057_s14  ;;  %p3065_p12 = scmp.lt.s32.totalorder %s200_s9, %s200_s9 }
  0x44   : > { %p3066_p13 = scmp.lt.s32.totalorder %s3057_s14, %s3057_s14 }
  0x45   : > { %p3060_p8 = pnand %p3058_p11, %p3029_p2 }
  0x46   : > { %p3067_p1 = por %p3066_p13, %p3065_p12 }
  0x47   : > { %p3061_p3 = pneg %p3060_p8 }
  0x49   : > { %p3068_p10 = pnand %p3067_p1, %p3061_p3 }
  0x4b   : > { %3071 = shalt.err (!%p3068_p10)
}
  0x4c   : > { %s3178_s23 = smov [#allocation7]   ;;  %p4956_p4 = scmp.ne.s32.totalorder %s4949_s7, 0 }
  0x4d   : > { %2939 = dma.vmem_to_smem (!%p3296_p0), %s200_s9, 16, %s3178_s23, [#allocation6]  }
  0x4e   : > { %226 = sbr.rel (%p4956_p4) target bundleno = 629 (0x275), region = 36 }
  0x55   : > { %p4957_p5 = scmp.ne.s32.totalorder %s4950_s8, 0 }
  0x57   : > { %3133 = dma.done.wait (%p4957_p5), [#allocation4], 32  }
  0x58   : > { %3135 = vsyncadd (%p4957_p5), [#allocation4], 4294967264 }
  0x59   : > { %3137 = dma.done.wait (%p4957_p5), [#allocation6], 48  }
  0x5a   : > { %3139 = vsyncadd (%p4957_p5), [#allocation6], 4294967248 }
  0x5b   : > { %240 = sfence }
  0x5c   : > { %p267_p3 = scmp.lt.s32.totalorder %s3162_s19, 1  ;;  %s2597_s13 = sshll.u32 %s3158_s18, 3  ;;  %vm2388_vm0 = vcmask 130048  }
  0x5d   : > { %s2607_s7 = sld [smem:[#allocation2 + $0x25]]  ;;  %s2605_s27 = sld [smem:[#allocation2 + $0x1]] }
  0x5e   : > { %s268_s24 = scalar_select %p267_p3, %s3162_s19, 1 }
  0x5f   : > { %s2608_s28 = sld [smem:[#allocation5 + $0x25]]  ;;  %s2606_s6 = sld [smem:[#allocation5 + $0x1]] }
  0x60   : > { %s2915_s5 = smul.u32 96, %s268_s24  ;;  %s2610_s9 = sld [smem:[#allocation5 + $0x49]] }
  0x61   : > { %s2609_s10 = sld [smem:[#allocation2 + $0x49]]  ;;  %s4958_s3 = sld [smem:[#allocation38_spill]] }
  0x62   : > { %s2612_s0 = sld [smem:[#allocation5 + $0x6d]]  ;;  %s4924_s24 = smov 127  }
  0x63   : > { %v340_v0 = vstv %s2607_s7  ;;  %v323_v3 = vstv %s2605_s27  ;;  %s2611_s1 = sld [smem:[#allocation2 + $0x6d]]  ;;  %s2613_s7 = sld [smem:[#allocation2 + $0x2]] }
  0x64   : > { %s2616_s27 = sld [smem:[#allocation5 + $0x26]]  ;;  %s2631_s11 = sld [smem:[#allocation2 + $0x4]] }
  0x65   : > { %v347_v4 = vstv %s2608_s28  ;;  %v330_v6 = vstv %s2606_s6  ;;  %s2615_s28 = sld [smem:[#allocation2 + $0x26]]  ;;  %s2617_s6 = sld [smem:[#allocation2 + $0x4a]] }
  0x66   : > { %v364_v9 = vstv %s2610_s9  ;;  %s4926_s9 = smov 126   ;;  %s2634_s14 = sld [smem:[#allocation5 + $0x28]] }
  0x67   : > { %s275_s23 = scalar_lea.vmem %s4958_s3, %s2915_s5  ;;  %v357_v10 = vstv %s2609_s10  ;;  %s2618_s5 = sld [smem:[#allocation5 + $0x4a]] }
  0x68   : > { %s3339_s8 = scalar_lea.vmem %s275_s23, %s2597_s13  ;;  %s2614_s13 = sld [smem:[#allocation5 + $0x2]]  ;;  %v381_v13 = vstv %s2612_s0 }
  0x69   : > { %v3342_v1 = vld [vmem:[%s3339_s8] sm:$0xff]  ;;  %v374_v14 = vstv %s2611_s1  ;;  %v391_v18 = vstv %s2613_s7  ;;  %s2620_s0 = sld [smem:[#allocation5 + $0x6e]]  ;;  %s2632_s10 = sld [smem:[#allocation5 + $0x4]] }
  0x6a   : > { %v341_v2 = vmul.f32 %v340_v0, %v3342_v1  ;;  %v324_v5 = vmul.f32 %v323_v3, %v3342_v1  ;;  %v348_v7 = vmul.f32 %v347_v4, %v3342_v1  ;;  %v331_v8 = vmul.f32 %v330_v6, %v3342_v1  ;;  %s2619_s1 = sld [smem:[#allocation2 + $0x6e]]  ;;  %s2633_s23 = sld [smem:[#allocation2 + $0x28]]  ;;  %v3375_v33 = vld [vmem:[%s3339_s8 + $0x1] sm:$0xff] }
  0x6b   : > { %v365_v11 = vmul.f32 %v364_v9, %v3342_v1  ;;  %v358_v12 = vmul.f32 %v357_v10, %v3342_v1  ;;  %v382_v15 = vmul.f32 %v381_v13, %v3342_v1  ;;  %v375_v16 = vmul.f32 %v374_v14, %v3342_v1  ;;  %s2635_s7 = sld [smem:[#allocation2 + $0x4c]]  ;;  %v3410_v3 = vld [vmem:[%s3339_s8 + $0x2] sm:$0xff]  ;;  %s4959_s2 = smov 126  }
  0x6c   : > { %343 = vrot.lane.b32.xlu1 %v341_v2, %s4924_s24  ;;  %326 = vrot.lane.b32.xlu0 %v324_v5, %s4924_s24  ;;  %v392_v20 = vmul.f32 %v391_v18, %v3342_v1  ;;  %v415_v21 = vstv %s2616_s27  ;;  %v408_v22 = vstv %s2615_s28  ;;  %s2638_s27 = sld [smem:[#allocation5 + $0x70]]  ;;  %s3526_s3 = sld [smem:[#allocation5 + $0x6c]] }
  0x6d   : > { %v416_v23 = vmul.f32 %v415_v21, %v3342_v1  ;;  %v409_v24 = vmul.f32 %v408_v22, %v3342_v1  ;;  %v432_v25 = vstv %s2618_s5  ;;  %v425_v26 = vstv %s2617_s6  ;;  %s2637_s28 = sld [smem:[#allocation2 + $0x70]]  ;;  %s2640_s5 = sld [smem:[#allocation5 + $0x5]] }
  0x6e   : > { %v398_v17 = vstv %s2614_s13  ;;  %v433_v27 = vmul.f32 %v432_v25, %v3342_v1  ;;  %v426_v28 = vmul.f32 %v425_v26, %v3342_v1  ;;  %s2636_s13 = sld [smem:[#allocation5 + $0x4c]]  ;;  %v498_v35 = vstv %s2631_s11  ;;  %s2639_s6 = sld [smem:[#allocation2 + $0x5]] }
  0x6f   : > { %v399_v19 = vmul.f32 %v398_v17, %v3342_v1  ;;  %v449_v29 = vstv %s2620_s0  ;;  %v505_v34 = vstv %s2632_s10  ;;  %v499_v37 = vmul.f32 %v3375_v33, %v498_v35  ;;  %s2642_s0 = sld [smem:[#allocation5 + $0x29]]  ;;  %s2644_s10 = sld [smem:[#allocation5 + $0x4d]] }
  0x70   : > { %350 = vrot.lane.b32.xlu1 %v348_v7, %s4924_s24  ;;  %333 = vrot.lane.b32.xlu0 %v331_v8, %s4924_s24  ;;  %v442_v30 = vstv %s2619_s1  ;;  %v450_v31 = vmul.f32 %v449_v29, %v3342_v1  ;;  %v506_v36 = vmul.f32 %v3375_v33, %v505_v34  ;;  %v522_v38 = vstv %s2634_s14  ;;  %s2641_s1 = sld [smem:[#allocation2 + $0x29]]  ;;  %s2643_s11 = sld [smem:[#allocation2 + $0x4d]] }
  0x71   : > { %v443_v32 = vmul.f32 %v442_v30, %v3342_v1  ;;  %v515_v39 = vstv %s2633_s23  ;;  %v523_v40 = vmul.f32 %v3375_v33, %v522_v38  ;;  %v532_v43 = vstv %s2635_s7  ;;  %s2646_s14 = sld [smem:[#allocation5 + $0x71]]  ;;  %s2657_s7 = sld [smem:[#allocation2 + $0x7]] }
  0x72   : > { %v516_v41 = vmul.f32 %v3375_v33, %v515_v39  ;;  %v533_v45 = vmul.f32 %v3375_v33, %v532_v43  ;;  %v556_v46 = vstv %s2638_s27  ;;  %s2645_s23 = sld [smem:[#allocation2 + $0x71]]  ;;  %s2660_s27 = sld [smem:[#allocation5 + $0x2b]] }
  0x73   : > { %v549_v47 = vstv %s2637_s28  ;;  %v557_v48 = vmul.f32 %v3375_v33, %v556_v46  ;;  %v573_v50 = vstv %s2640_s5  ;;  %s2659_s28 = sld [smem:[#allocation2 + $0x2b]]  ;;  %s2662_s5 = sld [smem:[#allocation5 + $0x4f]] }
  0x74   : > { %367 = vrot.lane.b32.xlu1 %v365_v11, %s4924_s24  ;;  %360 = vrot.lane.b32.xlu0 %v358_v12, %s4924_s24  ;;  %v539_v42 = vstv %s2636_s13  ;;  %v550_v49 = vmul.f32 %v3375_v33, %v549_v47  ;;  %v566_v51 = vstv %s2639_s6  ;;  %v574_v52 = vmul.f32 %v3375_v33, %v573_v50  ;;  %s2658_s13 = sld [smem:[#allocation5 + $0x7]]  ;;  %s3534_s25 = sld [smem:[#allocation2 + $0x6c]] }
  0x75   : > { %v540_v44 = vmul.f32 %v3375_v33, %v539_v42  ;;  %v567_v53 = vmul.f32 %v3375_v33, %v566_v51  ;;  %v590_v54 = vstv %s2642_s0  ;;  %v607_v58 = vstv %s2644_s10  ;;  %s2661_s6 = sld [smem:[#allocation2 + $0x4f]]  ;;  %s2664_s0 = sld [smem:[#allocation5 + $0x73]] }
  0x76   : > { %v583_v55 = vstv %s2641_s1  ;;  %v591_v56 = vmul.f32 %v3375_v33, %v590_v54  ;;  %v600_v59 = vstv %s2643_s11  ;;  %v608_v60 = vmul.f32 %v3375_v33, %v607_v58  ;;  %s2663_s1 = sld [smem:[#allocation2 + $0x73]]  ;;  %s2666_s10 = sld [smem:[#allocation5 + $0x8]] }
  0x77   : > { %v584_v57 = vmul.f32 %v3375_v33, %v583_v55  ;;  %v601_v61 = vmul.f32 %v3375_v33, %v600_v59  ;;  %v624_v62 = vstv %s2646_s14  ;;  %v673_v5 = vstv %s2657_s7  ;;  %s2665_s11 = sld [smem:[#allocation2 + $0x8]]  ;;  %s2668_s14 = sld [smem:[#allocation5 + $0x2c]] }
  0x78   : > { %384 = vrot.lane.b32.xlu1 %v382_v15, %s4924_s24  ;;  %377 = vrot.lane.b32.xlu0 %v375_v16, %s4924_s24  ;;  %v617_v63 = vstv %s2645_s23  ;;  %v625_v0 = vmul.f32 %v3375_v33, %v624_v62  ;;  %v674_v7 = vmul.f32 %v3410_v3, %v673_v5  ;;  %v697_v8 = vstv %s2660_s27  ;;  %s2667_s23 = sld [smem:[#allocation2 + $0x2c]]  ;;  %s2669_s7 = sld [smem:[#allocation2 + $0x50]] }
  0x79   : > { %v618_v2 = vmul.f32 %v3375_v33, %v617_v63  ;;  %v690_v9 = vstv %s2659_s28  ;;  %v698_v10 = vmul.f32 %v3410_v3, %v697_v8  ;;  %v714_v12 = vstv %s2662_s5  ;;  %s2672_s27 = sld [smem:[#allocation5 + $0x74]]  ;;  %s2684_s5 = sld [smem:[#allocation5 + $0xa]] }
  0x7a   : > { %v680_v4 = vstv %s2658_s13  ;;  %v691_v11 = vmul.f32 %v3410_v3, %v690_v9  ;;  %v715_v14 = vmul.f32 %v3410_v3, %v714_v12  ;;  %s2670_s13 = sld [smem:[#allocation5 + $0x50]]  ;;  %s2671_s28 = sld [smem:[#allocation2 + $0x74]]  ;;  %v3518_v12 = vld [vmem:[%s3339_s8 + $0x19] sm:$0xff] }
  0x7b   : > { %v681_v6 = vmul.f32 %v3410_v3, %v680_v4  ;;  %v707_v13 = vstv %s2661_s6  ;;  %v731_v16 = vstv %s2664_s0  ;;  %s2683_s6 = sld [smem:[#allocation2 + $0xa]]  ;;  %s2686_s0 = sld [smem:[#allocation5 + $0x2e]] }
  0x7c   : > { %401 = vrot.lane.b32.xlu1 %v399_v19, %s4926_s9  ;;  %394 = vrot.lane.b32.xlu0 %v392_v20, %s4926_s9  ;;  %v708_v15 = vmul.f32 %v3410_v3, %v707_v13  ;;  %v724_v17 = vstv %s2663_s1  ;;  %v732_v18 = vmul.f32 %v3410_v3, %v731_v16  ;;  %v748_v20 = vstv %s2666_s10  ;;  %s2685_s1 = sld [smem:[#allocation2 + $0x2e]]  ;;  %s2688_s10 = sld [smem:[#allocation5 + $0x52]] }
  0x7d   : > { %v725_v19 = vmul.f32 %v3410_v3, %v724_v17  ;;  %v741_v21 = vstv %s2665_s11  ;;  %v749_v22 = vmul.f32 %v3410_v3, %v748_v20  ;;  %s2687_s11 = sld [smem:[#allocation2 + $0x52]]  ;;  %s3529_s26 = sld [smem:[#allocation5 + $0x27]] }
  0x7e   : > { %v758_v25 = vstv %s2667_s23  ;;  %v775_v29 = vstv %s2669_s7  ;;  %s2689_s23 = sld [smem:[#allocation2 + $0x76]]  ;;  %s2691_s7 = sld [smem:[#allocation2 + $0xb]] }
  0x7f   : > { %v855_v38 = vstv %s2684_s5  ;;  %s2696_s5 = sld [smem:[#allocation5 + $0x53]]  ;;  %s4133_s20 = sld [smem:[#allocation5 + $0x86]] }
  0x80   : > { %418 = vrot.lane.b32.xlu1 %v416_v23, %s4926_s9  ;;  %411 = vrot.lane.b32.xlu0 %v409_v24, %s4926_s9  ;;  %v742_v23 = vmul.f32 %v3410_v3, %v741_v21  ;;  %v765_v24 = vstv %s2668_s14  ;;  %v792_v34 = vstv %s2671_s28  ;;  %s2690_s14 = sld [smem:[#allocation5 + $0x76]]  ;;  %s2693_s28 = sld [smem:[#allocation2 + $0x2f]] }
  0x81   : > { %v766_v26 = vmul.f32 %v3410_v3, %v765_v24  ;;  %v848_v39 = vstv %s2683_s6  ;;  %v872_v42 = vstv %s2686_s0  ;;  %s2695_s6 = sld [smem:[#allocation2 + $0x53]]  ;;  %s3467_s0 = sld [smem:[#allocation5 + $0x77]] }
  0x82   : > { %v865_v43 = vstv %s2685_s1  ;;  %v889_v46 = vstv %s2688_s10  ;;  %s3469_s1 = sld [smem:[#allocation2 + $0x77]]  ;;  %s3475_s10 = sld [smem:[#allocation5 + $0xd]] }
  0x83   : > { %v882_v47 = vstv %s2687_s11  ;;  %s3479_s11 = sld [smem:[#allocation5]]  ;;  %s4126_s21 = sld [smem:[#allocation2 + $0x33]] }
  0x84   : > { %435 = vrot.lane.b32.xlu1 %v433_v27, %s4926_s9  ;;  %428 = vrot.lane.b32.xlu0 %v426_v28, %s4926_s9  ;;  %v759_v27 = vmul.f32 %v3410_v3, %v758_v25  ;;  %v782_v28 = vstv %s2670_s13  ;;  %s2692_s13 = sld [smem:[#allocation5 + $0xb]]  ;;  %v899_v51 = vstv %s2689_s23  ;;  %s3483_s23 = sld [smem:[#allocation2]] }
  0x85   : > { %v783_v30 = vmul.f32 %v3410_v3, %v782_v28  ;;  %v916_v55 = vstv %s2691_s7  ;;  %v957_v62 = vstv %s2696_s5  ;;  %s3490_s7 = sld [smem:[#allocation5 + $0x24]]  ;;  %s3503_s5 = sld [smem:[#allocation2 + $0x31]] }
  0x86   : > { %v906_v50 = vstv %s2690_s14  ;;  %v933_v59 = vstv %s2693_s28  ;;  %s3481_s14 = sld [smem:[#allocation2 + $0xd]]  ;;  %s3498_s28 = sld [smem:[#allocation5 + $0x31]] }
  0x87   : > { %s4138_s12 = sld [smem:[#allocation2 + $0x57]]  ;;  %s4140_s17 = sld [smem:[#allocation2 + $0x86]] }
  0x88   : > { %452 = vrot.lane.b32.xlu1 %v450_v31, %s4926_s9  ;;  %445 = vrot.lane.b32.xlu0 %v443_v32, %s4926_s9  ;;  %v776_v31 = vmul.f32 %v3410_v3, %v775_v29  ;;  %v799_v32 = vstv %s2672_s27  ;;  %s2694_s27 = sld [smem:[#allocation5 + $0x2f]]  ;;  %v967_v8 = vstv %s3469_s1  ;;  %s3521_s1 = sld [smem:[#allocation2 + $0x55]] }
  0x89   : > { %v800_v35 = vmul.f32 %v3410_v3, %v799_v32  ;;  %v1030_v13 = vstv %s3475_s10  ;;  %s3536_s10 = sld [smem:[#allocation2 + $0x27]]  ;;  %s4148_s30 = sld [smem:[#allocation2 + $0x7b]] }
  0x8a   : > { %v923_v54 = vstv %s2692_s13  ;;  %s3487_s13 = sld [smem:[#allocation2 + $0x24]]  ;;  %v287_v17 = vstv %s3483_s23  ;;  %v1031_v21 = vmul.f32 %v3518_v12, %v1030_v13  ;;  %s3556_s23 = sld [smem:[#allocation5 + $0x4b]] }
  0x8b   : > { %v299_v20 = vstv %s3490_s7  ;;  %v1040_v28 = vstv %s3503_s5  ;;  %s4960_s7 = smov 127   ;;  %s3626_s5 = sld [smem:[#allocation2 + $0x56]] }
  0x8c   : > { %508 = vrot.lane.b32.xlu1 %v506_v36, %s4924_s24  ;;  %501 = vrot.lane.b32.xlu0 %v499_v37, %s4924_s24  ;;  %v793_v36 = vmul.f32 %v3410_v3, %v792_v34  ;;  %v3445_v37 = vld [vmem:[%s3339_s8 + $0x18] sm:$0xff]  ;;  %v1023_v16 = vstv %s3481_s14  ;;  %s3549_s14 = sld [smem:[#allocation2 + $0x79]]  ;;  %p4993_p10 = scmp.ne.s32.totalorder %s4945_s29, 0 }
  0x8d   : > { %v958_v4 = vmul.f32 %v3445_v37, %v957_v62  ;;  %v1024_v24 = vmul.f32 %v3518_v12, %v1023_v16  ;;  %v1047_v25 = vstv %s3498_s28  ;;  %s3587_s28 = sld [smem:[#allocation2 + $0x6f]] }
  0x8e   : > { %v940_v58 = vstv %s2694_s27  ;;  %s3495_s27 = sld [smem:[#allocation5 + $0x48]] }
  0x90   : > { %525 = vrot.lane.b32.xlu1 %v523_v40, %s4924_s24  ;;  %518 = vrot.lane.b32.xlu0 %v516_v41, %s4924_s24  ;;  %v856_v40 = vmul.f32 %v3445_v37, %v855_v38  ;;  %v849_v41 = vmul.f32 %v3445_v37, %v848_v39  ;;  %v1048_v38 = vmul.f32 %v3518_v12, %v1047_v25 }
  0x94   : > { %542 = vrot.lane.b32.xlu1 %v540_v44, %s4924_s24  ;;  %535 = vrot.lane.b32.xlu0 %v533_v45, %s4924_s24  ;;  %v873_v44 = vmul.f32 %v3445_v37, %v872_v42  ;;  %v866_v45 = vmul.f32 %v3445_v37, %v865_v43  ;;  %v1057_v42 = vstv %s3521_s1  ;;  %s3656_s1 = sld [smem:[#allocation5 + $0x10]] }
  0x98   : > { %559 = vrot.lane.b32.xlu1 %v557_v48, %s4924_s24  ;;  %552 = vrot.lane.b32.xlu0 %v550_v49, %s4924_s24  ;;  %v890_v48 = vmul.f32 %v3445_v37, %v889_v46  ;;  %v883_v49 = vmul.f32 %v3445_v37, %v882_v47 }
  0x9c   : > { %576 = vrot.lane.b32.xlu1 %v574_v52, %s4926_s9  ;;  %569 = vrot.lane.b32.xlu0 %v567_v53, %s4926_s9  ;;  %v907_v52 = vmul.f32 %v3445_v37, %v906_v50  ;;  %v900_v53 = vmul.f32 %v3445_v37, %v899_v51  ;;  %v314_v50 = vstv %s3534_s25  ;;  %s3604_s25 = sld [smem:[#allocation2 + $0x32]] }
  0xa0   : > { %593 = vrot.lane.b32.xlu1 %v591_v56, %s4926_s9  ;;  %586 = vrot.lane.b32.xlu0 %v584_v57, %s4926_s9  ;;  %v924_v56 = vmul.f32 %v3445_v37, %v923_v54  ;;  %v917_v57 = vmul.f32 %v3445_v37, %v916_v55 }
  0xa4   : > { %610 = vrot.lane.b32.xlu1 %v608_v60, %s4926_s9  ;;  %603 = vrot.lane.b32.xlu0 %v601_v61, %s4926_s9  ;;  %v941_v60 = vmul.f32 %v3445_v37, %v940_v58  ;;  %v934_v61 = vmul.f32 %v3445_v37, %v933_v59  ;;  %v1074_v59 = vstv %s3549_s14  ;;  %s3671_s14 = sld [smem:[#allocation2 + $0x34]] }
  0xa5   : > { %v1075_v13 = vmul.f32 %v3518_v12, %v1074_v59  ;;  %v1205_v59 = vstv %s3656_s1  ;;  %s3733_s1 = sld [smem:[#allocation5 + $0x72]] }
  0xa8   : > { %627 = vrot.lane.b32.xlu1 %v625_v0, %s4926_s9  ;;  %620 = vrot.lane.b32.xlu0 %v618_v2, %s4926_s9  ;;  %v950_v0 = vstv %s2695_s6  ;;  %s3505_s6 = sld [smem:[#allocation5 + $0x3]] }
  0xa9   : > { %v951_v5 = vmul.f32 %v3445_v37, %v950_v0 }
  0xac   : > { %683 = vrot.lane.b32.xlu1 %v681_v6, %s4924_s24  ;;  %676 = vrot.lane.b32.xlu0 %v674_v7, %s4924_s24  ;;  %v974_v6 = vstv %s3467_s0  ;;  %s3513_s0 = sld [smem:[#allocation5 + $0x55]] }
  0xae   : > { %v465_v29 = vstv %s3505_s6  ;;  %s3639_s6 = sld [smem:[#allocation5 + $0x7a]] }
  0xaf   : > { %v466_v43 = vmul.f32 %v3375_v33, %v465_v29 }
  0xb0   : > { %700 = vrot.lane.b32.xlu1 %v698_v10, %s4924_s24  ;;  %693 = vrot.lane.b32.xlu0 %v691_v11, %s4924_s24  ;;  %v975_v10 = vmul.f32 %v3445_v37, %v974_v6  ;;  %v968_v11 = vmul.f32 %v3445_v37, %v967_v8 }
  0xb2   : > { %v1064_v39 = vstv %s3513_s0  ;;  %s3646_s0 = sld [smem:[#allocation2 + $0x7a]] }
  0xb3   : > { %v1065_v55 = vmul.f32 %v3518_v12, %v1064_v39  ;;  %v1108_v39 = vstv %s3604_s25  ;;  %s3705_s25 = sld [smem:[#allocation2 + $0x7c]] }
  0xb4   : > { %717 = vrot.lane.b32.xlu1 %v715_v14, %s4924_s24  ;;  %710 = vrot.lane.b32.xlu0 %v708_v15, %s4924_s24  ;;  %v290_v14 = vstv %s3479_s11  ;;  %s3542_s11 = sld [smem:[#allocation5 + $0x79]] }
  0xb8   : > { %734 = vrot.lane.b32.xlu1 %v732_v18, %s4924_s24  ;;  %727 = vrot.lane.b32.xlu0 %v725_v19, %s4924_s24  ;;  %v296_v19 = vstv %s3487_s13  ;;  %s3563_s13 = sld [smem:[#allocation2 + $0x4b]] }
  0xbc   : > { %751 = vrot.lane.b32.xlu1 %v749_v22, %s4926_s9  ;;  %744 = vrot.lane.b32.xlu0 %v742_v23, %s4926_s9  ;;  %v291_v22 = vmul.f32 %v290_v14, %v3342_v1  ;;  %v308_v23 = vstv %s3495_s27  ;;  %s3570_s27 = sld [smem:[#allocation5 + $0xe]] }
  0xc0   : > { %768 = vrot.lane.b32.xlu1 %v766_v26, %s4926_s9  ;;  %761 = vrot.lane.b32.xlu0 %v759_v27, %s4926_s9  ;;  %v288_v26 = vmul.f32 %v287_v17, %v3342_v1 }
  0xc2   : > { %v1098_v14 = vstv %s3570_s27  ;;  %s3679_s27 = sld [smem:[#allocation5 + $0x58]] }
  0xc3   : > { %v1099_v29 = vmul.f32 %v3518_v12, %v1098_v14 }
  0xc4   : > { %785 = vrot.lane.b32.xlu1 %v783_v30, %s4926_s9  ;;  %778 = vrot.lane.b32.xlu0 %v776_v31, %s4926_s9  ;;  %v297_v30 = vmul.f32 %v296_v19, %v3342_v1 }
  0xc8   : > { %802 = vrot.lane.b32.xlu1 %v800_v35, %s4926_s9  ;;  %795 = vrot.lane.b32.xlu0 %v793_v36, %s4926_s9  ;;  %v300_v35 = vmul.f32 %v299_v20, %v3342_v1  ;;  %v309_v36 = vmul.f32 %v308_v23, %v3342_v1 }
  0xcc   : > { %858 = vrot.lane.b32.xlu1 %v856_v40, %s4924_s24  ;;  %851 = vrot.lane.b32.xlu0 %v849_v41, %s4924_s24  ;;  %v1041_v41 = vmul.f32 %v3518_v12, %v1040_v28 }
  0xd0   : > { %875 = vrot.lane.b32.xlu1 %v873_v44, %s4924_s24  ;;  %868 = vrot.lane.b32.xlu0 %v866_v45, %s4924_s24 }
  0xd4   : > { %892 = vrot.lane.b32.xlu1 %v890_v48, %s4924_s24  ;;  %885 = vrot.lane.b32.xlu0 %v883_v49, %s4924_s24  ;;  %v474_v48 = vstv %s3529_s26  ;;  %v317_v49 = vstv %s3526_s3  ;;  %s3598_s3 = sld [smem:[#allocation5 + $0x32]]  ;;  %s3620_s26 = sld [smem:[#allocation5 + $0x56]] }
  0xd5   : > { %v318_v6 = vmul.f32 %v317_v49, %v3342_v1 }
  0xd8   : > { %909 = vrot.lane.b32.xlu1 %v907_v52, %s4924_s24  ;;  %902 = vrot.lane.b32.xlu0 %v900_v53, %s4924_s24  ;;  %s3507_s24 = sld [smem:[#allocation2 + $0x48]]  ;;  %v471_v53 = vstv %s3536_s10 }
  0xd9   : > { %s3661_s10 = sld [smem:[#allocation2 + $0x10]] }
  0xdc   : > { %926 = vrot.lane.b32.xlu1 %v924_v56, %s4926_s9  ;;  %919 = vrot.lane.b32.xlu0 %v917_v57, %s4926_s9  ;;  %v1058_v56 = vmul.f32 %v3518_v12, %v1057_v42  ;;  %v1081_v57 = vstv %s3542_s11  ;;  %s3668_s11 = sld [smem:[#allocation5 + $0x34]] }
  0xde   : > { %v3477_v63 = vpop.permute.xlu1 %343  ;;  %v3485_v2 = vpop.permute.xlu0 %326  ;;  %v305_v31 = vstv %s3507_s24  ;;  %s3575_s24 = sld [smem:[#allocation2 + $0xe]] }
  0xdf   : > { %v329_v44 = vadd.f32 %v3485_v2, %v288_v26  ;;  %v306_v45 = vmul.f32 %v305_v31, %v3342_v1  ;;  %v346_v62 = vadd.f32 %v3477_v63, %v297_v30  ;;  %v1082_v63 = vmul.f32 %v3518_v12, %v1081_v57 }
  0xe0   : > { %943 = vrot.lane.b32.xlu1 %v941_v60, %s4926_s9  ;;  %936 = vrot.lane.b32.xlu0 %v934_v61, %s4926_s9  ;;  %s3509_s9 = sld [smem:[#allocation2 + $0x3]]  ;;  %v475_v61 = vmul.f32 %v3375_v33, %v474_v48  ;;  %v489_v26 = vstv %s3587_s28  ;;  %v1115_v31 = vstv %s3598_s3  ;;  %s3696_s28 = sld [smem:[#allocation2 + $0x2a]] }
  0xe1   : > { %s3700_s3 = sld [smem:[#allocation5 + $0x7c]] }
  0xe2   : > { %v3500_v7 = vpop.permute.xlu1 %350  ;;  %v334_v9 = vpop.permute.xlu0 %333 }
  0xe3   : > { %v336_v40 = vadd.f32 %v334_v9, %v291_v22  ;;  %v353_v58 = vadd.f32 %v3500_v7, %v300_v35  ;;  %v315_v7 = vmul.f32 %v314_v50, %v3342_v1 }
  0xe4   : > { %960 = vrot.lane.b32.xlu1 %v958_v4, %s4959_s2  ;;  %953 = vrot.lane.b32.xlu0 %v951_v5, %s4959_s2  ;;  %v472_v4 = vmul.f32 %v3375_v33, %v471_v53  ;;  %v483_v5 = vstv %s3556_s23  ;;  %v1091_v17 = vstv %s3575_s24  ;;  %s3673_s23 = sld [smem:[#allocation5 + $0x6]]  ;;  %s3687_s24 = sld [smem:[#allocation2 + $0x58]] }
  0xe5   : > { %v484_v1 = vmul.f32 %v3375_v33, %v483_v5  ;;  %v1092_v30 = vmul.f32 %v3518_v12, %v1091_v17  ;;  %v1222_v5 = vstv %s3668_s11  ;;  %s3747_s11 = sld [smem:[#allocation5 + $0x35]] }
  0xe6   : > { %v3524_v15 = vpop.permute.xlu1 %367  ;;  %v3532_v18 = vpop.permute.xlu0 %360  ;;  %v462_v34 = vstv %s3509_s9  ;;  %s3582_s9 = sld [smem:[#allocation5 + $0x6f]] }
  0xe7   : > { %v463_v47 = vmul.f32 %v3375_v33, %v462_v34  ;;  %v370_v16 = vadd.f32 %v3524_v15, %v309_v36  ;;  %v363_v20 = vadd.f32 %v3532_v18, %v306_v45  ;;  %v1132_v45 = vstv %s3620_s26  ;;  %s3711_s26 = sld [smem:[#allocation5 + $0x4e]] }
  0xe8   : > { %977 = vrot.lane.b32.xlu1 %v975_v10, %s4959_s2  ;;  %970 = vrot.lane.b32.xlu0 %v968_v11, %s4959_s2  ;;  %v480_v10 = vstv %s3563_s13  ;;  %v1133_v50 = vmul.f32 %v3518_v12, %v1132_v45  ;;  %s3675_s13 = sld [smem:[#allocation2 + $0x6]] }
  0xe9   : > { %v481_v23 = vmul.f32 %v3375_v33, %v480_v10 }
  0xea   : > { %v3552_v27 = vpop.permute.xlu1 %384  ;;  %v3560_v32 = vpop.permute.xlu0 %377 }
  0xeb   : > { %v387_v18 = vadd.f32 %v3552_v27, %v318_v6  ;;  %v380_v36 = vadd.f32 %v3560_v32, %v315_v7  ;;  %v490_v27 = vmul.f32 %v3375_v33, %v489_v26  ;;  %v1109_v32 = vmul.f32 %v3518_v12, %v1108_v39 }
  0xec   : > { %1033 = vrot.lane.b32.xlu1 %v1031_v21, %s4960_s7  ;;  %1026 = vrot.lane.b32.xlu0 %v1024_v24, %s4960_s7  ;;  %v492_v15 = vstv %s3582_s9  ;;  %s3692_s9 = sld [smem:[#allocation5 + $0x2a]]  ;;  %v1215_v7 = vstv %s3671_s14  ;;  %s3753_s14 = sld [smem:[#allocation2 + $0x35]] }
  0xed   : > { %v493_v35 = vmul.f32 %v3375_v33, %v492_v15  ;;  %v1125_v33 = vstv %s3626_s5  ;;  %s3716_s5 = sld [smem:[#allocation2 + $0x4e]]  ;;  %v658_v39 = vstv %s3711_s26  ;;  %s3824_s26 = sld [smem:[#allocation5 + $0x9]] }
  0xee   : > { %v402_v46 = vpop.permute.xlu1 %401  ;;  %v395_v52 = vpop.permute.xlu0 %394  ;;  %v637_v10 = vstv %s3675_s13  ;;  %s3775_s13 = sld [smem:[#allocation2 + $0x59]] }
  0xef   : > { %v404_v51 = vadd.f32 %v402_v46, %v336_v40  ;;  %v397_v54 = vadd.f32 %v395_v52, %v329_v44  ;;  %v1116_v44 = vmul.f32 %v3518_v12, %v1115_v31  ;;  %v1149_v52 = vstv %s3639_s6  ;;  %s3721_s6 = sld [smem:[#allocation5 + $0x11]] }
  0xf0   : > { %1050 = vrot.lane.b32.xlu1 %v1048_v38, %s4960_s7  ;;  %1043 = vrot.lane.b32.xlu0 %v1041_v41, %s4960_s7 }
  0xf1   : > { %v3596_v60 = vadd.f32 %v466_v43, %v404_v51  ;;  %v3602_v2 = vadd.f32 %v463_v47, %v397_v54  ;;  %v1126_v51 = vmul.f32 %v3518_v12, %v1125_v33  ;;  %v1142_v54 = vstv %s3646_s0  ;;  %s3727_s0 = sld [smem:[#allocation2 + $0x11]] }
  0xf2   : > { %v419_v0 = vpop.permute.xlu1 %418  ;;  %v412_v9 = vpop.permute.xlu0 %411  ;;  %v1143_v57 = vmul.f32 %v3518_v12, %v1142_v54 }
  0xf3   : > { %v421_v8 = vadd.f32 %v419_v0, %v353_v58  ;;  %v414_v11 = vadd.f32 %v412_v9, %v346_v62  ;;  %v3684_v58 = vld [vmem:[%s3339_s8 + $0x1a] sm:$0xff]  ;;  %v1198_v62 = vstv %s3661_s10  ;;  %s3736_s10 = sld [smem:[#allocation2 + $0x72]] }
  0xf4   : > { %1067 = vrot.lane.b32.xlu1 %v1065_v55, %s4960_s7  ;;  %1060 = vrot.lane.b32.xlu0 %v1058_v56, %s4960_s7  ;;  %v1150_v56 = vmul.f32 %v3518_v12, %v1149_v52  ;;  %v1206_v12 = vmul.f32 %v3684_v58, %v1205_v59  ;;  %v1216_v14 = vmul.f32 %v3684_v58, %v1215_v7  ;;  %v1283_v7 = vstv %s3753_s14  ;;  %s3855_s14 = sld [smem:[#allocation2 + $0x7f]] }
  0xf5   : > { %v3618_v19 = vadd.f32 %v475_v61, %v421_v8  ;;  %v3624_v22 = vadd.f32 %v472_v4, %v414_v11  ;;  %v1199_v4 = vmul.f32 %v3684_v58, %v1198_v62  ;;  %v640_v8 = vstv %s3673_s23  ;;  %s3768_s23 = sld [smem:[#allocation5 + $0x59]] }
  0xf6   : > { %v436_v21 = vpop.permute.xlu1 %435  ;;  %v429_v25 = vpop.permute.xlu0 %428  ;;  %v1223_v11 = vmul.f32 %v3684_v58, %v1222_v5  ;;  %v641_v17 = vmul.f32 %v3410_v3, %v640_v8  ;;  %v1290_v62 = vstv %s3747_s11  ;;  %s3849_s11 = sld [smem:[#allocation5 + $0x7f]] }
  0xf7   : > { %v438_v24 = vadd.f32 %v436_v21, %v370_v16  ;;  %v431_v28 = vadd.f32 %v429_v25, %v363_v20  ;;  %v1232_v16 = vstv %s3687_s24  ;;  %v638_v21 = vmul.f32 %v3410_v3, %v637_v10  ;;  %s3797_s24 = sld [smem:[#allocation2 + $0x7d]] }
  0xf8   : > { %1084 = vrot.lane.b32.xlu1 %v1082_v63, %s4960_s7  ;;  %1077 = vrot.lane.b32.xlu0 %v1075_v13, %s4960_s7  ;;  %v1239_v63 = vstv %s3679_s27  ;;  %s3789_s27 = sld [smem:[#allocation5 + $0x7d]] }
  0xf9   : > { %v3637_v34 = vadd.f32 %v484_v1, %v438_v24  ;;  %v3644_v40 = vadd.f32 %v481_v23, %v431_v28  ;;  %v649_v23 = vstv %s3692_s9  ;;  %v646_v24 = vstv %s3696_s28  ;;  %s3807_s9 = sld [smem:[#allocation5 + $0x13]] }
  0xfa   : > { %v453_v38 = vpop.permute.xlu1 %452  ;;  %v446_v42 = vpop.permute.xlu0 %445  ;;  %v1240_v26 = vmul.f32 %v3684_v58, %v1239_v63  ;;  %v1256_v28 = vstv %s3700_s3  ;;  %v650_v31 = vmul.f32 %v3410_v3, %v649_v23  ;;  %v1291_v63 = vmul.f32 %v3684_v58, %v1290_v62  ;;  %s3812_s28 = sld [smem:[#allocation2 + $0x13]]  ;;  %s3819_s3 = sld [smem:[#allocation5 + $0x37]] }
  0xfb   : > { %v455_v41 = vadd.f32 %v453_v38, %v387_v18  ;;  %v448_v43 = vadd.f32 %v446_v42, %v380_v36  ;;  %v655_v42 = vstv %s3716_s5  ;;  %s3826_s5 = sld [smem:[#allocation2 + $0x9]] }
  0xfc   : > { %1101 = vrot.lane.b32.xlu1 %v1099_v29, %s4959_s2  ;;  %1094 = vrot.lane.b32.xlu0 %v1092_v30, %s4959_s2  ;;  %v1249_v30 = vstv %s3705_s25  ;;  %s3821_s25 = sld [smem:[#allocation2 + $0x37]] }
  0xfd   : > { %v3654_v46 = vadd.f32 %v493_v35, %v455_v41  ;;  %v3659_v48 = vadd.f32 %v490_v27, %v448_v43 }
  0xfe   : > { %v509_v47 = vpop.permute.xlu1 %508  ;;  %v502_v49 = vpop.permute.xlu0 %501 }
  0xff   : > { %v511_v13 = vadd.f32 %v509_v47, %v3596_v60  ;;  %v504_v1 = vadd.f32 %v502_v49, %v3602_v2  ;;  %v1233_v2 = vmul.f32 %v3684_v58, %v1232_v16  ;;  %v1266_v47 = vstv %s3727_s0  ;;  %s3838_s0 = sld [smem:[#allocation2 + $0x5b]] }
 0x100   : > { %1118 = vrot.lane.b32.xlu1 %v1116_v44, %s4959_s2  ;;  %1111 = vrot.lane.b32.xlu0 %v1109_v32, %s4959_s2  ;;  %v1257_v44 = vmul.f32 %v3684_v58, %v1256_v28  ;;  %v1273_v32 = vstv %s3721_s6  ;;  %v659_v49 = vmul.f32 %v3410_v3, %v658_v39  ;;  %s3830_s6 = sld [smem:[#allocation5 + $0x5b]] }
 0x101   : > { %v1274_v59 = vmul.f32 %v3684_v58, %v1273_v32 }
 0x102   : > { %v526_v53 = vpop.permute.xlu1 %525  ;;  %v519_v55 = vpop.permute.xlu0 %518 }
 0x103   : > { %v528_v29 = vadd.f32 %v526_v53, %v3618_v19  ;;  %v521_v35 = vadd.f32 %v519_v55, %v3624_v22  ;;  %v647_v19 = vmul.f32 %v3410_v3, %v646_v24  ;;  %v1250_v22 = vmul.f32 %v3684_v58, %v1249_v30 }
 0x104   : > { %1135 = vrot.lane.b32.xlu1 %v1133_v50, %s4959_s2  ;;  %1128 = vrot.lane.b32.xlu0 %v1126_v51, %s4959_s2  ;;  %v667_v53 = vstv %s3733_s1  ;;  %s3840_s1 = sld [smem:[#allocation5 + $0x2d]] }
 0x106   : > { %v3689_v61 = vpop.permute.xlu1 %542  ;;  %v3694_v0 = vpop.permute.xlu0 %535 }
 0x107   : > { %v545_v45 = vadd.f32 %v3689_v61, %v3637_v34  ;;  %v538_v50 = vadd.f32 %v3694_v0, %v3644_v40  ;;  %v656_v34 = vmul.f32 %v3410_v3, %v655_v42  ;;  %v1267_v61 = vmul.f32 %v3684_v58, %v1266_v47 }
 0x108   : > { %1152 = vrot.lane.b32.xlu1 %v1150_v56, %s4959_s2  ;;  %1145 = vrot.lane.b32.xlu0 %v1143_v57, %s4959_s2  ;;  %v664_v56 = vstv %s3736_s10  ;;  %s3845_s10 = sld [smem:[#allocation2 + $0x2d]]  ;;  %v812_v42 = vstv %s3826_s5  ;;  %s3923_s5 = sld [smem:[#allocation2 + $0x5c]] }
 0x10a   : > { %v3707_v6 = vpop.permute.xlu1 %559  ;;  %v3713_v9 = vpop.permute.xlu0 %552 }
 0x10b   : > { %v562_v40 = vadd.f32 %v3707_v6, %v3654_v46  ;;  %v665_v46 = vmul.f32 %v3410_v3, %v664_v56 }
 0x10c   : > { %1208 = vrot.lane.b32.xlu1 %v1206_v12, %s4960_s7  ;;  %1201 = vrot.lane.b32.xlu0 %v1199_v4, %s4960_s7  ;;  %v668_v12 = vmul.f32 %v3410_v3, %v667_v53  ;;  %v555_v4 = vadd.f32 %v3713_v9, %v3659_v48  ;;  %v1284_v48 = vmul.f32 %v3684_v58, %v1283_v7  ;;  %v1307_v9 = vstv %s3768_s23  ;;  %s3857_s23 = sld [smem:[#allocation5 + $0x51]] }
 0x10d   : > { %v1300_v3 = vstv %s3775_s13  ;;  %s3865_s13 = sld [smem:[#allocation2 + $0x51]] }
 0x10e   : > { %v577_v20 = vpop.permute.xlu1 %576  ;;  %v570_v15 = vpop.permute.xlu0 %569 }
 0x10f   : > { %v579_v60 = vadd.f32 %v577_v20, %v511_v13  ;;  %v572_v25 = vadd.f32 %v570_v15, %v504_v1  ;;  %v1308_v1 = vmul.f32 %v3684_v58, %v1307_v9  ;;  %v1301_v20 = vmul.f32 %v3684_v58, %v1300_v3 }
 0x110   : > { %1225 = vrot.lane.b32.xlu1 %v1223_v11, %s4960_s7  ;;  %1218 = vrot.lane.b32.xlu0 %v1216_v14, %s4960_s7 }
 0x111   : > { %v3745_v18 = vadd.f32 %v641_v17, %v579_v60  ;;  %v3751_v38 = vadd.f32 %v638_v21, %v572_v25  ;;  %v1324_v21 = vstv %s3789_s27  ;;  %v1317_v60 = vstv %s3797_s24  ;;  %s3874_s27 = sld [smem:[#allocation5 + $0x14]] }
 0x112   : > { %v594_v36 = vpop.permute.xlu1 %593  ;;  %v587_v41 = vpop.permute.xlu0 %586  ;;  %v1325_v24 = vmul.f32 %v3684_v58, %v1324_v21  ;;  %v1318_v25 = vmul.f32 %v3684_v58, %v1317_v60  ;;  %s3876_s24 = sld [smem:[#allocation2 + $0x14]] }
 0x113   : > { %v596_v27 = vadd.f32 %v594_v36, %v528_v29  ;;  %v589_v43 = vadd.f32 %v587_v41, %v521_v35  ;;  %v1373_v29 = vstv %s3812_s28  ;;  %v1397_v36 = vstv %s3819_s3  ;;  %s3886_s28 = sld [smem:[#allocation2 + $0x75]]  ;;  %s3897_s3 = sld [smem:[#allocation5 + $0x38]] }
 0x114   : > { %1242 = vrot.lane.b32.xlu1 %v1240_v26, %s4960_s7  ;;  %1235 = vrot.lane.b32.xlu0 %v1233_v2, %s4960_s7  ;;  %v3835_v26 = vld [vmem:[%s3339_s8 + $0x30] sm:$0xff]  ;;  %v1380_v2 = vstv %s3807_s9  ;;  %s3882_s9 = sld [smem:[#allocation5 + $0x75]] }
 0x115   : > { %v3766_v33 = vadd.f32 %v650_v31, %v596_v27  ;;  %v3773_v52 = vadd.f32 %v647_v19, %v589_v43  ;;  %v1381_v31 = vmul.f32 %v3835_v26, %v1380_v2  ;;  %v1374_v35 = vmul.f32 %v3835_v26, %v1373_v29 }
 0x116   : > { %v611_v51 = vpop.permute.xlu1 %610  ;;  %v604_v55 = vpop.permute.xlu0 %603  ;;  %v1390_v19 = vstv %s3821_s25  ;;  %v815_v27 = vstv %s3824_s26  ;;  %v1398_v43 = vmul.f32 %v3835_v26, %v1397_v36  ;;  %s3903_s25 = sld [smem:[#allocation2 + $0x38]]  ;;  %s3917_s26 = sld [smem:[#allocation5 + $0x5c]] }
 0x117   : > { %v613_v54 = vadd.f32 %v611_v51, %v545_v45  ;;  %v606_v57 = vadd.f32 %v604_v55, %v538_v50  ;;  %v1407_v45 = vstv %s3838_s0  ;;  %v816_v47 = vmul.f32 %v3445_v37, %v815_v27  ;;  %s3945_s0 = sld [smem:[#allocation2 + $0x80]] }
 0x118   : > { %1259 = vrot.lane.b32.xlu1 %v1257_v44, %s4960_s7  ;;  %1252 = vrot.lane.b32.xlu0 %v1250_v22, %s4960_s7  ;;  %v1391_v44 = vmul.f32 %v3835_v26, %v1390_v19  ;;  %v1414_v22 = vstv %s3830_s6  ;;  %v821_v55 = vstv %s3845_s10  ;;  %s3937_s6 = sld [smem:[#allocation5 + $0x80]]  ;;  %s2787_s10 = sld [smem:[#allocation2 + $0x16]] }
 0x119   : > { %v3787_v0 = vadd.f32 %v659_v49, %v613_v54  ;;  %v3795_v8 = vadd.f32 %v656_v34, %v606_v57  ;;  %v824_v49 = vstv %s3840_s1  ;;  %v813_v34 = vmul.f32 %v3445_v37, %v812_v42  ;;  %s2788_s1 = sld [smem:[#allocation5 + $0x16]] }
 0x11a   : > { %v628_v5 = vpop.permute.xlu1 %627  ;;  %v621_v10 = vpop.permute.xlu0 %620  ;;  %v1415_v54 = vmul.f32 %v3835_v26, %v1414_v22  ;;  %v1408_v57 = vmul.f32 %v3835_v26, %v1407_v45  ;;  %v1441_v3 = vstv %s3876_s24  ;;  %v1465_v29 = vstv %s3897_s3  ;;  %s2793_s24 = sld [smem:[#allocation2 + $0x82]]  ;;  %s2798_s3 = sld [smem:[#allocation5 + $0x3b]] }
 0x11b   : > { %v630_v6 = vadd.f32 %v628_v5, %v562_v40  ;;  %v623_v11 = vadd.f32 %v621_v10, %v555_v4  ;;  %v1424_v40 = vstv %s3855_s14  ;;  %v830_v10 = vstv %s3865_s13  ;;  %s2789_s14 = sld [smem:[#allocation2 + $0x3a]]  ;;  %s2791_s13 = sld [smem:[#allocation2 + $0x5e]] }
 0x11c   : > { %1276 = vrot.lane.b32.xlu1 %v1274_v59, %s4959_s2  ;;  %1269 = vrot.lane.b32.xlu0 %v1267_v61, %s4959_s2  ;;  %v825_v59 = vmul.f32 %v3445_v37, %v824_v49  ;;  %v1458_v19 = vstv %s3903_s25  ;;  %s2797_s25 = sld [smem:[#allocation2 + $0x3b]] }
 0x11d   : > { %v3805_v13 = vadd.f32 %v668_v12, %v630_v6  ;;  %v3810_v16 = vadd.f32 %v665_v46, %v623_v11  ;;  %v833_v12 = vstv %s3857_s23  ;;  %v822_v46 = vmul.f32 %v3445_v37, %v821_v55  ;;  %s2792_s23 = sld [smem:[#allocation5 + $0x5e]] }
 0x11e   : > { %v684_v14 = vpop.permute.xlu1 %683  ;;  %v677_v17 = vpop.permute.xlu0 %676 }
 0x11f   : > { %v686_v32 = vadd.f32 %v684_v14, %v3745_v18  ;;  %v679_v50 = vadd.f32 %v677_v17, %v3751_v38  ;;  %v1431_v38 = vstv %s3849_s11  ;;  %v1448_v14 = vstv %s3874_s27  ;;  %s2790_s11 = sld [smem:[#allocation5 + $0x3a]] }
 0x120   : > { %1293 = vrot.lane.b32.xlu1 %v1291_v63, %s4959_s2  ;;  %1286 = vrot.lane.b32.xlu0 %v1284_v48, %s4959_s2  ;;  %v1432_v63 = vmul.f32 %v3835_v26, %v1431_v38  ;;  %v1425_v48 = vmul.f32 %v3835_v26, %v1424_v40  ;;  %v1449_v2 = vmul.f32 %v3835_v26, %v1448_v14  ;;  %s2794_s27 = sld [smem:[#allocation5 + $0x82]] }
 0x122   : > { %v701_v23 = vpop.permute.xlu1 %700  ;;  %v694_v15 = vpop.permute.xlu0 %693 }
 0x123   : > { %v703_v61 = vadd.f32 %v701_v23, %v3766_v33  ;;  %v696_v4 = vadd.f32 %v694_v15, %v3773_v52  ;;  %v834_v52 = vmul.f32 %v3445_v37, %v833_v12  ;;  %v831_v23 = vmul.f32 %v3445_v37, %v830_v10 }
 0x124   : > { %1310 = vrot.lane.b32.xlu1 %v1308_v1, %s4959_s2  ;;  %1303 = vrot.lane.b32.xlu0 %v1301_v20, %s4959_s2 }
 0x126   : > { %v718_v28 = vpop.permute.xlu1 %717  ;;  %v3843_v30 = vpop.permute.xlu0 %710 }
 0x127   : > { %v720_v9 = vadd.f32 %v718_v28, %v3787_v0  ;;  %v713_v1 = vadd.f32 %v3843_v30, %v3795_v8  ;;  %v842_v0 = vstv %s3882_s9  ;;  %v1442_v28 = vmul.f32 %v3835_v26, %v1441_v3  ;;  %s2796_s9 = sld [smem:[#allocation5 + $0x17]] }
 0x128   : > { %1327 = vrot.lane.b32.xlu1 %v1325_v24, %s4959_s2  ;;  %1320 = vrot.lane.b32.xlu0 %v1318_v25, %s4959_s2  ;;  %v839_v24 = vstv %s3886_s28  ;;  %s2795_s28 = sld [smem:[#allocation2 + $0x17]]  ;;  %v1606_v3 = vstv %s2794_s27  ;;  %s4054_s27 = sld [smem:[#allocation5 + $0x85]] }
 0x12a   : > { %v3859_v39 = vpop.permute.xlu1 %734  ;;  %v3862_v41 = vpop.permute.xlu0 %727 }
 0x12b   : > { %v737_v8 = vadd.f32 %v3859_v39, %v3805_v13  ;;  %v840_v13 = vmul.f32 %v3445_v37, %v839_v24 }
 0x12c   : > { %1383 = vrot.lane.b32.xlu1 %v1381_v31, %s4960_s7  ;;  %1376 = vrot.lane.b32.xlu0 %v1374_v35, %s4960_s7  ;;  %v843_v31 = vmul.f32 %v3445_v37, %v842_v0  ;;  %v730_v35 = vadd.f32 %v3862_v41, %v3810_v16  ;;  %v1459_v16 = vmul.f32 %v3835_v26, %v1458_v19  ;;  %v1482_v41 = vstv %s3917_s26  ;;  %s2800_s26 = sld [smem:[#allocation5 + $0x5f]] }
 0x12d   : > { %v1475_v37 = vstv %s3923_s5  ;;  %v1483_v49 = vmul.f32 %v3835_v26, %v1482_v41  ;;  %s2799_s5 = sld [smem:[#allocation2 + $0x5f]] }
 0x12e   : > { %v752_v51 = vpop.permute.xlu1 %751  ;;  %v745_v53 = vpop.permute.xlu0 %744 }
 0x12f   : > { %v754_v18 = vadd.f32 %v752_v51, %v686_v32  ;;  %v747_v56 = vadd.f32 %v745_v53, %v679_v50  ;;  %v1476_v50 = vmul.f32 %v3835_v26, %v1475_v37  ;;  %v1499_v51 = vstv %s3937_s6  ;;  %s2802_s6 = sld [smem:[#allocation5 + $0x83]] }
 0x130   : > { %1400 = vrot.lane.b32.xlu1 %v1398_v43, %s4960_s7  ;;  %1393 = vrot.lane.b32.xlu0 %v1391_v44, %s4960_s7  ;;  %v1466_v44 = vmul.f32 %v3835_v26, %v1465_v29  ;;  %v1640_v29 = vstv %s2798_s3  ;;  %s4076_s3 = sld [smem:[#allocation5 + $0xc]] }
 0x131   : > { %v3895_v62 = vadd.f32 %v816_v47, %v754_v18  ;;  %v3901_v7 = vadd.f32 %v813_v34, %v747_v56  ;;  %v1492_v18 = vstv %s3945_s0  ;;  %v3977_v56 = vld [vmem:[%s3339_s8 + $0x31] sm:$0xff]  ;;  %s2801_s0 = sld [smem:[#allocation2 + $0x83]] }
 0x132   : > { %v769_v5 = vpop.permute.xlu1 %768  ;;  %v762_v6 = vpop.permute.xlu0 %761  ;;  %v1493_v55 = vmul.f32 %v3835_v26, %v1492_v18  ;;  %4961 = vst [vmem:[#allocation19_spill] sm:$0xff] %v3977_v56  ;;  %v1607_v0 = vmul.f32 %v3977_v56, %v1606_v3  ;;  %v1641_v19 = vmul.f32 %v3977_v56, %v1640_v29 }
 0x133   : > { %v771_v33 = vadd.f32 %v769_v5, %v703_v61  ;;  %v764_v11 = vadd.f32 %v762_v6, %v696_v4  ;;  %v1572_v4 = vstv %s2790_s11  ;;  %s2816_s11 = sld [smem:[#allocation5 + $0x3d]] }
 0x134   : > { %1417 = vrot.lane.b32.xlu1 %v1415_v54, %s4960_s7  ;;  %1410 = vrot.lane.b32.xlu0 %v1408_v57, %s4960_s7  ;;  %v1500_v54 = vmul.f32 %v3835_v26, %v1499_v51  ;;  %v1555_v57 = vstv %s2788_s1  ;;  %v1573_v6 = vmul.f32 %v3977_v56, %v1572_v4  ;;  %s2814_s1 = sld [smem:[#allocation5 + $0x19]] }
 0x135   : > { %v3915_v17 = vadd.f32 %v825_v59, %v771_v33  ;;  %v3921_v21 = vadd.f32 %v822_v46, %v764_v11  ;;  %v1548_v59 = vstv %s2787_s10  ;;  %v1556_v40 = vmul.f32 %v3977_v56, %v1555_v57  ;;  %s2813_s10 = sld [smem:[#allocation2 + $0x19]] }
 0x136   : > { %v786_v20 = vpop.permute.xlu1 %785  ;;  %v779_v15 = vpop.permute.xlu0 %778  ;;  %v1549_v12 = vmul.f32 %v3977_v56, %v1548_v59  ;;  %v1565_v46 = vstv %s2789_s14  ;;  %v1589_v11 = vstv %s2792_s23  ;;  %v1674_v37 = vstv %s2802_s6  ;;  %s2815_s14 = sld [smem:[#allocation2 + $0x3d]]  ;;  %s2818_s23 = sld [smem:[#allocation5 + $0x61]] }
 0x137   : > { %v788_v60 = vadd.f32 %v786_v20, %v720_v9  ;;  %v781_v25 = vadd.f32 %v779_v15, %v713_v1  ;;  %v1566_v10 = vmul.f32 %v3977_v56, %v1565_v46  ;;  %v1590_v9 = vmul.f32 %v3977_v56, %v1589_v11  ;;  %s4090_s6 = sld [smem:[#allocation5 + $0x30]] }
 0x138   : > { %1434 = vrot.lane.b32.xlu1 %v1432_v63, %s4960_s7  ;;  %1427 = vrot.lane.b32.xlu0 %v1425_v48, %s4960_s7  ;;  %v1582_v48 = vstv %s2791_s13  ;;  %v1599_v20 = vstv %s2793_s24  ;;  %v1675_v18 = vmul.f32 %v3977_v56, %v1674_v37  ;;  %s2817_s13 = sld [smem:[#allocation2 + $0x61]]  ;;  %s4058_s24 = sld [smem:[#allocation2 + $0x85]] }
 0x139   : > { %v3935_v30 = vadd.f32 %v834_v52, %v788_v60  ;;  %v3943_v27 = vadd.f32 %v831_v23, %v781_v25  ;;  %v1583_v14 = vmul.f32 %v3977_v56, %v1582_v48  ;;  %v1600_v60 = vmul.f32 %v3977_v56, %v1599_v20 }
 0x13a   : > { %v803_v36 = vpop.permute.xlu1 %802  ;;  %v796_v42 = vpop.permute.xlu0 %795  ;;  %v1623_v15 = vstv %s2796_s9  ;;  %v1616_v25 = vstv %s2795_s28  ;;  %v1730_v57 = vstv %s2814_s1  ;;  %s4066_s9 = sld [smem:[#allocation5 + $0x1a]]  ;;  %s4096_s1 = sld [smem:[#allocation5 + $0x54]] }
 0x13b   : > { %v805_v39 = vadd.f32 %v803_v36, %v737_v8  ;;  %v798_v43 = vadd.f32 %v796_v42, %v730_v35  ;;  %v1617_v8 = vmul.f32 %v3977_v56, %v1616_v25  ;;  %v1633_v35 = vstv %s2797_s25  ;;  %s4070_s28 = sld [smem:[#allocation2 + $0x1a]]  ;;  %s4081_s25 = sld [smem:[#allocation5 + $0x3e]] }
 0x13c   : > { %1451 = vrot.lane.b32.xlu1 %v1449_v2, %s4959_s2  ;;  %1444 = vrot.lane.b32.xlu0 %v1442_v28, %s4959_s2  ;;  %v1624_v28 = vmul.f32 %v3977_v56, %v1623_v15  ;;  %v1740_v11 = vstv %s2815_s14  ;;  %v1764_v3 = vstv %s2818_s23  ;;  %s4107_s14 = sld [smem:[#allocation5 + $0x62]]  ;;  %s4109_s23 = sld [smem:[#allocation2 + $0x78]] }
 0x13d   : > { %v3953_v22 = vadd.f32 %v843_v31, %v805_v39  ;;  %v3958_v45 = vadd.f32 %v840_v13, %v798_v43  ;;  %v1634_v13 = vmul.f32 %v3977_v56, %v1633_v35  ;;  %v1657_v39 = vstv %s2800_s26  ;;  %s4083_s26 = sld [smem:[#allocation2 + $0xc]] }
 0x13e   : > { %v3955_v32 = vpop.permute.xlu1 %858  ;;  %v3960_v47 = vpop.permute.xlu0 %851  ;;  %v1650_v43 = vstv %s2799_s5  ;;  %v1774_v29 = vstv %s4058_s24  ;;  %s4088_s5 = sld [smem:[#allocation2 + $0x3e]]  ;;  %s4120_s24 = sld [smem:[#allocation2 + $0xf]] }
 0x13f   : > { %v1651_v41 = vmul.f32 %v3977_v56, %v1650_v43 }
 0x140   : > { %1468 = vrot.lane.b32.xlu1 %v1466_v44, %s4959_s2  ;;  %1461 = vrot.lane.b32.xlu0 %v1459_v16, %s4959_s2  ;;  %v1658_v16 = vmul.f32 %v3977_v56, %v1657_v39  ;;  %v1798_v39 = vstv %s4066_s9  ;;  %s4124_s9 = sld [smem:[#allocation5 + $0x33]] }
 0x142   : > { %v3967_v34 = vpop.permute.xlu1 %875  ;;  %v3970_v53 = vpop.permute.xlu0 %868 }
 0x144   : > { %1485 = vrot.lane.b32.xlu1 %v1483_v49, %s4959_s2  ;;  %1478 = vrot.lane.b32.xlu0 %v1476_v50, %s4959_s2  ;;  %v1667_v50 = vstv %s2801_s0  ;;  %s4092_s0 = sld [smem:[#allocation2 + $0x30]] }
 0x146   : > { %v3979_v38 = vpop.permute.xlu1 %892  ;;  %v3981_v61 = vpop.permute.xlu0 %885 }
 0x148   : > { %1502 = vrot.lane.b32.xlu1 %v1500_v54, %s4959_s2  ;;  %1495 = vrot.lane.b32.xlu0 %v1493_v55, %s4959_s2  ;;  %v1668_v54 = vmul.f32 %v3977_v56, %v1667_v50  ;;  %v4044_v55 = vld [vmem:[%s3339_s8 + $0x32] sm:$0xff] }
 0x149   : > { %4962 = vst [vmem:[#allocation20_spill] sm:$0xff] %v4044_v55  ;;  %v1731_v4 = vmul.f32 %v4044_v55, %v1730_v57  ;;  %v1765_v15 = vmul.f32 %v4044_v55, %v1764_v3  ;;  %v1799_v37 = vmul.f32 %v4044_v55, %v1798_v39  ;;  %v1808_v57 = vstv %s4088_s5  ;;  %s4155_s5 = sld [smem:[#allocation5 + $0x1c]] }
 0x14a   : > { %v3987_v5 = vpop.permute.xlu1 %909  ;;  %v3989_v33 = vpop.permute.xlu0 %902 }
 0x14c   : > { %1558 = vrot.lane.b32.xlu1 %v1556_v40, %s4960_s7  ;;  %1551 = vrot.lane.b32.xlu0 %v1549_v12, %s4960_s7  ;;  %v1723_v40 = vstv %s2813_s10  ;;  %s4098_s10 = sld [smem:[#allocation2 + $0x54]] }
 0x14d   : > { %v1724_v46 = vmul.f32 %v4044_v55, %v1723_v40  ;;  %v990_v40 = vstv %s4076_s3  ;;  %s4157_s3 = sld [smem:[#allocation2 + $0x1c]] }
 0x14e   : > { %v3995_v63 = vpop.permute.xlu1 %926  ;;  %v3997_v52 = vpop.permute.xlu0 %919 }
 0x150   : > { %1575 = vrot.lane.b32.xlu1 %v1573_v6, %s4960_s7  ;;  %1568 = vrot.lane.b32.xlu0 %v1566_v10, %s4960_s7  ;;  %v1747_v6 = vstv %s2816_s11  ;;  %s4102_s11 = sld [smem:[#allocation5 + $0x78]] }
 0x152   : > { %v4003_v1 = vpop.permute.xlu1 %943  ;;  %v4005_v23 = vpop.permute.xlu0 %936  ;;  %v1005_v3 = vstv %s4098_s10  ;;  %s4201_s10 = sld [smem:[#allocation2 + $0x12]] }
 0x154   : > { %1592 = vrot.lane.b32.xlu1 %v1590_v9, %s4960_s7  ;;  %1585 = vrot.lane.b32.xlu0 %v1583_v14, %s4960_s7  ;;  %v1748_v9 = vmul.f32 %v4044_v55, %v1747_v6  ;;  %v1741_v14 = vmul.f32 %v4044_v55, %v1740_v11  ;;  %v999_v6 = vstv %s4090_s6  ;;  %v996_v11 = vstv %s4092_s0  ;;  %s4189_s6 = sld [smem:[#allocation2 + $0x40]]  ;;  %s4191_s0 = sld [smem:[#allocation5 + $0x12]] }
 0x156   : > { %v4011_v24 = vpop.permute.xlu1 %960  ;;  %v4013_v2 = vpop.permute.xlu0 %953 }
 0x158   : > { %1609 = vrot.lane.b32.xlu1 %v1607_v0, %s4960_s7  ;;  %1602 = vrot.lane.b32.xlu0 %v1600_v60, %s4960_s7  ;;  %v1757_v0 = vstv %s2817_s13  ;;  %s4114_s13 = sld [smem:[#allocation2 + $0x62]] }
 0x159   : > { %v1758_v25 = vmul.f32 %v4044_v55, %v1757_v0  ;;  %v1017_v0 = vstv %s4102_s11  ;;  %s4209_s11 = sld [smem:[#allocation2 + $0x64]] }
 0x15a   : > { %v4019_v31 = vpop.permute.xlu1 %977  ;;  %v4021_v36 = vpop.permute.xlu0 %970 }
 0x15c   : > { %1626 = vrot.lane.b32.xlu1 %v1624_v28, %s4959_s2  ;;  %1619 = vrot.lane.b32.xlu0 %v1617_v8, %s4959_s2  ;;  %v1781_v28 = vstv %s4054_s27  ;;  %s4118_s27 = sld [smem:[#allocation5 + $0xf]] }
 0x15e   : > { %v4027_v42 = vpop.permute.xlu1 %1033  ;;  %v4029_v44 = vpop.permute.xlu0 %1026 }
 0x160   : > { %1643 = vrot.lane.b32.xlu1 %v1641_v19, %s4959_s2  ;;  %1636 = vrot.lane.b32.xlu0 %v1634_v13, %s4959_s2  ;;  %v1782_v19 = vmul.f32 %v4044_v55, %v1781_v28  ;;  %v1775_v13 = vmul.f32 %v4044_v55, %v1774_v29  ;;  %v1014_v28 = vstv %s4109_s23  ;;  %s4323_s23 = sld [smem:[#allocation5 + $0x41]] }
 0x162   : > { %v4035_v49 = vpop.permute.xlu1 %1050  ;;  %v4037_v51 = vpop.permute.xlu0 %1043 }
 0x164   : > { %1660 = vrot.lane.b32.xlu1 %v1658_v16, %s4959_s2  ;;  %1653 = vrot.lane.b32.xlu0 %v1651_v41, %s4959_s2  ;;  %v1791_v16 = vstv %s4070_s28  ;;  %s4131_s28 = sld [smem:[#allocation5 + $0x57]] }
 0x165   : > { %v1792_v50 = vmul.f32 %v4044_v55, %v1791_v16 }
 0x166   : > { %v4046_v59 = vpop.permute.xlu1 %1067  ;;  %v4048_v12 = vpop.permute.xlu0 %1060 }
 0x167   : > { %4963 = vst [vmem:[#allocation21_spill] sm:$0xff] %v4046_v59  ;;  %4964 = vst [vmem:[#allocation22_spill] sm:$0xff] %v4048_v12  ;;  %v1905_v59 = vstv %s4155_s5  ;;  %s4390_s5 = sld [smem:[#allocation2 + $0x89]] }
 0x168   : > { %1677 = vrot.lane.b32.xlu1 %v1675_v18, %s4959_s2  ;;  %1670 = vrot.lane.b32.xlu0 %v1668_v54, %s4959_s2  ;;  %v1815_v18 = vstv %s4081_s25  ;;  %s4146_s25 = sld [smem:[#allocation5 + $0x7b]] }
 0x16a   : > { %v4056_v10 = vpop.permute.xlu1 %1084  ;;  %v4060_v48 = vpop.permute.xlu0 %1077 }
 0x16c   : > { %1733 = vrot.lane.b32.xlu1 %v1731_v4, %s4960_s7  ;;  %1726 = vrot.lane.b32.xlu0 %v1724_v46, %s4960_s7  ;;  %v987_v4 = vstv %s4083_s26  ;;  %s4164_s26 = sld [smem:[#allocation5 + $0x40]] }
 0x16e   : > { %v4068_v20 = vpop.permute.xlu1 %1101  ;;  %v4072_v60 = vpop.permute.xlu0 %1094 }
 0x170   : > { %1750 = vrot.lane.b32.xlu1 %v1748_v9, %s4960_s7  ;;  %1743 = vrot.lane.b32.xlu0 %v1741_v14, %s4960_s7  ;;  %v1008_v9 = vstv %s4096_s1  ;;  %v1816_v14 = vmul.f32 %v4044_v55, %v1815_v18  ;;  %s4199_s1 = sld [smem:[#allocation5 + $0x64]] }
 0x172   : > { %v4085_v8 = vpop.permute.xlu1 %1118  ;;  %v4094_v35 = vpop.permute.xlu0 %1111 }
 0x173   : > { %4965 = vst [vmem:[#allocation23_spill] sm:$0xff] %v4085_v8  ;;  %4966 = vst [vmem:[#allocation24_spill] sm:$0xff] %v4094_v35  ;;  %v1898_v35 = vstv %s4157_s3  ;;  %s4392_s3 = sld [smem:[#allocation5 + $0x7e]] }
 0x174   : > { %1767 = vrot.lane.b32.xlu1 %v1765_v15, %s4960_s7  ;;  %1760 = vrot.lane.b32.xlu0 %v1758_v25, %s4960_s7  ;;  %v1809_v15 = vmul.f32 %v4044_v55, %v1808_v57  ;;  %v1832_v25 = vstv %s4107_s14  ;;  %s4211_s14 = sld [smem:[#allocation5 + $0x36]] }
 0x176   : > { %v4111_v43 = vpop.permute.xlu1 %1135  ;;  %v4116_v41 = vpop.permute.xlu0 %1128 }
 0x177   : > { %4967 = vst [vmem:[#allocation25_spill] sm:$0xff] %v4111_v43  ;;  %4968 = vst [vmem:[#allocation26_spill] sm:$0xff] %v4116_v41  ;;  %v1192_v43 = vstv %s4146_s25  ;;  %s4385_s25 = sld [smem:[#allocation5 + $0x89]] }
 0x178   : > { %1784 = vrot.lane.b32.xlu1 %v1782_v19, %s4960_s7  ;;  %1777 = vrot.lane.b32.xlu0 %v1775_v13, %s4960_s7  ;;  %v1825_v19 = vstv %s4114_s13  ;;  %v3023_v13 = vld [vmem:[%s3339_s8 + $0x19] sm:$0xff]  ;;  %s4331_s13 = sld [smem:[#allocation2 + $0x41]] }
 0x179   : > { %v4171_v39 = vmul.f32 %v3023_v13, %v990_v40  ;;  %v4173_v16 = vmul.f32 %v3023_v13, %v987_v4  ;;  %v4177_v18 = vmul.f32 %v3023_v13, %v996_v11  ;;  %v4181_v57 = vmul.f32 %v3023_v13, %v1008_v9 }
 0x17a   : > { %v4135_v54 = vpop.permute.xlu1 %1152  ;;  %v4144_v46 = vpop.permute.xlu0 %1145  ;;  %v4183_v56 = vmul.f32 %v3023_v13, %v1005_v3  ;;  %v4185_v41 = vmul.f32 %v3023_v13, %v1017_v0  ;;  %v1833_v40 = vmul.f32 %v4044_v55, %v1832_v25  ;;  %v4193_v4 = vmul.f32 %v3023_v13, %v1014_v28 }
 0x17b   : > { %v1826_v11 = vmul.f32 %v4044_v55, %v1825_v19  ;;  %v1849_v9 = vstv %s4133_s20  ;;  %v1174_v3 = vstv %s4124_s9  ;;  %v1171_v25 = vstv %s4126_s21  ;;  %s4254_s20 = sld [smem:[#allocation2 + $0x36]]  ;;  %s4265_s21 = sld [smem:[#allocation2 + $0x88]] }
 0x17c   : > { %1801 = vrot.lane.b32.xlu1 %v1799_v37, %s4959_s2  ;;  %1794 = vrot.lane.b32.xlu0 %v1792_v50, %s4959_s2  ;;  %v4175_v37 = vmul.f32 %v3023_v13, %v999_v6  ;;  %4971 = vst [vmem:[#allocation29_spill] sm:$0xff] %v4183_v56  ;;  %v1165_v6 = vstv %s4118_s27  ;;  %v1842_v28 = vstv %s4140_s17  ;;  %s4252_s17 = sld [smem:[#allocation5 + $0x88]]  ;;  %s4350_s27 = sld [smem:[#allocation5 + $0x5a]] }
 0x17d   : > { %v1183_v19 = vstv %s4131_s28  ;;  %v1180_v13 = vstv %s4138_s12  ;;  %v4220_v12 = vmul.f32 %v3684_v58, %v1165_v6  ;;  %v1843_v8 = vmul.f32 %v4044_v55, %v1842_v28  ;;  %s4294_s12 = sld [smem:[#allocation2 + $0x1d]] }
 0x17e   : > { %v4167_v29 = vpop.permute.xlu1 %1208  ;;  %v4179_v50 = vpop.permute.xlu0 %1201  ;;  %v1922_v6 = vstv %s4164_s26  ;;  %s4364_s9 = sld [smem:[#allocation5 + $0x65]]  ;;  %s4399_s26 = sld [smem:[#allocation2 + $0x7e]] }
 0x17f   : > { %4969 = vst [vmem:[#allocation27_spill] sm:$0xff] %v4167_v29  ;;  %4970 = vst [vmem:[#allocation28_spill] sm:$0xff] %v4179_v50  ;;  %v1189_v50 = vstv %s4148_s30  ;;  %v4225_v29 = vld [vmem:[%s3339_s8 + $0x48] sm:$0xff]  ;;  %s4272_s30 = sld [smem:[#allocation5 + $0x1d]] }
 0x180   : > { %1818 = vrot.lane.b32.xlu1 %v1816_v14, %s4959_s2  ;;  %1811 = vrot.lane.b32.xlu0 %v1809_v15, %s4959_s2  ;;  %v1162_v14 = vstv %s4120_s24  ;;  %4974 = vst [vmem:[#allocation32_spill] sm:$0xff] %v4220_v12  ;;  %v4239_v12 = vmul.f32 %v3684_v58, %v1171_v25  ;;  %v4261_v28 = vmul.f32 %v3684_v58, %v1189_v50  ;;  %v1939_v50 = vstv %s4199_s1  ;;  %s4352_s24 = sld [smem:[#allocation2 + $0x5a]]  ;;  %s4370_s28 = sld [smem:[#allocation2 + $0x65]] }
 0x181   : > { %v4230_v56 = vmul.f32 %v3684_v58, %v1162_v14  ;;  %v4247_v14 = vmul.f32 %v3684_v58, %v1180_v13  ;;  %v1899_v13 = vmul.f32 %v4225_v29, %v1898_v35  ;;  %s4433_s1 = sld [smem:[#allocation5 + $0x43]] }
 0x182   : > { %v4205_v0 = vpop.permute.xlu1 %1225  ;;  %v4213_v15 = vpop.permute.xlu0 %1218 }
 0x183   : > { %4972 = vst [vmem:[#allocation30_spill] sm:$0xff] %v4205_v0  ;;  %4973 = vst [vmem:[#allocation31_spill] sm:$0xff] %v4213_v15  ;;  %v1850_v0 = vmul.f32 %v4044_v55, %v1849_v9  ;;  %v4233_v15 = vmul.f32 %v3684_v58, %v1174_v3  ;;  %v4250_v3 = vmul.f32 %v3684_v58, %v1192_v43  ;;  %v1337_v55 = vstv %s4201_s10  ;;  %s4438_s10 = sld [smem:[#allocation2 + $0x43]] }
 0x184   : > { %1835 = vrot.lane.b32.xlu1 %v1833_v40, %s4959_s2  ;;  %1828 = vrot.lane.b32.xlu0 %v1826_v11, %s4959_s2  ;;  %v4242_v40 = vmul.f32 %v3684_v58, %v1183_v19  ;;  %v861_v11 = vadd.f32 %v3955_v32, %v3895_v62  ;;  %v1906_v19 = vmul.f32 %v4225_v29, %v1905_v59  ;;  %v1915_v32 = vstv %s4189_s6  ;;  %s4411_s6 = sld [smem:[#allocation5 + $0x1f]] }
 0x185   : > { %v854_v43 = vadd.f32 %v3960_v47, %v3901_v7  ;;  %v1923_v62 = vmul.f32 %v4225_v29, %v1922_v6  ;;  %v1340_v58 = vstv %s4191_s0  ;;  %v912_v59 = vadd.f32 %v3987_v5, %v3953_v22  ;;  %s4417_s0 = sld [smem:[#allocation2 + $0x1f]] }
 0x186   : > { %v4244_v9 = vpop.permute.xlu1 %1242  ;;  %v4258_v25 = vpop.permute.xlu0 %1235  ;;  %v929_v35 = vadd.f32 %v3995_v63, %v861_v11  ;;  %v905_v7 = vadd.f32 %v3989_v33, %v3958_v45  ;;  %v1932_v6 = vstv %s4209_s11  ;;  %v1916_v63 = vmul.f32 %v4225_v29, %v1915_v32  ;;  %s4450_s11 = sld [smem:[#allocation5 + $0x67]] }
 0x187   : > { %4975 = vst [vmem:[#allocation33_spill] sm:$0xff] %v4244_v9  ;;  %4976 = vst [vmem:[#allocation34_spill] sm:$0xff] %v4258_v25  ;;  %v922_v47 = vadd.f32 %v3997_v52, %v854_v43  ;;  %v1349_v25 = vstv %s4211_s14  ;;  %v878_v9 = vadd.f32 %v3967_v34, %v3915_v17  ;;  %v980_v22 = vadd.f32 %v4019_v31, %v912_v59  ;;  %s4453_s14 = sld [smem:[#allocation2 + $0x67]] }
 0x188   : > { %1852 = vrot.lane.b32.xlu1 %v1850_v0, %s4959_s2  ;;  %1845 = vrot.lane.b32.xlu0 %v1843_v8, %s4959_s2  ;;  %v4297_v45 = vmul.f32 %v3835_v26, %v1340_v58  ;;  %v871_v33 = vadd.f32 %v3970_v53, %v3921_v21  ;;  %v973_v52 = vadd.f32 %v4021_v36, %v905_v7  ;;  %v1956_v43 = vstv %s4252_s17  ;;  %s4461_s17 = sld [smem:[#allocation5 + $0x8b]] }
 0x189   : > { %v1940_v17 = vmul.f32 %v4225_v29, %v1939_v50  ;;  %v4305_v34 = vmul.f32 %v3835_v26, %v1337_v55  ;;  %v946_v31 = vadd.f32 %v4003_v1, %v878_v9  ;;  %v992_v8 = vadd.f32 %v4171_v39, %v929_v35  ;;  %v4978_v50 = vld [vmem:[#allocation32_spill] sm:$0xff] }
 0x18a   : > { %v4284_v0 = vpop.permute.xlu1 %1259  ;;  %v4291_v5 = vpop.permute.xlu0 %1252  ;;  %v1933_v11 = vmul.f32 %v4225_v29, %v1932_v6  ;;  %v4312_v21 = vmul.f32 %v3835_v26, %v1349_v25  ;;  %v939_v53 = vadd.f32 %v4005_v23, %v871_v33  ;;  %v989_v36 = vadd.f32 %v4173_v16, %v922_v47  ;;  %v4980_v6 = vld [vmem:[#allocation24_spill] sm:$0xff] }
 0x18b   : > { %v1346_v55 = vstv %s4254_s20  ;;  %v895_v1 = vadd.f32 %v3979_v38, %v3935_v30  ;;  %v1036_v39 = vadd.f32 %v4027_v42, %v992_v8  ;;  %v1019_v9 = vadd.f32 %v4185_v41, %v980_v22  ;;  %s4465_s20 = sld [smem:[#allocation2 + $0x8b]] }
 0x18c   : > { %1908 = vrot.lane.b32.xlu1 %v1906_v19, %s4960_s7  ;;  %1901 = vrot.lane.b32.xlu0 %v1899_v13, %s4960_s7  ;;  %v1949_v32 = vstv %s4265_s21  ;;  %v888_v25 = vadd.f32 %v3981_v61, %v3943_v27  ;;  %v1029_v23 = vadd.f32 %v4029_v44, %v989_v36  ;;  %v1016_v16 = vadd.f32 %v4193_v4, %v973_v52  ;;  %v4981_v52 = vld [vmem:[#allocation21_spill] sm:$0xff]  ;;  %s4472_s21 = sld [smem:[#allocation5 + $0x20]] }
 0x18d   : > { %v1973_v58 = vstv %s4272_s30  ;;  %v963_v30 = vadd.f32 %v4011_v24, %v895_v1  ;;  %v1001_v38 = vadd.f32 %v4175_v37, %v946_v31  ;;  %v1087_v42 = vadd.f32 %v4056_v10, %v1019_v9  ;;  %v4982_v31 = vld [vmem:[#allocation27_spill] sm:$0xff]  ;;  %v4984_v1 = vld [vmem:[#allocation28_spill] sm:$0xff]  ;;  %s4475_s30 = sld [smem:[#allocation2 + $0x20]] }
 0x18e   : > { %v1277_v19 = vpop.permute.xlu1 %1276  ;;  %v1270_v13 = vpop.permute.xlu0 %1269  ;;  %v1104_v41 = vadd.f32 %v4068_v20, %v1036_v39  ;;  %v956_v27 = vadd.f32 %v4013_v2, %v888_v25  ;;  %v998_v61 = vadd.f32 %v4177_v18, %v939_v53  ;;  %v1080_v44 = vadd.f32 %v4060_v48, %v1016_v16  ;;  %v4977_v18 = vld [vmem:[#allocation23_spill] sm:$0xff] }
 0x18f   : > { %v1097_v4 = vadd.f32 %v4072_v60, %v1029_v23  ;;  %v1053_v59 = vadd.f32 %v4035_v49, %v1001_v38  ;;  %v1155_v24 = vadd.f32 %v4135_v54, %v1087_v42  ;;  %v1966_v10 = vstv %s4294_s12  ;;  %s4477_s12 = sld [smem:[#allocation5 + $0x15]] }
 0x190   : > { %1925 = vrot.lane.b32.xlu1 %v1923_v62, %s4960_s7  ;;  %1918 = vrot.lane.b32.xlu0 %v1916_v63, %s4960_s7  ;;  %v4348_v20 = vmul.f32 %v3835_v26, %v1346_v55  ;;  %v1046_v2 = vadd.f32 %v4037_v51, %v998_v61  ;;  %v1148_v48 = vadd.f32 %v4144_v46, %v1080_v44  ;;  %v4979_v51 = vld [vmem:[#allocation29_spill] sm:$0xff]  ;;  %v1990_v36 = vstv %s4323_s23  ;;  %s4480_s23 = sld [smem:[#allocation2 + $0x15]] }
 0x191   : > { %v1957_v49 = vmul.f32 %v4225_v29, %v1956_v43  ;;  %v1950_v60 = vmul.f32 %v4225_v29, %v1949_v32  ;;  %v1010_v54 = vadd.f32 %v4181_v57, %v963_v30  ;;  %v1121_v35 = vadd.f32 %v4977_v18, %v1053_v59  ;;  %v4983_v43 = vld [vmem:[#allocation22_spill] sm:$0xff]  ;;  %v4985_v32 = vld [vmem:[#allocation25_spill] sm:$0xff] }
 0x192   : > { %v1294_v62 = vpop.permute.xlu1 %1293  ;;  %v4344_v37 = vpop.permute.xlu0 %1286  ;;  %v1167_v7 = vadd.f32 %v4978_v50, %v1104_v41  ;;  %v1974_v47 = vmul.f32 %v4225_v29, %v1973_v58  ;;  %v1007_v46 = vadd.f32 %v4979_v51, %v956_v27  ;;  %v1114_v22 = vadd.f32 %v4980_v6, %v1046_v2  ;;  %v4986_v58 = vld [vmem:[#allocation26_spill] sm:$0xff] }
 0x193   : > { %v1164_v63 = vadd.f32 %v4230_v56, %v1097_v4  ;;  %v1967_v57 = vmul.f32 %v4225_v29, %v1966_v10  ;;  %v1191_v9 = vadd.f32 %v4261_v28, %v1148_v48  ;;  %v1983_v56 = vstv %s4331_s13  ;;  %v4988_v4 = vld [vmem:[#allocation31_spill] sm:$0xff]  ;;  %s4488_s13 = sld [smem:[#allocation5 + $0x44]] }
 0x194   : > { %1942 = vrot.lane.b32.xlu1 %v1940_v17, %s4960_s7  ;;  %1935 = vrot.lane.b32.xlu0 %v1933_v11, %s4960_s7  ;;  %v1070_v17 = vadd.f32 %v4981_v52, %v1010_v54  ;;  %v1211_v8 = vadd.f32 %v4982_v31, %v1167_v7  ;;  %v1194_v11 = vadd.f32 %v4250_v3, %v1155_v24  ;;  %v1358_v61 = vstv %s4350_s27  ;;  %s4491_s27 = sld [smem:[#allocation2 + $0x44]] }
 0x195   : > { %v1063_v55 = vadd.f32 %v4983_v43, %v1007_v46  ;;  %v1204_v39 = vadd.f32 %v4984_v1, %v1164_v63  ;;  %v1176_v23 = vadd.f32 %v4233_v15, %v1121_v35  ;;  %v1173_v28 = vadd.f32 %v4239_v12, %v1114_v22  ;;  %v4987_v15 = vld [vmem:[#allocation30_spill] sm:$0xff]  ;;  %v4447_v1 = vld [vmem:[%s3339_s8 + $0x49] sm:$0xff] }
 0x196   : > { %v1311_v33 = vpop.permute.xlu1 %1310  ;;  %v1304_v53 = vpop.permute.xlu0 %1303  ;;  %v1138_v25 = vadd.f32 %v4985_v32, %v1070_v17  ;;  %v1262_v16 = vadd.f32 %v4284_v0, %v1194_v11  ;;  %v1279_v3 = vadd.f32 %v1277_v19, %v1211_v8  ;;  %v1255_v38 = vadd.f32 %v4291_v5, %v1191_v9 }
 0x197   : > { %v1131_v30 = vadd.f32 %v4986_v58, %v1063_v55  ;;  %v1272_v42 = vadd.f32 %v1270_v13, %v1204_v39  ;;  %v1228_v0 = vadd.f32 %v4987_v15, %v1176_v23  ;;  %v1355_v44 = vstv %s4352_s24  ;;  %s4493_s24 = sld [smem:[#allocation5 + $0x39]] }
 0x198   : > { %1959 = vrot.lane.b32.xlu1 %v1957_v49, %s4960_s7  ;;  %1952 = vrot.lane.b32.xlu0 %v1950_v60, %s4960_s7  ;;  %v1221_v12 = vadd.f32 %v4988_v4, %v1173_v28  ;;  %v1991_v13 = vmul.f32 %v4225_v29, %v1990_v36  ;;  %v1984_v59 = vmul.f32 %v4225_v29, %v1983_v56  ;;  %v2007_v48 = vstv %s4364_s9  ;;  %s4495_s9 = sld [smem:[#allocation2 + $0x39]] }
 0x199   : > { %v1185_v24 = vadd.f32 %v4242_v40, %v1138_v25  ;;  %v1296_v10 = vadd.f32 %v1294_v62, %v1228_v0  ;;  %v1342_v2 = vadd.f32 %v4297_v45, %v1279_v3  ;;  %v1182_v49 = vadd.f32 %v4247_v14, %v1131_v30  ;;  %v4989_v40 = vld [vmem:[#allocation33_spill] sm:$0xff] }
 0x19a   : > { %v1328_v41 = vpop.permute.xlu1 %1327  ;;  %v1321_v27 = vpop.permute.xlu0 %1320  ;;  %v1289_v60 = vadd.f32 %v4344_v37, %v1221_v12  ;;  %v1339_v18 = vadd.f32 %v4305_v34, %v1272_v42  ;;  %v2000_v35 = vstv %s4370_s28  ;;  %v1359_v45 = vmul.f32 %v3835_v26, %v1358_v61  ;;  %s4502_s28 = sld [smem:[#allocation5 + $0x68]] }
 0x19b   : > { %v4395_v19 = vadd.f32 %v1328_v41, %v1262_v16  ;;  %v4402_v5 = vadd.f32 %v1321_v27, %v1255_v38  ;;  %v1245_v62 = vadd.f32 %v4989_v40, %v1185_v24  ;;  %v2008_v34 = vmul.f32 %v4225_v29, %v2007_v48 }
 0x19c   : > { %1976 = vrot.lane.b32.xlu1 %v1974_v47, %s4959_s2  ;;  %1969 = vrot.lane.b32.xlu0 %v1967_v57, %s4959_s2  ;;  %v4990_v47 = vld [vmem:[#allocation34_spill] sm:$0xff]  ;;  %v1356_v37 = vmul.f32 %v3835_v26, %v1355_v44  ;;  %v1351_v6 = vadd.f32 %v4312_v21, %v1296_v10  ;;  %v2001_v22 = vmul.f32 %v4225_v29, %v2000_v35  ;;  %v2024_v63 = vstv %s4385_s25  ;;  %s4506_s25 = sld [smem:[#allocation2 + $0x68]] }
 0x19d   : > { %v1238_v14 = vadd.f32 %v4990_v47, %v1182_v49  ;;  %v1313_v46 = vadd.f32 %v1311_v33, %v1245_v62  ;;  %v1348_v17 = vadd.f32 %v4348_v20, %v1289_v60  ;;  %v2017_v31 = vstv %s4390_s5  ;;  %v3024_v20 = vld [vmem:[%s3339_s8 + $0x30] sm:$0xff]  ;;  %s4508_s5 = sld [smem:[#allocation5 + $0x5d]] }
 0x19e   : > { %v1384_v54 = vpop.permute.xlu1 %1383  ;;  %v1377_v7 = vpop.permute.xlu0 %1376  ;;  %v1367_v8 = vstv %s4392_s3  ;;  %v1364_v21 = vstv %s4399_s26  ;;  %v2025_v36 = vmul.f32 %v4225_v29, %v2024_v63  ;;  %v2018_v43 = vmul.f32 %v4225_v29, %v2017_v31  ;;  %s4511_s3 = sld [smem:[#allocation2 + $0x5d]]  ;;  %s4521_s26 = sld [smem:[#allocation5 + $0x8c]] }
 0x19f   : > { %v4420_v50 = vadd.f32 %v1384_v54, %v1342_v2  ;;  %v4424_v51 = vadd.f32 %v1377_v7, %v1339_v18  ;;  %v1306_v57 = vadd.f32 %v1304_v53, %v1238_v14  ;;  %v1360_v53 = vadd.f32 %v1359_v45, %v1313_v46 }
 0x1a0   : > { %1993 = vrot.lane.b32.xlu1 %v1991_v13, %s4959_s2  ;;  %1986 = vrot.lane.b32.xlu0 %v1984_v59, %s4959_s2  ;;  %v1368_v55 = vmul.f32 %v3024_v20, %v1367_v8  ;;  %v2080_v39 = vstv %s4411_s6  ;;  %v1365_v32 = vmul.f32 %v3024_v20, %v1364_v21  ;;  %v2073_v25 = vstv %s4417_s0  ;;  %s4526_s6 = sld [smem:[#allocation2 + $0x8c]]  ;;  %s4528_s0 = sld [smem:[#allocation5 + $0x81]] }
 0x1a1   : > { %v1357_v56 = vadd.f32 %v1356_v37, %v1306_v57  ;;  %v2081_v58 = vmul.f32 %v4447_v1, %v2080_v39  ;;  %v2074_v28 = vmul.f32 %v4447_v1, %v2073_v25  ;;  %v2097_v38 = vstv %s4433_s1  ;;  %s4531_s1 = sld [smem:[#allocation2 + $0x81]] }
 0x1a2   : > { %v1401_v52 = vpop.permute.xlu1 %1400  ;;  %v1394_v33 = vpop.permute.xlu0 %1393  ;;  %v1369_v30 = vadd.f32 %v1368_v55, %v4395_v19  ;;  %v1366_v41 = vadd.f32 %v1365_v32, %v4402_v5  ;;  %v2090_v15 = vstv %s4438_s10  ;;  %v2098_v44 = vmul.f32 %v4447_v1, %v2097_v38  ;;  %s4541_s10 = sld [smem:[#allocation5 + $0x22]] }
 0x1a3   : > { %v1403_v26 = vadd.f32 %v1401_v52, %v1351_v6  ;;  %v1396_v11 = vadd.f32 %v1394_v33, %v1348_v17  ;;  %v2091_v19 = vmul.f32 %v4447_v1, %v2090_v15  ;;  %v2114_v4 = vstv %s4450_s11  ;;  %s4546_s11 = sld [smem:[#allocation2 + $0x22]] }
 0x1a4   : > { %2010 = vrot.lane.b32.xlu1 %v2008_v34, %s4959_s2  ;;  %2003 = vrot.lane.b32.xlu0 %v2001_v22, %s4959_s2  ;;  %v2107_v5 = vstv %s4453_s14  ;;  %v2115_v10 = vmul.f32 %v4447_v1, %v2114_v4  ;;  %v2131_v48 = vstv %s4461_s17  ;;  %v4991_v22 = vld [vmem:[#allocation19_spill] sm:$0xff]  ;;  %s4559_s14 = sld [smem:[#allocation5 + $0x46]] }
 0x1a5   : > { %v2108_v2 = vmul.f32 %v4447_v1, %v2107_v5  ;;  %v2124_v60 = vstv %s4465_s20  ;;  %v2132_v40 = vmul.f32 %v4447_v1, %v2131_v48  ;;  %v2141_v45 = vstv %s4475_s30  ;;  %s4564_s17 = sld [smem:[#allocation2 + $0x46]]  ;;  %v4573_v48 = vld [vmem:[%s3339_s8 + $0x4a] sm:$0xff]  ;;  %s4576_s20 = sld [smem:[#allocation5 + $0x6a]] }
 0x1a6   : > { %v1418_v9 = vpop.permute.xlu1 %1417  ;;  %v1411_v16 = vpop.permute.xlu0 %1410  ;;  %v2125_v62 = vmul.f32 %v4447_v1, %v2124_v60  ;;  %v1515_v47 = vstv %s4477_s12  ;;  %v1512_v34 = vstv %s4480_s23  ;;  %v2142_v6 = vmul.f32 %v4447_v1, %v2141_v45  ;;  %s4587_s30 = sld [smem:[#allocation5 + $0x8e]]  ;;  %s4600_s23 = sld [smem:[#allocation5 + $0x23]] }
 0x1a7   : > { %v1420_v23 = vadd.f32 %v1418_v9, %v1360_v53  ;;  %v1413_v3 = vadd.f32 %v1411_v16, %v1357_v56  ;;  %v1516_v63 = vmul.f32 %v4991_v22, %v1515_v47  ;;  %v2165_v57 = vstv %s4488_s13  ;;  %s4591_s12 = sld [smem:[#allocation2 + $0x8e]]  ;;  %s4603_s13 = sld [smem:[#allocation2 + $0x23]] }
 0x1a8   : > { %2027 = vrot.lane.b32.xlu1 %v2025_v36, %s4959_s2  ;;  %2020 = vrot.lane.b32.xlu0 %v2018_v43, %s4959_s2  ;;  %v1513_v17 = vmul.f32 %v4991_v22, %v1512_v34  ;;  %v2158_v31 = vstv %s4491_s27  ;;  %v1524_v8 = vstv %s4493_s24  ;;  %v2166_v36 = vmul.f32 %v4447_v1, %v2165_v57  ;;  %s4605_s27 = sld [smem:[#allocation5 + $0x18]] }
 0x1a9   : > { %v1521_v21 = vstv %s4495_s9  ;;  %v2159_v43 = vmul.f32 %v4447_v1, %v2158_v31  ;;  %v1525_v20 = vmul.f32 %v4991_v22, %v1524_v8  ;;  %v2182_v55 = vstv %s4502_s28  ;;  %s4608_s24 = sld [smem:[#allocation2 + $0x18]]  ;;  %s4616_s9 = sld [smem:[#allocation5 + $0x47]] }
 0x1aa   : > { %v1435_v42 = vpop.permute.xlu1 %1434  ;;  %v1428_v27 = vpop.permute.xlu0 %1427  ;;  %v1522_v56 = vmul.f32 %v4991_v22, %v1521_v21  ;;  %v2175_v32 = vstv %s4506_s25  ;;  %v1533_v25 = vstv %s4508_s5  ;;  %s4619_s28 = sld [smem:[#allocation2 + $0x47]]  ;;  %s4621_s25 = sld [smem:[#allocation5 + $0x3c]] }
 0x1ab   : > { %v1437_v0 = vadd.f32 %v1435_v42, %v1369_v30  ;;  %v1430_v61 = vadd.f32 %v1428_v27, %v1366_v41  ;;  %v2183_v30 = vmul.f32 %v4447_v1, %v2182_v55  ;;  %v2176_v38 = vmul.f32 %v4447_v1, %v2175_v32  ;;  %s4623_s5 = sld [smem:[#allocation2 + $0x3c]] }
 0x1ac   : > { %2083 = vrot.lane.b32.xlu1 %v2081_v58, %s4960_s7  ;;  %2076 = vrot.lane.b32.xlu0 %v2074_v28, %s4960_s7  ;;  %v1534_v42 = vmul.f32 %v4991_v22, %v1533_v25  ;;  %v2199_v41 = vstv %s4521_s26  ;;  %v2323_v32 = vstv %s4600_s23  ;;  %s4634_s26 = sld [smem:[#allocation2 + $0x6b]]  ;;  %s2858_s23 = sld [smem:[#allocation5 + $0x1e]] }
 0x1ae   : > { %v1452_v12 = vpop.permute.xlu1 %1451  ;;  %v1445_v59 = vpop.permute.xlu0 %1444 }
 0x1af   : > { %v1454_v13 = vadd.f32 %v1452_v12, %v4420_v50  ;;  %v1447_v24 = vadd.f32 %v1445_v59, %v4424_v51  ;;  %v2148_v50 = vstv %s4472_s21  ;;  %v1539_v12 = vstv %s4531_s1  ;;  %s4580_s21 = sld [smem:[#allocation2 + $0x6a]]  ;;  %s4647_s1 = sld [smem:[#allocation5 + $0x8f]] }
 0x1b0   : > { %2100 = vrot.lane.b32.xlu1 %v2098_v44, %s4960_s7  ;;  %2093 = vrot.lane.b32.xlu0 %v2091_v19, %s4960_s7  ;;  %v2149_v46 = vmul.f32 %v4447_v1, %v2148_v50  ;;  %v1542_v44 = vstv %s4528_s0  ;;  %s4639_s0 = sld [smem:[#allocation2 + $0x60]] }
 0x1b1   : > { %v1517_v53 = vadd.f32 %v1516_v63, %v1454_v13  ;;  %v1514_v9 = vadd.f32 %v1513_v17, %v1447_v24  ;;  %v2200_v13 = vmul.f32 %v4447_v1, %v2199_v41  ;;  %v4992_v41 = vld [vmem:[#allocation20_spill] sm:$0xff] }
 0x1b2   : > { %v1469_v49 = vpop.permute.xlu1 %1468  ;;  %v1462_v18 = vpop.permute.xlu0 %1461 }
 0x1b3   : > { %v1471_v54 = vadd.f32 %v1469_v49, %v1403_v26  ;;  %v1464_v35 = vadd.f32 %v1462_v18, %v1396_v11  ;;  %v2255_v49 = vstv %s4541_s10  ;;  %s4652_s10 = sld [smem:[#allocation2 + $0x8f]] }
 0x1b4   : > { %2117 = vrot.lane.b32.xlu1 %v2115_v10, %s4960_s7  ;;  %2110 = vrot.lane.b32.xlu0 %v2108_v2, %s4960_s7  ;;  %v3025_v10 = vld [vmem:[%s3339_s8 + $0x31] sm:$0xff] }
 0x1b5   : > { %v1526_v28 = vadd.f32 %v1525_v20, %v1471_v54  ;;  %v1543_v2 = vmul.f32 %v3025_v10, %v1542_v44  ;;  %v1540_v18 = vmul.f32 %v3025_v10, %v1539_v12  ;;  %v2282_v31 = vstv %s4580_s21  ;;  %s2835_s21 = sld [smem:[#allocation2 + $0x63]] }
 0x1b6   : > { %v1486_v7 = vpop.permute.xlu1 %1485  ;;  %v1479_v51 = vpop.permute.xlu0 %1478 }
 0x1b7   : > { %v1488_v14 = vadd.f32 %v1486_v7, %v1420_v23  ;;  %v4513_v37 = vadd.f32 %v1479_v51, %v1413_v3  ;;  %v1530_v3 = vstv %s4511_s3  ;;  %v2256_v7 = vmul.f32 %v4573_v48, %v2255_v49  ;;  %s4630_s3 = sld [smem:[#allocation5 + $0x6b]] }
 0x1b8   : > { %2134 = vrot.lane.b32.xlu1 %v2132_v40, %s4960_s7  ;;  %2127 = vrot.lane.b32.xlu0 %v2125_v62, %s4960_s7  ;;  %v1531_v27 = vmul.f32 %v4991_v22, %v1530_v3 }
 0x1b9   : > { %v1535_v59 = vadd.f32 %v1534_v42, %v1488_v14  ;;  %v2272_v14 = vstv %s4559_s14  ;;  %s2831_s14 = sld [smem:[#allocation2 + $0x1b]] }
 0x1ba   : > { %v1503_v52 = vpop.permute.xlu1 %1502  ;;  %v1496_v33 = vpop.permute.xlu0 %1495  ;;  %v1532_v54 = vadd.f32 %v1531_v27, %v4513_v37  ;;  %v2265_v37 = vstv %s4564_s17  ;;  %v2273_v63 = vmul.f32 %v4573_v48, %v2272_v14  ;;  %s2834_s17 = sld [smem:[#allocation5 + $0x3f]] }
 0x1bb   : > { %v1505_v26 = vadd.f32 %v1503_v52, %v1437_v0  ;;  %v4533_v11 = vadd.f32 %v1496_v33, %v1430_v61  ;;  %v1523_v0 = vadd.f32 %v1522_v56, %v1464_v35  ;;  %v2192_v61 = vstv %s4526_s6  ;;  %s4636_s6 = sld [smem:[#allocation5 + $0x60]] }
 0x1bc   : > { %2151 = vrot.lane.b32.xlu1 %v2149_v46, %s4959_s2  ;;  %2144 = vrot.lane.b32.xlu0 %v2142_v6, %s4959_s2  ;;  %v2193_v24 = vmul.f32 %v4447_v1, %v2192_v61  ;;  %v2248_v35 = vstv %s4546_s11  ;;  %v2266_v57 = vmul.f32 %v4573_v48, %v2265_v37  ;;  %v2289_v52 = vstv %s4576_s20  ;;  %s4654_s11 = sld [smem:[#allocation5 + $0x84]]  ;;  %s2833_s20 = sld [smem:[#allocation2 + $0x3f]] }
 0x1bd   : > { %v1544_v45 = vadd.f32 %v1543_v2, %v1505_v26  ;;  %v2249_v47 = vmul.f32 %v4573_v48, %v2248_v35  ;;  %v1541_v34 = vadd.f32 %v1540_v18, %v4533_v11  ;;  %v2290_v21 = vmul.f32 %v4573_v48, %v2289_v52  ;;  %v3026_v61 = vld [vmem:[%s3339_s8 + $0x32] sm:$0xff]  ;;  %s2832_s8 = sld [smem:[#allocation5 + $0x1b]] }
 0x1be   : > { %v1559_v39 = vpop.permute.xlu1 %1558  ;;  %v1552_v16 = vpop.permute.xlu0 %1551  ;;  %v2283_v11 = vmul.f32 %v4573_v48, %v2282_v31 }
 0x1bf   : > { %v4548_v23 = vadd.f32 %v1559_v39, %v1517_v53  ;;  %v4551_v58 = vadd.f32 %v1552_v16, %v1514_v9  ;;  %v1690_v16 = vstv %s4605_s27  ;;  %s2860_s27 = sld [smem:[#allocation5 + $0x42]] }
 0x1c0   : > { %2168 = vrot.lane.b32.xlu1 %v2166_v36, %s4959_s2  ;;  %2161 = vrot.lane.b32.xlu0 %v2159_v43, %s4959_s2  ;;  %v2306_v36 = vstv %s4587_s30  ;;  %v2299_v43 = vstv %s4591_s12  ;;  %s2838_s30 = sld [smem:[#allocation5 + $0x87]] }
 0x1c1   : > { %v2307_v9 = vmul.f32 %v4573_v48, %v2306_v36  ;;  %v2300_v56 = vmul.f32 %v4573_v48, %v2299_v43  ;;  %s2837_s12 = sld [smem:[#allocation2 + $0x87]] }
 0x1c2   : > { %v1576_v15 = vpop.permute.xlu1 %1575  ;;  %v1569_v4 = vpop.permute.xlu0 %1568  ;;  %v1717_v52 = vstv %s4654_s11  ;;  %s4789_s11 = sld [smem:[#allocation5 + $0x8d]] }
 0x1c3   : > { %v1578_v19 = vadd.f32 %v1576_v15, %v1526_v28  ;;  %v1571_v5 = vadd.f32 %v1569_v4, %v1523_v0  ;;  %v1691_v15 = vmul.f32 %v4992_v41, %v1690_v16  ;;  %v2340_v0 = vstv %s4616_s9  ;;  %s4736_s9 = sld [smem:[#allocation5 + $0x66]] }
 0x1c4   : > { %2185 = vrot.lane.b32.xlu1 %v2183_v30, %s4959_s2  ;;  %2178 = vrot.lane.b32.xlu0 %v2176_v38, %s4959_s2  ;;  %v1687_v30 = vstv %s4608_s24  ;;  %v2324_v38 = vmul.f32 %v4573_v48, %v2323_v32  ;;  %v1699_v4 = vstv %s4621_s25  ;;  %v1718_v36 = vmul.f32 %v3026_v61, %v1717_v52  ;;  %s4734_s24 = sld [smem:[#allocation2 + $0x42]]  ;;  %s4744_s25 = sld [smem:[#allocation5 + $0x21]] }
 0x1c5   : > { %v1688_v44 = vmul.f32 %v3026_v61, %v1687_v30  ;;  %v1700_v49 = vmul.f32 %v3026_v61, %v1699_v4  ;;  %v1862_v4 = vstv %s2831_s14  ;;  %s4823_s14 = sld [smem:[#allocation7 + $0x1]] }
 0x1c6   : > { %v1593_v60 = vpop.permute.xlu1 %1592  ;;  %v1586_v62 = vpop.permute.xlu0 %1585 }
 0x1c7   : > { %v1595_v40 = vadd.f32 %v1593_v60, %v1535_v59  ;;  %v1588_v50 = vadd.f32 %v1586_v62, %v1532_v54  ;;  %v2357_v60 = vstv %s4630_s3  ;;  %v1708_v62 = vstv %s4636_s6  ;;  %s4748_s3 = sld [smem:[#allocation2 + $0x21]]  ;;  %s4754_s6 = sld [smem:[#allocation5 + $0x45]] }
 0x1c8   : > { %2202 = vrot.lane.b32.xlu1 %v2200_v13, %s4959_s2  ;;  %2195 = vrot.lane.b32.xlu0 %v2193_v24, %s4959_s2  ;;  %v1696_v13 = vstv %s4623_s5  ;;  %v2341_v24 = vmul.f32 %v4573_v48, %v2340_v0  ;;  %v2358_v14 = vmul.f32 %v4573_v48, %v2357_v60  ;;  %v1709_v37 = vmul.f32 %v3026_v61, %v1708_v62  ;;  %s4746_s5 = sld [smem:[#allocation5 + $0x8a]] }
 0x1c9   : > { %v1697_v35 = vmul.f32 %v3026_v61, %v1696_v13  ;;  %v1889_v52 = vstv %s2837_s12 }
 0x1ca   : > { %v1610_v51 = vpop.permute.xlu1 %1609  ;;  %v1603_v6 = vpop.permute.xlu0 %1602 }
 0x1cb   : > { %v1612_v46 = vadd.f32 %v1610_v51, %v1544_v45  ;;  %v4593_v22 = vadd.f32 %v1603_v6, %v1541_v34  ;;  %v1705_v45 = vstv %s4639_s0  ;;  %s4760_s0 = sld [smem:[#allocation2 + $0x45]] }
 0x1cc   : > { %2258 = vrot.lane.b32.xlu1 %v2256_v7, %s4960_s7  ;;  %2251 = vrot.lane.b32.xlu0 %v2249_v47, %s4960_s7 }
 0x1ce   : > { %v1627_v17 = vpop.permute.xlu1 %1626  ;;  %v1620_v26 = vpop.permute.xlu0 %1619 }
 0x1cf   : > { %v1629_v8 = vadd.f32 %v1627_v17, %v4548_v23  ;;  %v1622_v33 = vadd.f32 %v1620_v26, %v4551_v58  ;;  %v2316_v23 = vstv %s4603_s13  ;;  %s2857_s13 = sld [smem:[#allocation2 + $0x1e]] }
 0x1d0   : > { %2275 = vrot.lane.b32.xlu1 %v2273_v63, %s4960_s7  ;;  %2268 = vrot.lane.b32.xlu0 %v2266_v57, %s4960_s7  ;;  %v2317_v42 = vmul.f32 %v4573_v48, %v2316_v23  ;;  %v1706_v63 = vmul.f32 %v3026_v61, %v1705_v45  ;;  %v2367_v57 = vstv %s4652_s10  ;;  %s4771_s10 = sld [smem:[#allocation2 + $0x69]] }
 0x1d1   : > { %v1692_v10 = vadd.f32 %v1691_v15, %v1629_v8  ;;  %v1689_v18 = vadd.f32 %v1688_v44, %v1622_v33 }
 0x1d2   : > { %v1644_v53 = vpop.permute.xlu1 %1643  ;;  %v1637_v55 = vpop.permute.xlu0 %1636 }
 0x1d3   : > { %v1646_v20 = vadd.f32 %v1644_v53, %v1578_v19  ;;  %v1639_v39 = vadd.f32 %v1637_v55, %v1571_v5  ;;  %v2333_v19 = vstv %s4619_s28  ;;  %s4738_s28 = sld [smem:[#allocation2 + $0x66]] }
 0x1d4   : > { %2292 = vrot.lane.b32.xlu1 %v2290_v21, %s4960_s7  ;;  %2285 = vrot.lane.b32.xlu0 %v2283_v11, %s4960_s7  ;;  %v2334_v2 = vmul.f32 %v4573_v48, %v2333_v19  ;;  %v2368_v11 = vmul.f32 %v4573_v48, %v2367_v57 }
 0x1d5   : > { %v1701_v51 = vadd.f32 %v1700_v49, %v1646_v20  ;;  %v1871_v49 = vstv %s2833_s20  ;;  %s263_s20 = sand.u32 1, %s3150_s16  }
 0x1d6   : > { %v1661_v25 = vpop.permute.xlu1 %1660  ;;  %v1654_v58 = vpop.permute.xlu0 %1653  ;;  %v1872_v62 = vmul.f32 %v4225_v29, %v1871_v49 }
 0x1d7   : > { %v1663_v3 = vadd.f32 %v1661_v25, %v1595_v40  ;;  %v1656_v28 = vadd.f32 %v1654_v58, %v1588_v50  ;;  %v2350_v40 = vstv %s4634_s26  ;;  %s4750_s26 = sld [smem:[#allocation2 + $0x8a]] }
 0x1d8   : > { %2309 = vrot.lane.b32.xlu1 %v2307_v9, %s4960_s7  ;;  %2302 = vrot.lane.b32.xlu0 %v2300_v56, %s4960_s7  ;;  %s4657_s7 = sld [smem:[#allocation2 + $0x84]]  ;;  %v2351_v34 = vmul.f32 %v4573_v48, %v2350_v40 }
 0x1d9   : > { %v1710_v21 = vadd.f32 %v1709_v37, %v1663_v3  ;;  %v1707_v43 = vadd.f32 %v1706_v63, %v1656_v28 }
 0x1da   : > { %v1678_v27 = vpop.permute.xlu1 %1677  ;;  %v1671_v5 = vpop.permute.xlu0 %1670 }
 0x1db   : > { %v1680_v12 = vadd.f32 %v1678_v27, %v1612_v46  ;;  %v1673_v59 = vadd.f32 %v1671_v5, %v4593_v22  ;;  %v2374_v46 = vstv %s4647_s1  ;;  %v1698_v22 = vadd.f32 %v1697_v35, %v1639_v39  ;;  %s4769_s1 = sld [smem:[#allocation5 + $0x69]] }
 0x1dc   : > { %2326 = vrot.lane.b32.xlu1 %v2324_v38, %s4959_s2  ;;  %2319 = vrot.lane.b32.xlu0 %v2317_v42, %s4959_s2  ;;  %v2375_v33 = vmul.f32 %v4573_v48, %v2374_v46 }
 0x1dd   : > { %v1719_v56 = vadd.f32 %v1718_v36, %v1680_v12 }
 0x1de   : > { %v1734_v54 = vpop.permute.xlu1 %1733  ;;  %v1727_v7 = vpop.permute.xlu0 %1726  ;;  %v1714_v8 = vstv %s4657_s7  ;;  %s4791_s7 = sld [smem:[#allocation2 + $0x8d]] }
 0x1df   : > { %v1736_v50 = vadd.f32 %v1734_v54, %v1692_v10  ;;  %v1729_v47 = vadd.f32 %v1727_v7, %v1689_v18  ;;  %v1715_v20 = vmul.f32 %v3026_v61, %v1714_v8  ;;  %v1865_v61 = vstv %s2832_s8  ;;  %s4798_s8 = sld [smem:[#allocation7]] }
 0x1e0   : > { %2343 = vrot.lane.b32.xlu1 %v2341_v24, %s4959_s2  ;;  %2336 = vrot.lane.b32.xlu0 %v2334_v2, %s4959_s2  ;;  %v1866_v5 = vmul.f32 %v4225_v29, %v1865_v61  ;;  %v1874_v24 = vstv %s2834_s17 }
 0x1e1   : > { %v1716_v25 = vadd.f32 %v1715_v20, %v1673_v59  ;;  %v1863_v59 = vmul.f32 %v4225_v29, %v1862_v4  ;;  %v1875_v18 = vmul.f32 %v4225_v29, %v1874_v24 }
 0x1e2   : > { %v1751_v6 = vpop.permute.xlu1 %1750  ;;  %v1744_v31 = vpop.permute.xlu0 %1743 }
 0x1e3   : > { %v1753_v17 = vadd.f32 %v1751_v6, %v1701_v51  ;;  %v1746_v26 = vadd.f32 %v1744_v31, %v1698_v22  ;;  %v1892_v22 = vstv %s2838_s30  ;;  %s2911_s30 = sshll.u32 %s3162_s19, 3 }
 0x1e4   : > { %2360 = vrot.lane.b32.xlu1 %v2358_v14, %s4959_s2  ;;  %2353 = vrot.lane.b32.xlu0 %v2351_v34, %s4959_s2  ;;  %v1893_v8 = vmul.f32 %v4225_v29, %v1892_v22  ;;  %s2426_s12 = sadd.s32 %s3158_s18, %s2911_s30 }
 0x1e5   : > { %s281_s17 = smul.f32 %s4798_s8, %s4798_s8 }
 0x1e6   : > { %v1768_v53 = vpop.permute.xlu1 %1767  ;;  %v1761_v39 = vpop.permute.xlu0 %1760 }
 0x1e7   : > { %v1770_v55 = vadd.f32 %v1768_v53, %v1710_v21  ;;  %v1763_v9 = vadd.f32 %v1761_v39, %v1707_v43  ;;  %v1890_v21 = vmul.f32 %v4225_v29, %v1889_v52 }
 0x1e8   : > { %2377 = vrot.lane.b32.xlu1 %v2375_v33, %s4959_s2  ;;  %2370 = vrot.lane.b32.xlu0 %v2368_v11, %s4959_s2  ;;  %s2836_s2 = sld [smem:[#allocation5 + $0x63]] }
 0x1ea   : > { %v1785_v32 = vpop.permute.xlu1 %1784  ;;  %v1778_v16 = vpop.permute.xlu0 %1777 }
 0x1eb   : > { %v1787_v23 = vadd.f32 %v1785_v32, %v1719_v56  ;;  %v1780_v58 = vadd.f32 %v1778_v16, %v1716_v25 }
 0x1ee   : > { %v1802_v3 = vpop.permute.xlu1 %1801  ;;  %v1795_v38 = vpop.permute.xlu0 %1794 }
 0x1ef   : > { %v1804_v30 = vadd.f32 %v1802_v3, %v1736_v50  ;;  %v1797_v28 = vadd.f32 %v1795_v38, %v1729_v47  ;;  %v1883_v50 = vstv %s2836_s2  ;;  %v1880_v47 = vstv %s2835_s21  ;;  %s2595_s2 = sshll.u32 %s263_s20, 5 }
 0x1f0   : > { %v1884_v34 = vmul.f32 %v4225_v29, %v1883_v50  ;;  %v1881_v6 = vmul.f32 %v4225_v29, %v1880_v47  ;;  %v2046_v50 = vstv %s4734_s24  ;;  %v2055_v47 = vstv %s4738_s28  ;;  %s265_s21 = scalar_lea.vmem [#allocation8], %s2595_s2  ;;  %s4863_s24 = scalar_lea.sflag [#allocation3], %s263_s20 }
 0x1f1   : > { %v1867_v54 = vadd.f32 %v1866_v5, %v1804_v30  ;;  %v1864_v40 = vadd.f32 %v1863_v59, %v1797_v28  ;;  %s3181_s28 = smov [#allocation8]  }
 0x1f2   : > { %v1819_v42 = vpop.permute.xlu1 %1818  ;;  %v1812_v15 = vpop.permute.xlu0 %1811 }
 0x1f3   : > { %v1821_v41 = vadd.f32 %v1819_v42, %v1753_v17  ;;  %v1814_v0 = vadd.f32 %v1812_v15, %v1746_v26 }
 0x1f5   : > { %v1876_v51 = vadd.f32 %v1875_v18, %v1821_v41  ;;  %v1873_v46 = vadd.f32 %v1872_v62, %v1814_v0  ;;  %v2049_v62 = vstv %s2860_s27 }
 0x1f6   : > { %v1836_v27 = vpop.permute.xlu1 %1835  ;;  %v1829_v19 = vpop.permute.xlu0 %1828 }
 0x1f7   : > { %v1838_v44 = vadd.f32 %v1836_v27, %v1770_v55  ;;  %v1831_v12 = vadd.f32 %v1829_v19, %v1763_v9 }
 0x1f9   : > { %v1885_v31 = vadd.f32 %v1884_v34, %v1838_v44  ;;  %v1882_v33 = vadd.f32 %v1881_v6, %v1831_v12 }
 0x1fa   : > { %v1853_v13 = vpop.permute.xlu1 %1852  ;;  %v1846_v2 = vpop.permute.xlu0 %1845 }
 0x1fb   : > { %v1855_v10 = vadd.f32 %v1853_v13, %v1787_v23  ;;  %v1848_v60 = vadd.f32 %v1846_v2, %v1780_v58  ;;  %v2037_v2 = vstv %s2857_s13  ;;  %s2912_s13 = sshll.u32 %s2426_s12, 7 }
 0x1fc   : > { %s4858_s18 = scalar_lea.hbm %s4919_s4, %s2912_s13 }
 0x1fd   : > { %v1894_v43 = vadd.f32 %v1893_v8, %v1855_v10  ;;  %v1891_v55 = vadd.f32 %v1890_v21, %v1848_v60  ;;  %v2040_v10 = vstv %s2858_s23  ;;  %v2056_v8 = vmul.f32 %v4447_v1, %v2055_v47  ;;  %s2429_s23 = sshll.u32 %s265_s21, 4  ;;  %s4852_s23 = int_to_ptr.vmem [resolvable:$true] %s2429_s23 }
 0x1fe   : > { %v1909_v35 = vpop.permute.xlu1 %1908  ;;  %v1902_v45 = vpop.permute.xlu0 %1901  ;;  %v2064_v21 = vstv %s4750_s26 }
 0x1ff   : > { %v4686_v7 = vadd.f32 %v1909_v35, %v1867_v54  ;;  %v4688_v14 = vadd.f32 %v1902_v45, %v1864_v40  ;;  %v2041_v54 = vmul.f32 %v4447_v1, %v2040_v10  ;;  %v2038_v40 = vmul.f32 %v4447_v1, %v2037_v2 }
 0x200   : > { %v2058_v45 = vstv %s4736_s9  ;;  %s3072_s9 = scalar_lea.vmem %s4852_s23, 512 }
 0x201   : > { %v2059_v52 = vmul.f32 %v4447_v1, %v2058_v45  ;;  %p3073_p8 = scmp.ne.s32.totalorder %s4852_s23, %s3072_s9 }
 0x202   : > { %v1926_v37 = vpop.permute.xlu1 %1925  ;;  %v1919_v57 = vpop.permute.xlu0 %1918 }
 0x203   : > { %v4692_v63 = vadd.f32 %v1926_v37, %v1876_v51  ;;  %v4694_v17 = vadd.f32 %v1919_v57, %v1873_v46  ;;  %v2215_v37 = vstv %s4744_s25  ;;  %v2047_v57 = vmul.f32 %v4447_v1, %v2046_v50  ;;  %p3074_p12 = pnand %p3073_p8, %p4993_p10  ;;  %s3076_s25 = sshll.u32 %s3181_s28, 4  ;;  %s3077_s25 = int_to_ptr.vmem [resolvable:$false] %s3076_s25 }
 0x204   : > { %p3079_p2 = scmp.lt.s32.totalorder %s4852_s23, %s3077_s25 }
 0x205   : > { %p3075_p0 = pneg %p3074_p12 }
 0x206   : > { %v1943_v26 = vpop.permute.xlu1 %1942  ;;  %v1936_v36 = vpop.permute.xlu0 %1935 }
 0x207   : > { %v4698_v11 = vadd.f32 %v1943_v26, %v1885_v31  ;;  %v4700_v53 = vadd.f32 %v1936_v36, %v1882_v33  ;;  %v2067_v26 = vstv %s4746_s5  ;;  %v2216_v36 = vmul.f32 %v4573_v48, %v2215_v37  ;;  %s3078_s5 = scalar_lea.vmem %s3077_s25, 1024 }
 0x208   : > { %p3080_p6 = scmp.lt.s32.totalorder %s3078_s5, %s3072_s9 }
 0x20a   : > { %v1960_v20 = vpop.permute.xlu1 %1959  ;;  %v1953_v9 = vpop.permute.xlu0 %1952  ;;  %p3081_p7 = por %p3080_p6, %p3079_p2 }
 0x20b   : > { %v4702_v39 = vadd.f32 %v1960_v20, %v1894_v43  ;;  %v4704_v56 = vadd.f32 %v1953_v9, %v1891_v55  ;;  %v2224_v43 = vstv %s4754_s6 }
 0x20c   : > { %p3082_p9 = pnand %p3081_p7, %p3075_p0 }
 0x20e   : > { %v1977_v32 = vpop.permute.xlu1 %1976  ;;  %v1970_v25 = vpop.permute.xlu0 %1969 }
 0x20f   : > { %v1979_v60 = vadd.f32 %v1977_v32, %v4686_v7  ;;  %v1972_v35 = vadd.f32 %v1970_v25, %v4688_v14  ;;  %v2050_v14 = vmul.f32 %v4447_v1, %v2049_v62  ;;  %v2221_v32 = vstv %s4760_s0 }
 0x211   : > { %v2042_v34 = vadd.f32 %v2041_v54, %v1979_v60  ;;  %v2039_v22 = vadd.f32 %v2038_v40, %v1972_v35  ;;  %v2222_v60 = vmul.f32 %v4573_v48, %v2221_v32  ;;  %v2233_v54 = vstv %s4769_s1 }
 0x212   : > { %v1994_v23 = vpop.permute.xlu1 %1993  ;;  %v1987_v16 = vpop.permute.xlu0 %1986  ;;  %v2230_v35 = vstv %s4771_s10 }
 0x213   : > { %v1996_v7 = vadd.f32 %v1994_v23, %v4692_v63  ;;  %v1989_v6 = vadd.f32 %v1987_v16, %v4694_v17  ;;  %v2212_v63 = vstv %s4748_s3 }
 0x215   : > { %v2051_v55 = vadd.f32 %v2050_v14, %v1996_v7  ;;  %v2048_v16 = vadd.f32 %v2047_v57, %v1989_v6 }
 0x216   : > { %v4706_v58 = vpop.permute.xlu1 %2010  ;;  %v4708_v29 = vpop.permute.xlu0 %2003 }
 0x217   : > { %v2013_v17 = vadd.f32 %v4706_v58, %v4698_v11  ;;  %v2006_v23 = vadd.f32 %v4708_v29, %v4700_v53  ;;  %v2068_v11 = vmul.f32 %v4447_v1, %v2067_v26  ;;  %v2065_v58 = vmul.f32 %v4447_v1, %v2064_v21 }
 0x219   : > { %v2060_v29 = vadd.f32 %v2059_v52, %v2013_v17 }
 0x21a   : > { %v4710_v3 = vpop.permute.xlu1 %2027  ;;  %v4712_v30 = vpop.permute.xlu0 %2020 }
 0x21b   : > { %v2030_v53 = vadd.f32 %v4710_v3, %v4702_v39  ;;  %v2023_v62 = vadd.f32 %v4712_v30, %v4704_v56  ;;  %v2234_v39 = vmul.f32 %v4573_v48, %v2233_v54  ;;  %v2231_v3 = vmul.f32 %v4573_v48, %v2230_v35 }
 0x21c   : > { %v2242_v56 = vstv %s4789_s11  ;;  %v2239_v30 = vstv %s4791_s7 }
 0x21d   : > { %v2069_v14 = vadd.f32 %v2068_v11, %v2030_v53 }
 0x21e   : > { %v2084_v38 = vpop.permute.xlu1 %2083  ;;  %v2077_v28 = vpop.permute.xlu0 %2076 }
 0x21f   : > { %v2086_v31 = vadd.f32 %v2084_v38, %v2042_v34  ;;  %v2079_v33 = vadd.f32 %v2077_v28, %v2039_v22  ;;  %v2213_v28 = vmul.f32 %v4573_v48, %v2212_v63  ;;  %v2066_v22 = vadd.f32 %v2065_v58, %v2023_v62 }
 0x222   : > { %v4714_v42 = vpop.permute.xlu1 %2100  ;;  %v4716_v41 = vpop.permute.xlu0 %2093 }
 0x223   : > { %v2103_v10 = vadd.f32 %v4714_v42, %v2051_v55  ;;  %v2096_v2 = vadd.f32 %v4716_v41, %v2048_v16  ;;  %v2057_v41 = vadd.f32 %v2056_v8, %v2006_v23  ;;  %v2243_v8 = vmul.f32 %v4573_v48, %v2242_v56 }
 0x226   : > { %v4718_v15 = vpop.permute.xlu1 %2117  ;;  %v4720_v0 = vpop.permute.xlu0 %2110 }
 0x227   : > { %v2120_v47 = vadd.f32 %v4718_v15, %v2060_v29 }
 0x22a   : > { %v4722_v27 = vpop.permute.xlu1 %2134  ;;  %v4724_v61 = vpop.permute.xlu0 %2127 }
 0x22e   : > { %v2152_v44 = vpop.permute.xlu1 %2151  ;;  %v2145_v19 = vpop.permute.xlu0 %2144 }
 0x22f   : > { %v2154_v9 = vadd.f32 %v2152_v44, %v2086_v31  ;;  %v2147_v38 = vadd.f32 %v2145_v19, %v2079_v33  ;;  %v2225_v44 = vmul.f32 %v4573_v48, %v2224_v43  ;;  %v2240_v33 = vmul.f32 %v4573_v48, %v2239_v30 }
 0x231   : > { %v2217_v19 = vadd.f32 %v2216_v36, %v2154_v9  ;;  %v2214_v45 = vadd.f32 %v2213_v28, %v2147_v38 }
 0x232   : > { %v4726_v4 = vpop.permute.xlu1 %2168  ;;  %v4728_v12 = vpop.permute.xlu0 %2161 }
 0x233   : > { %v2171_v42 = vadd.f32 %v4726_v4, %v2103_v10  ;;  %v2164_v50 = vadd.f32 %v4728_v12, %v2096_v2  ;;  %v2113_v4 = vadd.f32 %v4720_v0, %v2057_v41  ;;  %v2137_v0 = vadd.f32 %v4722_v27, %v2069_v14 }
 0x234   : > { %v2384_v27 = vstv %s281_s17 }
 0x235   : > { %v2226_v15 = vadd.f32 %v2225_v44, %v2171_v42  ;;  %v2223_v52 = vadd.f32 %v2222_v60, %v2164_v50 }
 0x236   : > { %v4730_v5 = vpop.permute.xlu1 %2185  ;;  %v4732_v13 = vpop.permute.xlu0 %2178 }
 0x237   : > { %v2188_v37 = vadd.f32 %v4730_v5, %v2120_v47  ;;  %v2181_v57 = vadd.f32 %v4732_v13, %v2113_v4  ;;  %v2130_v5 = vadd.f32 %v4724_v61, %v2066_v22 }
 0x239   : > { %v2235_v43 = vadd.f32 %v2234_v39, %v2188_v37  ;;  %v2232_v9 = vadd.f32 %v2231_v3, %v2181_v57 }
 0x23a   : > { %v4740_v59 = vpop.permute.xlu1 %2202  ;;  %v4742_v24 = vpop.permute.xlu0 %2195 }
 0x23b   : > { %v2205_v36 = vadd.f32 %v4740_v59, %v2137_v0  ;;  %v2198_v55 = vadd.f32 %v4742_v24, %v2130_v5 }
 0x23d   : > { %v2244_v10 = vadd.f32 %v2243_v8, %v2205_v36  ;;  %v2241_v24 = vadd.f32 %v2240_v33, %v2198_v55 }
 0x23e   : > { %v4752_v49 = vpop.permute.xlu1 %2258  ;;  %v4758_v18 = vpop.permute.xlu0 %2251 }
 0x23f   : > { %v2261_v7 = vadd.f32 %v4752_v49, %v2217_v19  ;;  %v2254_v34 = vadd.f32 %v4758_v18, %v2214_v45 }
 0x242   : > { %v4767_v51 = vpop.permute.xlu1 %2275  ;;  %v4776_v46 = vpop.permute.xlu0 %2268 }
 0x243   : > { %v2278_v18 = vadd.f32 %v4767_v51, %v2226_v15  ;;  %v2271_v63 = vadd.f32 %v4776_v46, %v2223_v52  ;;  %v2386_v46 = vstv %s4823_s14 }
 0x246   : > { %v4787_v20 = vpop.permute.xlu1 %2292  ;;  %v4796_v25 = vpop.permute.xlu0 %2285 }
 0x247   : > { %v2295_v23 = vadd.f32 %v4787_v20, %v2235_v43  ;;  %v2288_v48 = vadd.f32 %v4796_v25, %v2232_v9 }
 0x24a   : > { %v4811_v40 = vpop.permute.xlu1 %2309  ;;  %v2303_v1 = vpop.permute.xlu0 %2302 }
 0x24b   : > { %v2312_v54 = vadd.f32 %v4811_v40, %v2244_v10  ;;  %v2305_v35 = vadd.f32 %v2303_v1, %v2241_v24 }
 0x24e   : > { %v2327_v12 = vpop.permute.xlu1 %2326  ;;  %v2320_v49 = vpop.permute.xlu0 %2319 }
 0x24f   : > { %v2329_v6 = vadd.f32 %v2327_v12, %v2261_v7  ;;  %v2322_v31 = vadd.f32 %v2320_v49, %v2254_v34 }
 0x251   : > { %v2382_v26 = vmul.f32 %v2329_v6, %v2329_v6  ;;  %v2381_v21 = vmul.f32 %v2322_v31, %v2322_v31 }
 0x252   : > { %v2344_v13 = vpop.permute.xlu1 %2343  ;;  %v2337_v51 = vpop.permute.xlu0 %2336 }
 0x253   : > { %v2346_v17 = vadd.f32 %v2344_v13, %v2278_v18  ;;  %v2383_v32 = vadd.f32 %v2382_v26, %v2381_v21  ;;  %v2339_v61 = vadd.f32 %v2337_v51, %v2271_v63 }
 0x255   : > { %v2391_v16 = vmul.f32 %v2346_v17, %v2346_v17  ;;  %v2385_v38 = vmul.f32 %v2384_v27, %v2383_v32  ;;  %v2390_v28 = vmul.f32 %v2339_v61, %v2339_v61 }
 0x256   : > { %v2361_v59 = vpop.permute.xlu1 %2360  ;;  %v2354_v58 = vpop.permute.xlu0 %2353 }
 0x257   : > { %v2363_v11 = vadd.f32 %v2361_v59, %v2295_v23  ;;  %v2387_v44 = vadd.f32 %v2386_v46, %v2385_v38  ;;  %v2392_v2 = vadd.f32 %v2391_v16, %v2390_v28  ;;  %v2356_v60 = vadd.f32 %v2354_v58, %v2288_v48 }
 0x259   : > { %v2398_v20 = vmul.f32 %v2363_v11, %v2363_v11  ;;  %2389 = vst.msk [vmem:[%s265_s21] sm:$0xff] %vm2388_vm0, %v2387_v44  ;;  %v2393_v25 = vmul.f32 %v2392_v2, %v2384_v27  ;;  %v2397_v53 = vmul.f32 %v2356_v60, %v2356_v60 }
 0x25a   : > { %v2378_v29 = vpop.permute.xlu1 %2377  ;;  %v2371_v19 = vpop.permute.xlu0 %2370 }
 0x25b   : > { %v2380_v42 = vadd.f32 %v2378_v29, %v2312_v54  ;;  %v2394_v62 = vadd.f32 %v2393_v25, %v2386_v46  ;;  %v2399_v41 = vadd.f32 %v2398_v20, %v2397_v53  ;;  %v2373_v50 = vadd.f32 %v2371_v19, %v2305_v35 }
 0x25d   : > { %v2405_v45 = vmul.f32 %v2380_v42, %v2380_v42  ;;  %2907 = vst.msk [vmem:[%s265_s21 + $0x8] sm:$0xff] %vm2388_vm0, %v2394_v62  ;;  %v2400_v40 = vmul.f32 %v2399_v41, %v2384_v27  ;;  %v2404_v1 = vmul.f32 %v2373_v50, %v2373_v50 }
 0x25f   : > { %v2401_v47 = vadd.f32 %v2400_v40, %v2386_v46  ;;  %v2406_v7 = vadd.f32 %v2405_v45, %v2404_v1 }
 0x261   : > { %2908 = vst.msk [vmem:[%s265_s21 + $0x10] sm:$0xff] %vm2388_vm0, %v2401_v47  ;;  %v2407_v39 = vmul.f32 %v2406_v7, %v2384_v27 }
 0x263   : > { %v2408_v3 = vadd.f32 %v2407_v39, %v2386_v46 }
 0x265   : > { %2909 = vst.msk [vmem:[%s265_s21 + $0x18] sm:$0xff] %vm2388_vm0, %v2408_v3 }
 0x266   : > { %3085 = shalt.err (!%p3082_p9)
}
 0x267   : > { %s3086_s3 = scalar_lea.hbm %s4858_s18, 512  ;;  %s3090_s0 = scalar_lea.hbm %s4919_s4, 2048 }
 0x268   : > { %p3087_p11 = scmp.ne.s32.totalorder %s4858_s18, %s3086_s3  ;;  %p3091_p4 = scmp.lt.u32.totalorder %s4858_s18, %s4919_s4 }
 0x269   : > { %p3092_p5 = scmp.lt.u32.totalorder %s3090_s0, %s3086_s3  ;;  %p3094_p8 = scmp.lt.u32.totalorder %s3086_s3, %s4858_s18 }
 0x26a   : > { %p3088_p13 = pnand %p3087_p11, %p4993_p10 }
 0x26b   : > { %p3093_p3 = por %p3092_p5, %p3091_p4 }
 0x26c   : > { %p3089_p1 = pneg %p3088_p13 }
 0x26d   : > { %p3095_p12 = por %p3094_p8, %p3093_p3 }
 0x26f   : > { %p3096_p0 = pnand %p3095_p12, %p3089_p1 }
 0x271   : > { %3099 = shalt.err (!%p3096_p0)
}
 0x272   : > { %s3182_s11 = smov 128   ;;  %s3183_s7 = smov 256  }
 0x273   : > { %s3184_s8 = smov 8  }
 0x274   : > { %2928 = dma.vmem_to_hbm [thread:$0]  (%p4993_p10), %s4852_s23, 512, %s4858_s18, %s4863_s24, %s3182_s11, %s3183_s7, %s3184_s8  }
 0x275 PF: > { %s4994_s14 = sld [smem:[#allocation17_spill]]  ;;  %p2950_p2 = scmp.ge.s32.totalorder %s3174_s22, 2 }
 0x276   : > { %s2444_s17 = sand.u32 1, %s3146_s15  }
 0x277   : > { %s2445_s20 = scalar_lea.sflag [#allocation3], %s2444_s17 }
 0x27b   : > { %p4995_p6 = scmp.ne.s32.totalorder %s4994_s14, 0 }
 0x27d   : > { %p2941_p7 = pnand %p2950_p2, %p4995_p6 }
 0x27f   : > { %3141 = dma.done.wait (!%p2941_p7), %s2445_s20, 512  }
 0x280   : > { %3143 = vsyncadd (!%p2941_p7), %s2445_s20, 4294966784  ;;  %s19_s22 = sadd.s32 1, %s3174_s22   ;;  %s4996_s2 = sld [smem:[#allocation12_spill]] }
 0x281   : > { %p16_p9 = scmp.ge.s32.totalorder %s19_s22, 6   ;;  %s4997_s17 = sld [smem:[#allocation18_spill]] }
 0x282   : > { %s4998_s18 = sld [smem:[#allocation13_spill]]  ;;  %s4999_s19 = sld [smem:[#allocation14_spill]] }
 0x283   : > { %s5000_s20 = sld [smem:[#allocation15_spill]]  ;;  %s5001_s21 = sld [smem:[#allocation16_spill]] }
 0x284   : > { %s5002_s15 = smov %s3150_s16  ;;  %18 = sbr.rel (!%p16_p9) target bundleno = 12 (0xc), region = 99 }
 0x286   : > { %s5003_s16 = smov %s4996_s2 }
 0x28b   :  { %2450 = vsyncpa [#allocation3], 1 }
 0x28c   :  { %2452 = vsyncpa [#allocation3 + $0x1], 1 }
 0x28d   :  { %2453 = vsyncpa [#allocation4], 1 }
 0x28e   :  { %2455 = vsyncpa [#allocation4 + $0x1], 1 }
 0x28f   :  { %2456 = vsyncpa [#allocation6], 1 }

</bundles_post_ra>
